<compile_context>
chip_gen: v7x
topology: tpu7x:2x2x1
jax: 0.10.0
libtpu: 0.0.40
codegen_flags: <defaults>
</compile_context>

<pallas_src>
import functools
import math

import jax
import jax.numpy as jnp
from jax import lax
from jax.experimental import pallas as pl
from jax.experimental.pallas import tpu as pltpu


def _round_up(x, m):
    return ((x + m - 1) // m) * m


# ----------------------------- Pallas kernel ------------------------------

def _conv_tap_kernel(x_ref, w_ref, b_ref, o_ref, acc_ref, *,
                     kh, kw, stride, hs, tile_oh, ow, cin, relu):
    """One (1, tile_oh, OW, Np) output tile.

    x_ref : (1, s*s*Hs, Ws, Cin) bf16  phase-decomposed padded image (1 batch)
    w_ref : (kh*kw, Cin, Np)     bf16  per-tap weight, resident in VMEM
    b_ref : (1, Np)              f32
    o_ref : (1, tile_oh, OW, Np)
    acc   : (tile_oh*OW, Np)     f32 VMEM scratch
    """
    r0 = pl.program_id(1) * tile_oh
    m_blk = tile_oh * ow
    np_ = o_ref.shape[-1]

    for t in range(kh * kw):
        di, dj = divmod(t, kw)
        phase = (di % stride) * stride + (dj % stride)
        row_base = phase * hs + di // stride
        col0 = dj // stride
        xs = x_ref[0, pl.ds(r0 + row_base, tile_oh), pl.ds(col0, ow), :]
        contrib = jnp.dot(xs.reshape(m_blk, cin), w_ref[t],
                          preferred_element_type=jnp.float32)
        if t == 0:
            acc_ref[...] = contrib
        else:
            acc_ref[...] += contrib

    out = acc_ref[...] + b_ref[...]
    if relu:
        out = jnp.maximum(out, 0.0)
    o_ref[0] = out.reshape(tile_oh, ow, np_).astype(o_ref.dtype)


# --------------------------- parameter building ---------------------------

def make_basic_conv2d_params(key, in_channels, out_channels, kernel_size):
    """nn.Conv2d default init; weights pre-cast to bf16 and laid out per-tap
    (kh*kw, Cin, Np) with Cout zero-padded to a lane multiple, ONCE."""
    kh = kw = kernel_size
    k_w, k_b = jax.random.split(key)
    fan_in = in_channels * kh * kw
    bound = 1.0 / math.sqrt(fan_in)
    w = jax.random.uniform(k_w, (out_channels, in_channels, kh, kw),
                           jnp.float32, -bound, bound)
    b = jax.random.uniform(k_b, (out_channels,), jnp.float32, -bound, bound)

    np_ = _round_up(out_channels, 128)
    # (Cout,Cin,KH,KW) -> (KH,KW,Cin,Cout) -> (kh*kw, Cin, Cout), pad Cout.
    w_taps = jnp.transpose(w, (2, 3, 1, 0)).reshape(kh * kw, in_channels,
                                                    out_channels)
    w_taps = jnp.pad(w_taps, ((0, 0), (0, 0), (0, np_ - out_channels)))
    bias_pad = jnp.pad(b.reshape(1, -1), ((0, 0), (0, np_ - out_channels)))
    return {
        "w_taps": w_taps.astype(jnp.bfloat16),   # (kh*kw, Cin, Np)
        "bias": bias_pad.astype(jnp.float32),    # (1, Np)
        "w_f32": w, "b_f32": b,                  # reference only
        "ksize": (kh, kw), "cin": in_channels, "cout": out_channels,
    }


# ------------------------------ forward pass ------------------------------

def basic_conv2d(params, x_nchw, *, stride=1, padding=0,
                 out_dtype=jnp.float32):
    """BasicConv2d forward: Conv2d (with bias) -> ReLU.  NCHW in / NCHW out."""
    kh, kw = params["ksize"]
    cin, cout = params["cin"], params["cout"]
    np_ = params["w_taps"].shape[-1]
    s = stride

    x = jnp.transpose(x_nchw, (0, 2, 3, 1))          # NCHW -> NHWC
    n, h, w_, c = x.shape
    assert c == cin
    oh = (h + 2 * padding - kh) // s + 1
    ow = (w_ + 2 * padding - kw) // s + 1

    # Output-row tile: aim for ~1024 matmul rows per grid step.
    tile_oh = max(1, min(oh, 1024 // max(ow, 1)))
    oh_pad = _round_up(oh, tile_oh)
    r_steps = oh_pad // tile_oh

    # Single fused pass: spatial zero-pad + stride-phase split + bf16 cast.
    # (For stride=1 this is just the padded image; no kh*kw blow-up in HBM.)
    hs = oh_pad + (kh - 1) // s
    ws = ow + (kw - 1) // s
    xp = jnp.pad(x, ((0, 0), (padding, padding), (padding, padding), (0, 0)))
    phases = []
    for pi in range(s):
        for pj in range(s):
            sub = xp[:, pi::s, pj::s, :][:, :hs, :ws, :]
            sub = jnp.pad(sub, ((0, 0), (0, hs - sub.shape[1]),
                                (0, ws - sub.shape[2]), (0, 0)))
            phases.append(sub)
    x_stack = jnp.concatenate(phases, axis=1).astype(jnp.bfloat16)
    # x_stack: (N, s*s*Hs, Ws, Cin)

    kern = functools.partial(_conv_tap_kernel, kh=kh, kw=kw, stride=s, hs=hs,
                             tile_oh=tile_oh, ow=ow, cin=cin, relu=True)

    # VMEM budget from actual (layout-padded) block sizes + margin.
    def _tile_bytes(second_minor, minor, itemsize):
        return _round_up(second_minor, 8) * _round_up(minor, 128) * itemsize
    in_bytes = s * s * hs * _tile_bytes(ws, cin, 2)
    w_bytes = kh * kw * _tile_bytes(cin, np_, 2)
    out_bytes = tile_oh * _tile_bytes(ow, np_, jnp.dtype(out_dtype).itemsize)
    bias_bytes = _tile_bytes(1, np_, 4)
    acc_bytes = _tile_bytes(tile_oh * ow, np_, 4)
    need = 2 * (in_bytes + w_bytes + out_bytes + bias_bytes) + acc_bytes

    cp_kwargs = dict(dimension_semantics=("parallel", "parallel"))
    limit = min(int(need * 1.25) + (2 << 20), 48 << 20)
    if limit > (16 << 20):
        cp_kwargs["vmem_limit_bytes"] = limit

    out = pl.pallas_call(
        kern,
        out_shape=jax.ShapeDtypeStruct((n, oh_pad, ow, np_), out_dtype),
        grid_spec=pltpu.PrefetchScalarGridSpec(
            num_scalar_prefetch=0,
            grid=(n, r_steps),
            in_specs=[
                # Whole phase-decomposed image of batch element i; block index
                # is row-tile-invariant -> DMA'd once per image, reused.
                pl.BlockSpec((1, s * s * hs, ws, cin),
                             lambda i, r: (i, 0, 0, 0)),
                # Full weight + bias resident in VMEM for the whole kernel.
                pl.BlockSpec((kh * kw, cin, np_), lambda i, r: (0, 0, 0)),
                pl.BlockSpec((1, np_), lambda i, r: (0, 0)),
            ],
            out_specs=pl.BlockSpec((1, tile_oh, ow, np_),
                                   lambda i, r: (i, r, 0, 0)),
            scratch_shapes=[pltpu.VMEM((tile_oh * ow, np_), jnp.float32)],
        ),
        compiler_params=pltpu.CompilerParams(**cp_kwargs),
    )(x_stack, params["w_taps"], params["bias"])

    out = out[:, :oh, :, :cout]                      # drop row/Cout padding
    return jnp.transpose(out, (0, 3, 1, 2))          # NHWC -> NCHW


# ------------------------------- reference --------------------------------

def _reference_conv_relu(x_nchw, w, b, stride, padding):
    # Same bf16-rounded operands as the kernel; only accumulation order differs.
    xb = x_nchw.astype(jnp.bfloat16).astype(jnp.float32)
    wb = w.astype(jnp.bfloat16).astype(jnp.float32)
    out = lax.conv_general_dilated(
        xb, wb, window_strides=(stride, stride),
        padding=[(padding, padding), (padding, padding)],
        dimension_numbers=("NCHW", "OIHW", "NCHW"),
        precision=lax.Precision.HIGHEST)
    out = out + b.reshape(1, -1, 1, 1)
    return jnp.maximum(out, 0.0)


if __name__ == "__main__":
    key = jax.random.PRNGKey(0)
    k_p, k_x = jax.random.split(key)

    in_channels, out_channels = 4, 32
    kernel_size, stride, padding = 3, 1, 1

    params = make_basic_conv2d_params(k_p, in_channels, out_channels,
                                      kernel_size)
    x = jax.random.normal(k_x, (2, in_channels, 16, 16), jnp.float32)

    fwd = jax.jit(lambda xx: basic_conv2d(params, xx, stride=stride,
                                          padding=padding))
    out = jax.block_until_ready(fwd(x))
    assert out.shape == (2, out_channels, 16, 16), out.shape
    assert bool(jnp.all(jnp.isfinite(out)))

    ref = _reference_conv_relu(x, params["w_f32"], params["b_f32"],
                               stride, padding)
    err = float(jnp.max(jnp.abs(out - ref)))
    assert err < 1e-3, f"max abs error vs reference: {err}"

    print("KERNEL_OK")
</pallas_src>

<mosaic_0001>
module attributes {stable_mosaic.version = 11 : i64} {
  func.func @_conv_tap_kernel(%arg0: i32, %arg1: i32, %arg2: memref<1x18x18x4xbf16, #tpu.memory_space<vmem>>, %arg3: memref<9x4x128xbf16, #tpu.memory_space<vmem>>, %arg4: memref<1x128xf32, #tpu.memory_space<vmem>>, %arg5: memref<1x16x16x128xf32, #tpu.memory_space<vmem>>, %arg6: memref<256x128xf32, #tpu.memory_space<vmem>>) attributes {dimension_semantics = [#tpu.dimension_semantics<parallel>, #tpu.dimension_semantics<parallel>], iteration_bounds = array<i64: 2, 1>, scalar_prefetch = 0 : i64, scratch_operands = 1 : i64, tpu.core_type = #tpu.core_type<tc>, window_params = [{transform_indices = @transform_0, window_bounds = array<i64: 1, 18, 18, 4>}, {pipeline_mode = #tpu.pipeline_mode<synchronous>, transform_indices = @transform_1, window_bounds = array<i64: 9, 4, 128>}, {pipeline_mode = #tpu.pipeline_mode<synchronous>, transform_indices = @transform_2, window_bounds = array<i64: 1, 128>}, {transform_indices = @transform_3, window_bounds = array<i64: 1, 16, 16, 128>}]} {
    %c16_i32 = arith.constant 16 : i32
    %0 = arith.muli %arg1, %c16_i32 : i32
    %c0_i32 = arith.constant 0 : i32
    %1 = arith.addi %0, %c0_i32 : i32
    %c0 = arith.constant 0 : index
    %2 = arith.index_cast %1 : i32 to index
    %c0_0 = arith.constant 0 : index
    %c0_1 = arith.constant 0 : index
    %3 = vector.load %arg2[%c0, %2, %c0_0, %c0_1] : memref<1x18x18x4xbf16, #tpu.memory_space<vmem>>, vector<1x16x16x4xbf16>
    %4 = vector.shape_cast %3 : vector<1x16x16x4xbf16> to vector<16x16x4xbf16>
    %5 = vector.shape_cast %4 : vector<16x16x4xbf16> to vector<256x4xbf16>
    %c0_2 = arith.constant 0 : index
    %c0_3 = arith.constant 0 : index
    %c0_4 = arith.constant 0 : index
    %6 = vector.load %arg3[%c0_2, %c0_3, %c0_4] : memref<9x4x128xbf16, #tpu.memory_space<vmem>>, vector<1x4x128xbf16>
    %7 = vector.shape_cast %6 : vector<1x4x128xbf16> to vector<4x128xbf16>
    %cst = arith.constant dense<0.000000e+00> : vector<256x128xf32>
    %8 = tpu.matmul %5, %7, %cst {dimension_numbers = #tpu.dot_dimension_numbers<[1], [0], [0], [1], [0, 0, 1, 1], [], []>} : vector<256x4xbf16>, vector<4x128xbf16>, vector<256x128xf32> -> vector<256x128xf32>
    %c0_5 = arith.constant 0 : index
    %c0_6 = arith.constant 0 : index
    %9 = vector.load %arg6[%c0_5, %c0_6] : memref<256x128xf32, #tpu.memory_space<vmem>>, vector<256x128xf32>
    tpu.vector_store %arg6[%c0_5, %c0_6], %8 {strides = array<i32>} : memref<256x128xf32, #tpu.memory_space<vmem>>, vector<256x128xf32>,
    %c0_i32_7 = arith.constant 0 : i32
    %10 = arith.addi %0, %c0_i32_7 : i32
    %c0_8 = arith.constant 0 : index
    %11 = arith.index_cast %10 : i32 to index
    %c1 = arith.constant 1 : index
    %c0_9 = arith.constant 0 : index
    %12 = vector.load %arg2[%c0_8, %11, %c1, %c0_9] : memref<1x18x18x4xbf16, #tpu.memory_space<vmem>>, vector<1x16x16x4xbf16>
    %13 = vector.shape_cast %12 : vector<1x16x16x4xbf16> to vector<16x16x4xbf16>
    %14 = vector.shape_cast %13 : vector<16x16x4xbf16> to vector<256x4xbf16>
    %c1_10 = arith.constant 1 : index
    %c0_11 = arith.constant 0 : index
    %c0_12 = arith.constant 0 : index
    %15 = vector.load %arg3[%c1_10, %c0_11, %c0_12] : memref<9x4x128xbf16, #tpu.memory_space<vmem>>, vector<1x4x128xbf16>
    %16 = vector.shape_cast %15 : vector<1x4x128xbf16> to vector<4x128xbf16>
    %cst_13 = arith.constant dense<0.000000e+00> : vector<256x128xf32>
    %17 = tpu.matmul %14, %16, %cst_13 {dimension_numbers = #tpu.dot_dimension_numbers<[1], [0], [0], [1], [0, 0, 1, 1], [], []>} : vector<256x4xbf16>, vector<4x128xbf16>, vector<256x128xf32> -> vector<256x128xf32>
    %c0_14 = arith.constant 0 : index
    %c0_15 = arith.constant 0 : index
    %18 = vector.load %arg6[%c0_14, %c0_15] : memref<256x128xf32, #tpu.memory_space<vmem>>, vector<256x128xf32>
    %19 = arith.addf %18, %17 : vector<256x128xf32>
    %c0_16 = arith.constant 0 : index
    %c0_17 = arith.constant 0 : index
    %20 = vector.load %arg6[%c0_16, %c0_17] : memref<256x128xf32, #tpu.memory_space<vmem>>, vector<256x128xf32>
    tpu.vector_store %arg6[%c0_16, %c0_17], %19 {strides = array<i32>} : memref<256x128xf32, #tpu.memory_space<vmem>>, vector<256x128xf32>,
    %c0_i32_18 = arith.constant 0 : i32
    %21 = arith.addi %0, %c0_i32_18 : i32
    %c0_19 = arith.constant 0 : index
    %22 = arith.index_cast %21 : i32 to index
    %c2 = arith.constant 2 : index
    %c0_20 = arith.constant 0 : index
    %23 = vector.load %arg2[%c0_19, %22, %c2, %c0_20] : memref<1x18x18x4xbf16, #tpu.memory_space<vmem>>, vector<1x16x16x4xbf16>
    %24 = vector.shape_cast %23 : vector<1x16x16x4xbf16> to vector<16x16x4xbf16>
    %25 = vector.shape_cast %24 : vector<16x16x4xbf16> to vector<256x4xbf16>
    %c2_21 = arith.constant 2 : index
    %c0_22 = arith.constant 0 : index
    %c0_23 = arith.constant 0 : index
    %26 = vector.load %arg3[%c2_21, %c0_22, %c0_23] : memref<9x4x128xbf16, #tpu.memory_space<vmem>>, vector<1x4x128xbf16>
    %27 = vector.shape_cast %26 : vector<1x4x128xbf16> to vector<4x128xbf16>
    %cst_24 = arith.constant dense<0.000000e+00> : vector<256x128xf32>
    %28 = tpu.matmul %25, %27, %cst_24 {dimension_numbers = #tpu.dot_dimension_numbers<[1], [0], [0], [1], [0, 0, 1, 1], [], []>} : vector<256x4xbf16>, vector<4x128xbf16>, vector<256x128xf32> -> vector<256x128xf32>
    %c0_25 = arith.constant 0 : index
    %c0_26 = arith.constant 0 : index
    %29 = vector.load %arg6[%c0_25, %c0_26] : memref<256x128xf32, #tpu.memory_space<vmem>>, vector<256x128xf32>
    %30 = arith.addf %29, %28 : vector<256x128xf32>
    %c0_27 = arith.constant 0 : index
    %c0_28 = arith.constant 0 : index
    %31 = vector.load %arg6[%c0_27, %c0_28] : memref<256x128xf32, #tpu.memory_space<vmem>>, vector<256x128xf32>
    tpu.vector_store %arg6[%c0_27, %c0_28], %30 {strides = array<i32>} : memref<256x128xf32, #tpu.memory_space<vmem>>, vector<256x128xf32>,
    %c1_i32 = arith.constant 1 : i32
    %32 = arith.addi %0, %c1_i32 : i32
    %c0_29 = arith.constant 0 : index
    %33 = arith.index_cast %32 : i32 to index
    %c0_30 = arith.constant 0 : index
    %c0_31 = arith.constant 0 : index
    %34 = vector.load %arg2[%c0_29, %33, %c0_30, %c0_31] : memref<1x18x18x4xbf16, #tpu.memory_space<vmem>>, vector<1x16x16x4xbf16>
    %35 = vector.shape_cast %34 : vector<1x16x16x4xbf16> to vector<16x16x4xbf16>
    %36 = vector.shape_cast %35 : vector<16x16x4xbf16> to vector<256x4xbf16>
    %c3 = arith.constant 3 : index
    %c0_32 = arith.constant 0 : index
    %c0_33 = arith.constant 0 : index
    %37 = vector.load %arg3[%c3, %c0_32, %c0_33] : memref<9x4x128xbf16, #tpu.memory_space<vmem>>, vector<1x4x128xbf16>
    %38 = vector.shape_cast %37 : vector<1x4x128xbf16> to vector<4x128xbf16>
    %cst_34 = arith.constant dense<0.000000e+00> : vector<256x128xf32>
    %39 = tpu.matmul %36, %38, %cst_34 {dimension_numbers = #tpu.dot_dimension_numbers<[1], [0], [0], [1], [0, 0, 1, 1], [], []>} : vector<256x4xbf16>, vector<4x128xbf16>, vector<256x128xf32> -> vector<256x128xf32>
    %c0_35 = arith.constant 0 : index
    %c0_36 = arith.constant 0 : index
    %40 = vector.load %arg6[%c0_35, %c0_36] : memref<256x128xf32, #tpu.memory_space<vmem>>, vector<256x128xf32>
    %41 = arith.addf %40, %39 : vector<256x128xf32>
    %c0_37 = arith.constant 0 : index
    %c0_38 = arith.constant 0 : index
    %42 = vector.load %arg6[%c0_37, %c0_38] : memref<256x128xf32, #tpu.memory_space<vmem>>, vector<256x128xf32>
    tpu.vector_store %arg6[%c0_37, %c0_38], %41 {strides = array<i32>} : memref<256x128xf32, #tpu.memory_space<vmem>>, vector<256x128xf32>,
    %c1_i32_39 = arith.constant 1 : i32
    %43 = arith.addi %0, %c1_i32_39 : i32
    %c0_40 = arith.constant 0 : index
    %44 = arith.index_cast %43 : i32 to index
    %c1_41 = arith.constant 1 : index
    %c0_42 = arith.constant 0 : index
    %45 = vector.load %arg2[%c0_40, %44, %c1_41, %c0_42] : memref<1x18x18x4xbf16, #tpu.memory_space<vmem>>, vector<1x16x16x4xbf16>
    %46 = vector.shape_cast %45 : vector<1x16x16x4xbf16> to vector<16x16x4xbf16>
    %47 = vector.shape_cast %46 : vector<16x16x4xbf16> to vector<256x4xbf16>
    %c4 = arith.constant 4 : index
    %c0_43 = arith.constant 0 : index
    %c0_44 = arith.constant 0 : index
    %48 = vector.load %arg3[%c4, %c0_43, %c0_44] : memref<9x4x128xbf16, #tpu.memory_space<vmem>>, vector<1x4x128xbf16>
    %49 = vector.shape_cast %48 : vector<1x4x128xbf16> to vector<4x128xbf16>
    %cst_45 = arith.constant dense<0.000000e+00> : vector<256x128xf32>
    %50 = tpu.matmul %47, %49, %cst_45 {dimension_numbers = #tpu.dot_dimension_numbers<[1], [0], [0], [1], [0, 0, 1, 1], [], []>} : vector<256x4xbf16>, vector<4x128xbf16>, vector<256x128xf32> -> vector<256x128xf32>
    %c0_46 = arith.constant 0 : index
    %c0_47 = arith.constant 0 : index
    %51 = vector.load %arg6[%c0_46, %c0_47] : memref<256x128xf32, #tpu.memory_space<vmem>>, vector<256x128xf32>
    %52 = arith.addf %51, %50 : vector<256x128xf32>
    %c0_48 = arith.constant 0 : index
    %c0_49 = arith.constant 0 : index
    %53 = vector.load %arg6[%c0_48, %c0_49] : memref<256x128xf32, #tpu.memory_space<vmem>>, vector<256x128xf32>
    tpu.vector_store %arg6[%c0_48, %c0_49], %52 {strides = array<i32>} : memref<256x128xf32, #tpu.memory_space<vmem>>, vector<256x128xf32>,
    %c1_i32_50 = arith.constant 1 : i32
    %54 = arith.addi %0, %c1_i32_50 : i32
    %c0_51 = arith.constant 0 : index
    %55 = arith.index_cast %54 : i32 to index
    %c2_52 = arith.constant 2 : index
    %c0_53 = arith.constant 0 : index
    %56 = vector.load %arg2[%c0_51, %55, %c2_52, %c0_53] : memref<1x18x18x4xbf16, #tpu.memory_space<vmem>>, vector<1x16x16x4xbf16>
    %57 = vector.shape_cast %56 : vector<1x16x16x4xbf16> to vector<16x16x4xbf16>
    %58 = vector.shape_cast %57 : vector<16x16x4xbf16> to vector<256x4xbf16>
    %c5 = arith.constant 5 : index
    %c0_54 = arith.constant 0 : index
    %c0_55 = arith.constant 0 : index
    %59 = vector.load %arg3[%c5, %c0_54, %c0_55] : memref<9x4x128xbf16, #tpu.memory_space<vmem>>, vector<1x4x128xbf16>
    %60 = vector.shape_cast %59 : vector<1x4x128xbf16> to vector<4x128xbf16>
    %cst_56 = arith.constant dense<0.000000e+00> : vector<256x128xf32>
    %61 = tpu.matmul %58, %60, %cst_56 {dimension_numbers = #tpu.dot_dimension_numbers<[1], [0], [0], [1], [0, 0, 1, 1], [], []>} : vector<256x4xbf16>, vector<4x128xbf16>, vector<256x128xf32> -> vector<256x128xf32>
    %c0_57 = arith.constant 0 : index
    %c0_58 = arith.constant 0 : index
    %62 = vector.load %arg6[%c0_57, %c0_58] : memref<256x128xf32, #tpu.memory_space<vmem>>, vector<256x128xf32>
    %63 = arith.addf %62, %61 : vector<256x128xf32>
    %c0_59 = arith.constant 0 : index
    %c0_60 = arith.constant 0 : index
    %64 = vector.load %arg6[%c0_59, %c0_60] : memref<256x128xf32, #tpu.memory_space<vmem>>, vector<256x128xf32>
    tpu.vector_store %arg6[%c0_59, %c0_60], %63 {strides = array<i32>} : memref<256x128xf32, #tpu.memory_space<vmem>>, vector<256x128xf32>,
    %c2_i32 = arith.constant 2 : i32
    %65 = arith.addi %0, %c2_i32 : i32
    %c0_61 = arith.constant 0 : index
    %66 = arith.index_cast %65 : i32 to index
    %c0_62 = arith.constant 0 : index
    %c0_63 = arith.constant 0 : index
    %67 = vector.load %arg2[%c0_61, %66, %c0_62, %c0_63] : memref<1x18x18x4xbf16, #tpu.memory_space<vmem>>, vector<1x16x16x4xbf16>
    %68 = vector.shape_cast %67 : vector<1x16x16x4xbf16> to vector<16x16x4xbf16>
    %69 = vector.shape_cast %68 : vector<16x16x4xbf16> to vector<256x4xbf16>
    %c6 = arith.constant 6 : index
    %c0_64 = arith.constant 0 : index
    %c0_65 = arith.constant 0 : index
    %70 = vector.load %arg3[%c6, %c0_64, %c0_65] : memref<9x4x128xbf16, #tpu.memory_space<vmem>>, vector<1x4x128xbf16>
    %71 = vector.shape_cast %70 : vector<1x4x128xbf16> to vector<4x128xbf16>
    %cst_66 = arith.constant dense<0.000000e+00> : vector<256x128xf32>
    %72 = tpu.matmul %69, %71, %cst_66 {dimension_numbers = #tpu.dot_dimension_numbers<[1], [0], [0], [1], [0, 0, 1, 1], [], []>} : vector<256x4xbf16>, vector<4x128xbf16>, vector<256x128xf32> -> vector<256x128xf32>
    %c0_67 = arith.constant 0 : index
    %c0_68 = arith.constant 0 : index
    %73 = vector.load %arg6[%c0_67, %c0_68] : memref<256x128xf32, #tpu.memory_space<vmem>>, vector<256x128xf32>
    %74 = arith.addf %73, %72 : vector<256x128xf32>
    %c0_69 = arith.constant 0 : index
    %c0_70 = arith.constant 0 : index
    %75 = vector.load %arg6[%c0_69, %c0_70] : memref<256x128xf32, #tpu.memory_space<vmem>>, vector<256x128xf32>
    tpu.vector_store %arg6[%c0_69, %c0_70], %74 {strides = array<i32>} : memref<256x128xf32, #tpu.memory_space<vmem>>, vector<256x128xf32>,
    %c2_i32_71 = arith.constant 2 : i32
    %76 = arith.addi %0, %c2_i32_71 : i32
    %c0_72 = arith.constant 0 : index
    %77 = arith.index_cast %76 : i32 to index
    %c1_73 = arith.constant 1 : index
    %c0_74 = arith.constant 0 : index
    %78 = vector.load %arg2[%c0_72, %77, %c1_73, %c0_74] : memref<1x18x18x4xbf16, #tpu.memory_space<vmem>>, vector<1x16x16x4xbf16>
    %79 = vector.shape_cast %78 : vector<1x16x16x4xbf16> to vector<16x16x4xbf16>
    %80 = vector.shape_cast %79 : vector<16x16x4xbf16> to vector<256x4xbf16>
    %c7 = arith.constant 7 : index
    %c0_75 = arith.constant 0 : index
    %c0_76 = arith.constant 0 : index
    %81 = vector.load %arg3[%c7, %c0_75, %c0_76] : memref<9x4x128xbf16, #tpu.memory_space<vmem>>, vector<1x4x128xbf16>
    %82 = vector.shape_cast %81 : vector<1x4x128xbf16> to vector<4x128xbf16>
    %cst_77 = arith.constant dense<0.000000e+00> : vector<256x128xf32>
    %83 = tpu.matmul %80, %82, %cst_77 {dimension_numbers = #tpu.dot_dimension_numbers<[1], [0], [0], [1], [0, 0, 1, 1], [], []>} : vector<256x4xbf16>, vector<4x128xbf16>, vector<256x128xf32> -> vector<256x128xf32>
    %c0_78 = arith.constant 0 : index
    %c0_79 = arith.constant 0 : index
    %84 = vector.load %arg6[%c0_78, %c0_79] : memref<256x128xf32, #tpu.memory_space<vmem>>, vector<256x128xf32>
    %85 = arith.addf %84, %83 : vector<256x128xf32>
    %c0_80 = arith.constant 0 : index
    %c0_81 = arith.constant 0 : index
    %86 = vector.load %arg6[%c0_80, %c0_81] : memref<256x128xf32, #tpu.memory_space<vmem>>, vector<256x128xf32>
    tpu.vector_store %arg6[%c0_80, %c0_81], %85 {strides = array<i32>} : memref<256x128xf32, #tpu.memory_space<vmem>>, vector<256x128xf32>,
    %c2_i32_82 = arith.constant 2 : i32
    %87 = arith.addi %0, %c2_i32_82 : i32
    %c0_83 = arith.constant 0 : index
    %88 = arith.index_cast %87 : i32 to index
    %c2_84 = arith.constant 2 : index
    %c0_85 = arith.constant 0 : index
    %89 = vector.load %arg2[%c0_83, %88, %c2_84, %c0_85] : memref<1x18x18x4xbf16, #tpu.memory_space<vmem>>, vector<1x16x16x4xbf16>
    %90 = vector.shape_cast %89 : vector<1x16x16x4xbf16> to vector<16x16x4xbf16>
    %91 = vector.shape_cast %90 : vector<16x16x4xbf16> to vector<256x4xbf16>
    %c8 = arith.constant 8 : index
    %c0_86 = arith.constant 0 : index
    %c0_87 = arith.constant 0 : index
    %92 = vector.load %arg3[%c8, %c0_86, %c0_87] : memref<9x4x128xbf16, #tpu.memory_space<vmem>>, vector<1x4x128xbf16>
    %93 = vector.shape_cast %92 : vector<1x4x128xbf16> to vector<4x128xbf16>
    %cst_88 = arith.constant dense<0.000000e+00> : vector<256x128xf32>
    %94 = tpu.matmul %91, %93, %cst_88 {dimension_numbers = #tpu.dot_dimension_numbers<[1], [0], [0], [1], [0, 0, 1, 1], [], []>} : vector<256x4xbf16>, vector<4x128xbf16>, vector<256x128xf32> -> vector<256x128xf32>
    %c0_89 = arith.constant 0 : index
    %c0_90 = arith.constant 0 : index
    %95 = vector.load %arg6[%c0_89, %c0_90] : memref<256x128xf32, #tpu.memory_space<vmem>>, vector<256x128xf32>
    %96 = arith.addf %95, %94 : vector<256x128xf32>
    %c0_91 = arith.constant 0 : index
    %c0_92 = arith.constant 0 : index
    %97 = vector.load %arg6[%c0_91, %c0_92] : memref<256x128xf32, #tpu.memory_space<vmem>>, vector<256x128xf32>
    tpu.vector_store %arg6[%c0_91, %c0_92], %96 {strides = array<i32>} : memref<256x128xf32, #tpu.memory_space<vmem>>, vector<256x128xf32>,
    %c0_93 = arith.constant 0 : index
    %c0_94 = arith.constant 0 : index
    %98 = vector.load %arg6[%c0_93, %c0_94] : memref<256x128xf32, #tpu.memory_space<vmem>>, vector<256x128xf32>
    %c0_95 = arith.constant 0 : index
    %c0_96 = arith.constant 0 : index
    %99 = vector.load %arg4[%c0_95, %c0_96] : memref<1x128xf32, #tpu.memory_space<vmem>>, vector<1x128xf32>
    %100 = vector.broadcast %99 : vector<1x128xf32> to vector<256x128xf32>
    %101 = arith.addf %98, %100 : vector<256x128xf32>
    %cst_97 = arith.constant 0.000000e+00 : f32
    %102 = vector.broadcast %cst_97 : f32 to vector<256x128xf32>
    %103 = arith.maximumf %101, %102 : vector<256x128xf32>
    %104 = vector.shape_cast %103 : vector<256x128xf32> to vector<16x16x128xf32>
    %c0_98 = arith.constant 0 : index
    %c0_99 = arith.constant 0 : index
    %c0_100 = arith.constant 0 : index
    %c0_101 = arith.constant 0 : index
    %105 = vector.load %arg5[%c0_98, %c0_99, %c0_100, %c0_101] : memref<1x16x16x128xf32, #tpu.memory_space<vmem>>, vector<1x16x16x128xf32>
    %106 = vector.shape_cast %105 : vector<1x16x16x128xf32> to vector<16x16x128xf32>
    %107 = vector.shape_cast %104 : vector<16x16x128xf32> to vector<1x16x16x128xf32>
    tpu.vector_store %arg5[%c0_98, %c0_99, %c0_100, %c0_101], %107 {strides = array<i32>} : memref<1x16x16x128xf32, #tpu.memory_space<vmem>>, vector<1x16x16x128xf32>,
    return
  }
  func.func @transform_0(%arg0: i32, %arg1: i32) -> (i32, i32, i32, i32) {
    %c0_i32 = arith.constant 0 : i32
    %c0_i32_0 = arith.constant 0 : i32
    %c0_i32_1 = arith.constant 0 : i32
    %c0_i32_2 = arith.constant 0 : i32
    return %arg0, %c0_i32, %c0_i32_0, %c0_i32_1 : i32, i32, i32, i32
  }
  func.func @transform_1(%arg0: i32, %arg1: i32) -> (i32, i32, i32) {
    %c0_i32 = arith.constant 0 : i32
    %c0_i32_0 = arith.constant 0 : i32
    %c0_i32_1 = arith.constant 0 : i32
    %c0_i32_2 = arith.constant 0 : i32
    return %c0_i32, %c0_i32_0, %c0_i32_1 : i32, i32, i32
  }
  func.func @transform_2(%arg0: i32, %arg1: i32) -> (i32, i32) {
    %c0_i32 = arith.constant 0 : i32
    %c0_i32_0 = arith.constant 0 : i32
    %c0_i32_1 = arith.constant 0 : i32
    return %c0_i32, %c0_i32_0 : i32, i32
  }
  func.func @transform_3(%arg0: i32, %arg1: i32) -> (i32, i32, i32, i32) {
    %c0_i32 = arith.constant 0 : i32
    %c0_i32_0 = arith.constant 0 : i32
    %c0_i32_1 = arith.constant 0 : i32
    return %arg0, %arg1, %c0_i32, %c0_i32_0 : i32, i32, i32, i32
  }
}

</mosaic_0001>

<bundles_post_ra>
// kernel: _lambda_.1
= control target key start
LH: loop header
LB: loop body
LE: loop exit
PB: predicated region body
PF: predicated region fallthrough
CT: control target
= control target key end

     0   :  { %s7175_s12 = smov 0   ;;  %s7177_s13 = smov 0   ;;  %s8546_s0 = inlined_call_operand.vmem [shape: bf16[2,18,18,4], index: 0, kind: input, shape index: {}]   ;;  %s8547_s1 = inlined_call_operand.vmem [shape: bf16[9,4,128], index: 1, kind: input, shape index: {}]   ;;  %s8548_s2 = inlined_call_operand.vmem [shape: f32[1,128], index: 2, kind: input, shape index: {}]   ;;  %s8549_s3 = inlined_call_operand.vmem [shape: f32[2,16,16,128], index: 3, kind: output, shape index: {}]  }
   0x1   :  { %s7179_s14 = smov 0  }
   0x2 LB: > { %s25_s15 = sadd.s32 1, %s7149_s13  ;;  %p5722_p0 = scmp.ge.s32.totalorder %s7153_s14, 1  ;;  %s7153_s14 = sphi %s7179_s14, %s13_s14   ;;  %s7149_s13 = sphi %s7177_s13, %s8555_s13   ;;  %s7145_s12 = sphi %s7175_s12, %s8554_s12  }
   0x3   : > { %p27_p1 = scmp.ge.s32.totalorder %s25_s15, 2  ;;  %p151_p2 = scmp.lt.s32.totalorder %s7153_s14, 3 }
   0x5   : > { %s8557_s15 = smov (%p27_p1, %s25_s15), 0  ;;  %p152_p3 = pnand %p5722_p0, %p151_p2 }
   0x6   : > { %v233_v0 = vld [vmem:[%s8547_s1] sm:$0x3] (!%p152_p3)  ;;  %vm363_vm0 = vcmask (!%p152_p3), 1041408   ;;  %p180_p4 = scmp.lt.s32.totalorder (!%p152_p3), %s7145_s12, 1  ;;  %v5953_v2 = vld [vmem:[%s8547_s1 + $0x8] sm:$0x3] (!%p152_p3) }
   0x7   : > { %155 = sbr.rel (%p152_p3) target bundleno = 543 (0x21f), region = 32  ;;  %7047 = vmatprep.subr.msk.bf16.mxu1 (!%p152_p3), %vm363_vm0, %v233_v0  ;;  %v365_v1 = vsel (!%p152_p3), %vm363_vm0, %v233_v0, 0  ;;  %v5758_v3 = vld [vmem:[%s8547_s1 + $0x2] sm:$0x3] (!%p152_p3)  ;;  %7051 = vmatprep.subr.msk.bf16.mxu0 (!%p152_p3), %vm363_vm0, %v5953_v2  ;;  %v7208_v4 = vsel (!%p152_p3), %vm363_vm0, %v5953_v2, 0  ;;  %vm314_vm1 = vcmask (!%p152_p3), 31744  }
   0x8   : > { %6484 = vmatpush3.bf16.msra.mxu1 (!%p152_p3), %v365_v1  ;;  %6620 = vmatpush3.bf16.msra.mxu0 (!%p152_p3), %v7208_v4  ;;  %v6050_v5 = vld [vmem:[%s8547_s1 + $0xa] sm:$0x3] (!%p152_p3)  ;;  %vm608_vm2 = vsmask.f32 (!%p152_p3), 3328  ;;  %vm609_vm3 = vsmask.f32 (!%p152_p3), 7440 }
   0x9   : > { %7048 = vmatprep.subr.msk.bf16.mxu1 (!%p152_p3), %vm363_vm0, %v5758_v3  ;;  %7053 = vmatprep.subr.msk.bf16.mxu0 (!%p152_p3), %vm363_vm0, %v6050_v5  ;;  %v7225_v6 = vld [vmem:[%s8547_s1 + $0xc] sm:$0x3] (!%p152_p3)  ;;  %v5807_v7 = vld [vmem:[%s8547_s1 + $0x4] sm:$0x3] (!%p152_p3)  ;;  %v7233_v8 = vld [vmem:[%s8547_s1 + $0xe] sm:$0x3] (!%p152_p3) }
   0xa   : > { %v1094_v10 = vsel (!%p152_p3), %vm363_vm0, %v5758_v3, 0  ;;  %v7239_v12 = vsel (!%p152_p3), %vm363_vm0, %v6050_v5, 0  ;;  %v7245_v14 = vsel (!%p152_p3), %vm363_vm0, %v7225_v6, 0  ;;  %v7249_v15 = vsel (!%p152_p3), %vm363_vm0, %v5807_v7, 0  ;;  %vm7267_vm4 = vmor (!%p152_p3), %vm608_vm2, %vm609_vm3 }
   0xb   : > { %v7253_v16 = vsel (!%p152_p3), %vm363_vm0, %v7233_v8, 0  ;;  %vm1449_vm5 = vcmask (!%p152_p3), 1042432   ;;  %vm1450_vm6 = vcmask (!%p152_p3), 1046532  }
   0xc   : > { %vm7342_vm7 = vmor (!%p152_p3), %vm1449_vm5, %vm1450_vm6 }
   0xe   : > { %s8559_s12 = smov (!%p180_p4, %s7145_s12), 1 }
   0xf   : > { %s7057_s24 = smul.u32 216, %s8559_s12  ;;  %s6329_s19 = sshll.u32 %s8559_s12, 8 }
  0x10   : > { %s8468_s22 = scalar_lea.vmem %s8549_s3, %s6329_s19 }
  0x11   : > { %s7220_s27 = scalar_lea.vmem %s8546_s0, %s7057_s24 }
  0x12   : > { %v7082_v9 = vld [vmem:[%s7220_s27] sm:$0xff]   ;;  %v7083_v11 = vld [vmem:[%s7220_s27 + $0xc] sm:$0xff]   ;;  %v7084_v13 = vld [vmem:[%s7220_s27 + $0x18] sm:$0xff]  }
  0x13   : > { %6485 = vmatprep.mubr.msk.bf16.mxu1 %vm314_vm1, %v7082_v9  ;;  %v5905_v17 = vld [vmem:[%s7220_s27 + $0xc] sm:$0xf]  ;;  %v5906_v18 = vld [vmem:[%s7220_s27 + $0x10] sm:$0xf]  ;;  %v5907_v19 = vld [vmem:[%s7220_s27 + $0x14] sm:$0x1] }
  0x14   : > { %6486 = vmatmul.mubr.msk.bf16.vlgmr.msra.gmra.mrb[0].mxu1 %vm314_vm1, %v7083_v11  ;;  %v7085_v20 = vld [vmem:[%s7220_s27 + $0x24] sm:$0xff]   ;;  %v2397_v21 = vshrl.u32 %v5905_v17, 16  ;;  %v2400_v22 = vshll.u32 %v5905_v17, 16  ;;  %v2406_v23 = vshll.u32 %v5906_v18, 16  ;;  %v2410_v24 = vshrl.u32 %v5906_v18, 16  ;;  %v7086_v42 = vld [vmem:[%s7220_s27 + $0x30] sm:$0xff]  }
  0x15   : > { %6489 = vmatprep.mubr.msk.bf16.mxu1 %vm314_vm1, %v7084_v13  ;;  %6518 = vmatpush3.bf16.msra.mxu1 %v1094_v10  ;;  %v5908_v25 = vld [vmem:[%s7220_s27 + $0x18] sm:$0xf]  ;;  %v2416_v26 = vshll.u32 %v5907_v19, 16  ;;  %v5909_v27 = vld [vmem:[%s7220_s27 + $0x1c] sm:$0xf] }
  0x16   : > { %7049 = vmatprep.subr.msk.bf16.mxu1 %vm363_vm0, %v5807_v7  ;;  %v5910_v28 = vld [vmem:[%s7220_s27 + $0x20] sm:$0x1]  ;;  %v2421_v29 = vshrl.u32 %v5908_v25, 16  ;;  %v2399_v30 = vrot.slane %v2397_v21, 4  ;;  %v2402_v31 = vrot.slane %v2400_v22, 5  ;;  %v2408_v32 = vrot.slane %v2406_v23, 5 }
  0x17   : > { %v2412_v33 = vrot.slane %v2410_v24, 4  ;;  %v2418_v34 = vrot.slane %v2416_v26, 5  ;;  %v2424_v36 = vshll.u32 %v5908_v25, 16  ;;  %v2430_v37 = vshll.u32 %v5909_v27, 16  ;;  %v5911_v46 = vld [vmem:[%s7220_s27 + $0x24] sm:$0xf] }
  0x18   : > { %v2423_v35 = vrot.slane %v2421_v29, 4  ;;  %v2403_v38 = vor.u32 %v2402_v31, %v2399_v30  ;;  %v2434_v40 = vshrl.u32 %v5909_v27, 16  ;;  %v2440_v41 = vshll.u32 %v5910_v28, 16  ;;  %v5912_v51 = vld [vmem:[%s7220_s27 + $0x28] sm:$0xf]  ;;  %v7087_v60 = vld [vmem:[%s7220_s27 + $0x3c] sm:$0xff]  }
  0x19   : > { %v2413_v39 = vor.u32 %v2412_v33, %v2408_v32  ;;  %v2426_v44 = vrot.slane %v2424_v36, 5  ;;  %v2432_v45 = vrot.slane %v2430_v37, 5  ;;  %v5913_v53 = vld [vmem:[%s7220_s27 + $0x2c] sm:$0x1]  ;;  %v2445_v54 = vshrl.u32 %v5911_v46, 16 }
  0x1a   : > { %v2404_v47 = vrot.slane %v2403_v38, 4  ;;  %v2436_v49 = vrot.slane %v2434_v40, 4  ;;  %v2442_v50 = vrot.slane %v2440_v41, 5  ;;  %v2448_v55 = vshll.u32 %v5911_v46, 16  ;;  %v5914_v62 = vld [vmem:[%s7220_s27 + $0x30] sm:$0xf] }
  0x1b   : > { %v2414_v48 = vrot.slane %v2413_v39, 4  ;;  %v2427_v52 = vor.u32 %v2426_v44, %v2423_v35  ;;  %v2454_v56 = vshll.u32 %v5912_v51, 16  ;;  %v2458_v61 = vshrl.u32 %v5912_v51, 16  ;;  %v5915_v63 = vld [vmem:[%s7220_s27 + $0x34] sm:$0xf]  ;;  %v7088_v7 = vld [vmem:[%s7220_s27 + $0x48] sm:$0xff]  }
  0x1c   : > { %6490 = vmatmul.mubr.msk.bf16.gmra.mrb[4].mxu1 %vm314_vm1, %v7085_v20  ;;  %v2409_v57 = vsel %vm7267_vm4, %v2404_v47, %v2408_v32  ;;  %v2437_v59 = vor.u32 %v2436_v49, %v2432_v45  ;;  %v2447_v2 = vrot.slane %v2445_v54, 4  ;;  %v2450_v3 = vrot.slane %v2448_v55, 5  ;;  %v5916_v5 = vld [vmem:[%s7220_s27 + $0x38] sm:$0x1]  ;;  %v5917_v25 = vld [vmem:[%s7220_s27 + $0x3c] sm:$0xf] }
  0x1d   : > { %6493 = vmatprep.mubr.msk.bf16.mxu1 %vm314_vm1, %v7086_v42  ;;  %v2419_v58 = vsel %vm7267_vm4, %v2414_v48, %v2418_v34  ;;  %v2428_v1 = vrot.slane %v2427_v52, 4  ;;  %v2456_v10 = vrot.slane %v2454_v56, 5  ;;  %v2460_v11 = vrot.slane %v2458_v61, 4  ;;  %v5918_v30 = vld [vmem:[%s7220_s27 + $0x40] sm:$0xf]  ;;  %v7089_v49 = vld [vmem:[%s7220_s27 + $0x54] sm:$0xff]  }
  0x1e   : > { %v5954_v0 = vcombine.low %v2409_v57, %v2419_v58  ;;  %v2438_v9 = vrot.slane %v2437_v59, 4  ;;  %v2464_v13 = vshll.u32 %v5913_v53, 16  ;;  %v2451_v18 = vor.u32 %v2450_v3, %v2447_v2  ;;  %v5919_v37 = vld [vmem:[%s7220_s27 + $0x44] sm:$0x1]  ;;  %v5920_v40 = vld [vmem:[%s7220_s27 + $0x48] sm:$0xf] }
  0x1f   : > { %v2433_v17 = vsel %vm7267_vm4, %v2428_v1, %v2432_v45  ;;  %v2469_v19 = vshrl.u32 %v5914_v62, 16  ;;  %v2472_v20 = vshll.u32 %v5914_v62, 16  ;;  %v2461_v22 = vor.u32 %v2460_v11, %v2456_v10  ;;  %v5921_v46 = vld [vmem:[%s7220_s27 + $0x4c] sm:$0xf]  ;;  %v5922_v52 = vld [vmem:[%s7220_s27 + $0x50] sm:$0x1] }
  0x20   : > { %6621 = vmatprep.mubr.msk.bf16.mxu0 %vm314_vm1, %v5954_v0  ;;  %v2443_v21 = vsel %vm7267_vm4, %v2438_v9, %v2442_v50  ;;  %v2466_v23 = vrot.slane %v2464_v13, 5  ;;  %v2478_v24 = vshll.u32 %v5915_v63, 16  ;;  %v2452_v27 = vrot.slane %v2451_v18, 4  ;;  %v7090_v56 = vld [vmem:[%s7220_s27 + $0x60] sm:$0xff]   ;;  %v5924_v13 = vld [vmem:[%s7220_s27 + $0x58] sm:$0xf] }
  0x21   : > { %v5955_v26 = vcombine.low %v2433_v17, %v2443_v21  ;;  %v2471_v28 = vrot.slane %v2469_v19, 4  ;;  %v2474_v29 = vrot.slane %v2472_v20, 5  ;;  %v2462_v31 = vrot.slane %v2461_v22, 4  ;;  %v5925_v21 = vld [vmem:[%s7220_s27 + $0x5c] sm:$0x1] }
  0x22   : > { %v2480_v32 = vrot.slane %v2478_v24, 5  ;;  %v2482_v33 = vshrl.u32 %v5915_v63, 16  ;;  %v2488_v34 = vshll.u32 %v5916_v5, 16  ;;  %v2457_v35 = vsel %vm7267_vm4, %v2452_v27, %v2456_v10  ;;  %v5923_v5 = vld [vmem:[%s7220_s27 + $0x54] sm:$0xf] }
  0x23   : > { %6622 = vmatmul.mubr.msk.bf16.vlgmr.msra.gmra.mrb[0].mxu0 %vm314_vm1, %v5955_v26  ;;  %v2475_v36 = vor.u32 %v2474_v29, %v2471_v28  ;;  %v2493_v38 = vshrl.u32 %v5917_v25, 16  ;;  %v2496_v39 = vshll.u32 %v5917_v25, 16  ;;  %v2467_v41 = vsel %vm7267_vm4, %v2462_v31, %v2466_v23  ;;  %v5926_v22 = vld [vmem:[%s7220_s27 + $0x60] sm:$0xf]  ;;  %v5927_v27 = vld [vmem:[%s7220_s27 + $0x64] sm:$0xf] }
  0x24   : > { %6494 = vmatmul.mubr.msk.bf16.gmra.mrb[8].mxu1 %vm314_vm1, %v7087_v60  ;;  %6654 = vmatpush3.bf16.msra.mxu0 %v7239_v12  ;;  %v2484_v42 = vrot.slane %v2482_v33, 4  ;;  %v2490_v44 = vrot.slane %v2488_v34, 5  ;;  %v2502_v45 = vshll.u32 %v5918_v30, 16  ;;  %v5956_v47 = vcombine.low %v2457_v35, %v2467_v41 }
  0x25   : > { %6497 = vmatprep.mubr.msk.bf16.mxu1 %vm314_vm1, %v7088_v7  ;;  %v2476_v48 = vrot.slane %v2475_v36, 4  ;;  %v2495_v50 = vrot.slane %v2493_v38, 4  ;;  %v2498_v51 = vrot.slane %v2496_v39, 5  ;;  %7054 = vmatprep.subr.msk.bf16.mxu0 %vm363_vm0, %v7225_v6  ;;  %v2506_v12 = vshrl.u32 %v5918_v30, 16  ;;  %v7091_v30 = vld [vmem:[%s7220_s27 + $0x6c] sm:$0xff]   ;;  %v7092_v38 = vld [vmem:[%s7220_s27 + $0x78] sm:$0xff]  }
  0x26   : > { %v2485_v53 = vor.u32 %v2484_v42, %v2480_v32  ;;  %v2504_v54 = vrot.slane %v2502_v45, 5  ;;  %v2512_v55 = vshll.u32 %v5919_v37, 16  ;;  %6625 = vmatprep.mubr.msk.bf16.mxu0 %vm314_vm1, %v5956_v47  ;;  %v2517_v59 = vshrl.u32 %v5920_v40, 16  ;;  %v5928_v37 = vld [vmem:[%s7220_s27 + $0x68] sm:$0x1] }
  0x27   : > { %v2481_v57 = vsel %vm7267_vm4, %v2476_v48, %v2480_v32  ;;  %v2499_v58 = vor.u32 %v2498_v51, %v2495_v50  ;;  %v2520_v60 = vshll.u32 %v5920_v40, 16  ;;  %v2508_v62 = vrot.slane %v2506_v12, 4 }
  0x28   : > { %v2486_v61 = vrot.slane %v2485_v53, 4  ;;  %v2514_v63 = vrot.slane %v2512_v55, 5  ;;  %v2526_v0 = vshll.u32 %v5921_v46, 16  ;;  %v2519_v1 = vrot.slane %v2517_v59, 4  ;;  %v5990_v59 = vld [vmem:[%s7220_s27 + $0x1c] sm:$0xf] }
  0x29   : > { %v2500_v6 = vrot.slane %v2499_v58, 4  ;;  %v2522_v2 = vrot.slane %v2520_v60, 5  ;;  %v2530_v3 = vshrl.u32 %v5921_v46, 16  ;;  %v2509_v9 = vor.u32 %v2508_v62, %v2504_v54  ;;  %v5989_v58 = vld [vmem:[%s7220_s27 + $0x18] sm:$0xe] }
  0x2a   : > { %v2491_v7 = vsel %vm7267_vm4, %v2486_v61, %v2490_v44  ;;  %v2528_v10 = vrot.slane %v2526_v0, 5  ;;  %v2536_v11 = vshll.u32 %v5922_v52, 16  ;;  %v2541_v25 = vshrl.u32 %v5923_v5, 16  ;;  %v5986_v44 = vld [vmem:[%s7220_s27 + $0xc] sm:$0xe] }
  0x2b   : > { %v5957_v17 = vcombine.low %v2481_v57, %v2491_v7  ;;  %v2505_v18 = vsel %vm7267_vm4, %v2500_v6, %v2504_v54  ;;  %v2523_v19 = vor.u32 %v2522_v2, %v2519_v1  ;;  %v2532_v20 = vrot.slane %v2530_v3, 4  ;;  %v5988_v54 = vld [vmem:[%s7220_s27 + $0x14] sm:$0x1]  ;;  %v5991_v6 = vld [vmem:[%s7220_s27 + $0x20] sm:$0x1]  ;;  %v7093_v3 = vld [vmem:[%s7220_s27 + $0x84] sm:$0xff]  }
  0x2c   : > { %6498 = vmatmul.mubr.msk.bf16.gmra.mrb[12].mxu1 %vm314_vm1, %v7089_v49  ;;  %v2510_v23 = vrot.slane %v2509_v9, 4  ;;  %v2538_v24 = vrot.slane %v2536_v11, 5  ;;  %v2544_v26 = vshll.u32 %v5923_v5, 16  ;;  %v2550_v31 = vshll.u32 %v5924_v13, 16  ;;  %v5987_v49 = vld [vmem:[%s7220_s27 + $0x10] sm:$0xf] }
  0x2d   : > { %6501 = vmatprep.mubr.msk.bf16.mxu1 %vm314_vm1, %v7090_v56  ;;  %6626 = vmatmul.mubr.msk.bf16.gmra.mrb[4].mxu0 %vm314_vm1, %v5957_v17  ;;  %v2524_v28 = vrot.slane %v2523_v19, 4  ;;  %v2533_v29 = vor.u32 %v2532_v20, %v2528_v10  ;;  %v2554_v32 = vshrl.u32 %v5924_v13, 16  ;;  %v2543_v34 = vrot.slane %v2541_v25, 4 }
  0x2e   : > { %v2515_v33 = vsel %vm7267_vm4, %v2510_v23, %v2514_v63  ;;  %v2546_v35 = vrot.slane %v2544_v26, 5  ;;  %v2560_v36 = vshll.u32 %v5925_v21, 16  ;;  %v2552_v42 = vrot.slane %v2550_v31, 5  ;;  %v5992_v21 = vld [vmem:[%s7220_s27 + $0x24] sm:$0xe]  ;;  %v7094_v26 = vld [vmem:[%s7220_s27 + $0x90] sm:$0xff]  }
  0x2f   : > { %v5958_v39 = vcombine.low %v2505_v18, %v2515_v33  ;;  %v2529_v40 = vsel %vm7267_vm4, %v2524_v28, %v2528_v10  ;;  %v2534_v41 = vrot.slane %v2533_v29, 4  ;;  %v2556_v46 = vrot.slane %v2554_v32, 4 }
  0x30   : > { %v2547_v45 = vor.u32 %v2546_v35, %v2543_v34  ;;  %v2562_v47 = vrot.slane %v2560_v36, 5  ;;  %v2565_v48 = vshrl.u32 %v5926_v22, 16  ;;  %v2568_v51 = vshll.u32 %v5926_v22, 16  ;;  %v5995_v36 = vld [vmem:[%s7220_s27 + $0x30] sm:$0xe] }
  0x31   : > { %6629 = vmatprep.mubr.msk.bf16.mxu0 %vm314_vm1, %v5958_v39  ;;  %v2539_v50 = vsel %vm7267_vm4, %v2534_v41, %v2538_v24  ;;  %v2574_v52 = vshll.u32 %v5927_v27, 16  ;;  %v2578_v53 = vshrl.u32 %v5927_v27, 16  ;;  %v2557_v56 = vor.u32 %v2556_v46, %v2552_v42  ;;  %v5993_v27 = vld [vmem:[%s7220_s27 + $0x28] sm:$0xf] }
  0x32   : > { %v5959_v12 = vcombine.low %v2529_v40, %v2539_v50  ;;  %v2548_v55 = vrot.slane %v2547_v45, 4  ;;  %v2567_v57 = vrot.slane %v2565_v48, 4  ;;  %v2570_v60 = vrot.slane %v2568_v51, 5  ;;  %v5998_v50 = vld [vmem:[%s7220_s27 + $0x3c] sm:$0xe] }
  0x33   : > { %v2576_v61 = vrot.slane %v2574_v52, 5  ;;  %v2580_v62 = vrot.slane %v2578_v53, 4  ;;  %v2584_v63 = vshll.u32 %v5928_v37, 16  ;;  %v2558_v2 = vrot.slane %v2557_v56, 4  ;;  %v5996_v37 = vld [vmem:[%s7220_s27 + $0x34] sm:$0xf] }
  0x34   : > { %6502 = vmatmul.mubr.msk.bf16.gmra.mrb[16].mxu1 %vm314_vm1, %v7091_v30  ;;  %v2553_v1 = vsel %vm7267_vm4, %v2548_v55, %v2552_v42  ;;  %v6034_v5 = vrot.slane %v5986_v44, 9  ;;  %v3236_v7 = vrot.slane %v5987_v49, 5  ;;  %v2571_v9 = vor.u32 %v2570_v60, %v2567_v57  ;;  %v5994_v30 = vld [vmem:[%s7220_s27 + $0x2c] sm:$0x1]  ;;  %v5999_v51 = vld [vmem:[%s7220_s27 + $0x40] sm:$0xf] }
  0x35   : > { %6505 = vmatprep.mubr.msk.bf16.mxu1 %vm314_vm1, %v7092_v38  ;;  %6630 = vmatmul.mubr.msk.bf16.gmra.mrb[8].mxu0 %vm314_vm1, %v5959_v12  ;;  %v2581_v10 = vor.u32 %v2580_v62, %v2576_v61  ;;  %v2586_v11 = vrot.slane %v2584_v63, 5  ;;  %v3239_v13 = vrot.slane %v5988_v54, 5  ;;  %v2563_v17 = vsel %vm7267_vm4, %v2558_v2, %v2562_v47  ;;  %v5997_v38 = vld [vmem:[%s7220_s27 + $0x38] sm:$0x1]  ;;  %v7095_v52 = vld [vmem:[%s7220_s27 + $0x9c] sm:$0xff]  }
  0x36   : > { %v3237_v18 = vsel %vm7342_vm7, %v6034_v5, %v3236_v7  ;;  %v3238_v19 = vrot.slane %v3236_v7, 4  ;;  %v6035_v20 = vrot.slane %v5989_v58, 9  ;;  %v5960_v22 = vcombine.low %v2553_v1, %v2563_v17  ;;  %v6000_v55 = vld [vmem:[%s7220_s27 + $0x44] sm:$0x1]  ;;  %v6001_v56 = vld [vmem:[%s7220_s27 + $0x48] sm:$0xe] }
  0x37   : > { %v2572_v23 = vrot.slane %v2571_v9, 4  ;;  %v2582_v24 = vrot.slane %v2581_v10, 4  ;;  %v3243_v25 = vrot.slane %v5990_v59, 5  ;;  %v3246_v29 = vrot.slane %v5991_v6, 5  ;;  %v7096_v58 = vld [vmem:[%s7220_s27 + $0xa8] sm:$0xff]  }
  0x38   : > { %v3240_v28 = vsel %vm7342_vm7, %v3238_v19, %v3239_v13  ;;  %v6036_v31 = vrot.slane %v5992_v21, 9  ;;  %v3250_v32 = vrot.slane %v5993_v27, 5  ;;  %6633 = vmatprep.mubr.msk.bf16.mxu0 %vm314_vm1, %v5960_v22  ;;  %v3253_v44 = vrot.slane %v5994_v30, 5  ;;  %v6002_v62 = vld [vmem:[%s7220_s27 + $0x4c] sm:$0xf] }
  0x39   : > { %v2577_v33 = vsel %vm7267_vm4, %v2572_v23, %v2576_v61  ;;  %v2587_v34 = vsel %vm7267_vm4, %v2582_v24, %v2586_v11  ;;  %v6051_v35 = vcombine.low %v3237_v18, %v3240_v28  ;;  %v3244_v40 = vsel %vm7342_vm7, %v6035_v20, %v3243_v25  ;;  %v6003_v1 = vld [vmem:[%s7220_s27 + $0x50] sm:$0x1]  ;;  %v560_v5 = vld [vmem:[%s7220_s27] sm:$0xf]  ;;  %v561_v13 = vld [vmem:[%s7220_s27 + $0x4] sm:$0xf] }
  0x3a   : > { %v5961_v39 = vcombine.low %v2577_v33, %v2587_v34  ;;  %v3245_v41 = vrot.slane %v3243_v25, 4  ;;  %v3252_v42 = vrot.slane %v3250_v32, 4  ;;  %v6037_v45 = vrot.slane %v5995_v36, 9  ;;  %v562_v17 = vld [vmem:[%s7220_s27 + $0x8] sm:$0x1] }
  0x3b   : > { %v3257_v46 = vrot.slane %v5996_v37, 5  ;;  %v3260_v47 = vrot.slane %v5997_v38, 5  ;;  %v3251_v49 = vsel %vm7342_vm7, %v6036_v31, %v3250_v32  ;;  %v6038_v59 = vrot.slane %v5998_v50, 9  ;;  %v563_v22 = vld [vmem:[%s7220_s27 + $0xc] sm:$0xf] }
  0x3c   : > { %6506 = vmatmul.mubr.msk.bf16.gmra.mrb[20].mxu1 %vm314_vm1, %v7093_v3  ;;  %v3247_v48 = vsel %vm7342_vm7, %v3245_v41, %v3246_v29  ;;  %v3254_v53 = vsel %vm7342_vm7, %v3252_v42, %v3253_v44  ;;  %v3264_v60 = vrot.slane %v5999_v51, 5  ;;  %v3267_v61 = vrot.slane %v6000_v55, 5  ;;  %v564_v27 = vld [vmem:[%s7220_s27 + $0x10] sm:$0xf]  ;;  %v565_v32 = vld [vmem:[%s7220_s27 + $0x14] sm:$0x1] }
  0x3d   : > { %6509 = vmatprep.mubr.msk.bf16.mxu1 %vm314_vm1, %v7094_v26  ;;  %6634 = vmatmul.mubr.msk.bf16.gmra.mrb[12].mxu0 %vm314_vm1, %v5961_v39  ;;  %v7385_v54 = vsel %vm7342_vm7, %v6037_v45, %v3257_v46  ;;  %v3259_v12 = vrot.slane %v3257_v46, 4  ;;  %v6052_v57 = vcombine.low %v3244_v40, %v3247_v48  ;;  %v6053_v63 = vcombine.low %v3251_v49, %v3254_v53  ;;  %v6004_v33 = vld [vmem:[%s7220_s27 + $0x54] sm:$0xe]  ;;  %v6005_v38 = vld [vmem:[%s7220_s27 + $0x58] sm:$0xf] }
  0x3e   : > { %6655 = vmatprep.mubr.msk.bf16.mxu0 %vm314_vm1, %v6051_v35  ;;  %v6039_v2 = vrot.slane %v6001_v56, 9  ;;  %v3271_v3 = vrot.slane %v6002_v62, 5  ;;  %v7402_v9 = vsel %vm7342_vm7, %v6038_v59, %v3264_v60  ;;  %v3266_v10 = vrot.slane %v3264_v60, 4  ;;  %v6006_v44 = vld [vmem:[%s7220_s27 + $0x5c] sm:$0x1]  ;;  %v7097_v45 = vld [vmem:[%s7220_s27 + $0xb4] sm:$0xff]  }
  0x3f   : > { %v7394_v6 = vsel %vm7342_vm7, %v3259_v12, %v3260_v47  ;;  %v3274_v11 = vrot.slane %v6003_v1, 5  ;;  %v612_v20 = vshrl.u32 %v560_v5, 16  ;;  %v615_v21 = vshll.u32 %v560_v5, 16  ;;  %v6007_v50 = vld [vmem:[%s7220_s27 + $0x60] sm:$0xe] }
  0x40   : > { %v6054_v7 = vcombine.low %v7385_v54, %v7394_v6  ;;  %v7408_v18 = vsel %vm7342_vm7, %v6039_v2, %v3271_v3  ;;  %v3273_v19 = vrot.slane %v3271_v3, 4  ;;  %v7414_v23 = vsel %vm7342_vm7, %v3266_v10, %v3267_v61  ;;  %v6008_v55 = vld [vmem:[%s7220_s27 + $0x64] sm:$0xf]  ;;  %v6009_v59 = vld [vmem:[%s7220_s27 + $0x68] sm:$0x1] }
  0x41   : > { %v621_v24 = vshll.u32 %v561_v13, 16  ;;  %v625_v25 = vshrl.u32 %v561_v13, 16  ;;  %v631_v26 = vshll.u32 %v562_v17, 16  ;;  %v6055_v28 = vcombine.low %v7402_v9, %v7414_v23  ;;  %v566_v1 = vld [vmem:[%s7220_s27 + $0x18] sm:$0xf] }
  0x42   : > { %v7422_v29 = vsel %vm7342_vm7, %v3273_v19, %v3274_v11  ;;  %v614_v30 = vrot.slane %v612_v20, 4  ;;  %v617_v31 = vrot.slane %v615_v21, 5  ;;  %v636_v40 = vshrl.u32 %v563_v22, 16  ;;  %v567_v19 = vld [vmem:[%s7220_s27 + $0x1c] sm:$0xf] }
  0x43   : > { %v6056_v34 = vcombine.low %v7408_v18, %v7422_v29  ;;  %v623_v35 = vrot.slane %v621_v24, 5  ;;  %v627_v36 = vrot.slane %v625_v25, 4  ;;  %v633_v37 = vrot.slane %v631_v26, 5  ;;  %v571_v9 = vld [vmem:[%s7220_s27 + $0x2c] sm:$0x1] }
  0x44   : > { %6510 = vmatmul.mubr.msk.bf16.gmra.mrb[24].mxu1 %vm314_vm1, %v7095_v52  ;;  %v618_v39 = vor.u32 %v617_v31, %v614_v30  ;;  %v639_v41 = vshll.u32 %v563_v22, 16  ;;  %v645_v42 = vshll.u32 %v564_v27, 16  ;;  %v649_v47 = vshrl.u32 %v564_v27, 16  ;;  %v568_v22 = vld [vmem:[%s7220_s27 + $0x20] sm:$0x1] }
  0x45   : > { %6513 = vmatprep.mubr.msk.bf16.mxu1 %vm314_vm1, %v7096_v58  ;;  %6656 = vmatmul.mubr.msk.bf16.vlgmr.msra.gmra.mrb[0].mxu0 %vm314_vm1, %v6052_v57  ;;  %v628_v46 = vor.u32 %v627_v36, %v623_v35  ;;  %v655_v48 = vshll.u32 %v565_v32, 16  ;;  %v6040_v49 = vrot.slane %v6004_v33, 9  ;;  %v638_v52 = vrot.slane %v636_v40, 4  ;;  %v569_v32 = vld [vmem:[%s7220_s27 + $0x24] sm:$0xf] }
  0x46   : > { %6688 = vmatpush3.bf16.msra.mxu0 %v7245_v14  ;;  %6659 = vmatprep.mubr.msk.bf16.mxu0 %vm314_vm1, %v6053_v63  ;;  %v619_v51 = vrot.slane %v618_v39, 4  ;;  %v641_v53 = vrot.slane %v639_v41, 5  ;;  %v647_v12 = vrot.slane %v645_v42, 5  ;;  %v651_v14 = vrot.slane %v649_v47, 4  ;;  %v6010_v23 = vld [vmem:[%s7220_s27 + $0x6c] sm:$0xe] }
  0x47   : > { %7055 = vmatprep.subr.msk.bf16.mxu0 %vm363_vm0, %v7233_v8  ;;  %v629_v56 = vrot.slane %v628_v46, 4  ;;  %v657_v57 = vrot.slane %v655_v48, 5  ;;  %v3278_v58 = vrot.slane %v6005_v38, 5  ;;  %v3281_v62 = vrot.slane %v6006_v44, 5  ;;  %v6011_v44 = vld [vmem:[%s7220_s27 + $0x70] sm:$0xf] }
  0x48   : > { %v624_v60 = vsel %vm7267_vm4, %v619_v51, %v623_v35  ;;  %v642_v61 = vor.u32 %v641_v53, %v638_v52  ;;  %v6041_v63 = vrot.slane %v6007_v50, 9  ;;  %v652_v8 = vor.u32 %v651_v14, %v647_v12  ;;  %v570_v35 = vld [vmem:[%s7220_s27 + $0x28] sm:$0xf]  ;;  %v6013_v50 = vld [vmem:[%s7220_s27 + $0x78] sm:$0xe] }
  0x49   : > { %v634_v2 = vsel %vm7267_vm4, %v629_v56, %v633_v37  ;;  %v7447_v3 = vsel %vm7342_vm7, %v6040_v49, %v3278_v58  ;;  %v3280_v5 = vrot.slane %v3278_v58, 4  ;;  %v3285_v13 = vrot.slane %v6008_v55, 5  ;;  %v6014_v55 = vld [vmem:[%s7220_s27 + $0x7c] sm:$0xf] }
  0x4a   : > { %v5759_v10 = vcombine.low %v624_v60, %v634_v2  ;;  %v643_v11 = vrot.slane %v642_v61, 4  ;;  %v3288_v17 = vrot.slane %v6009_v59, 5  ;;  %v653_v20 = vrot.slane %v652_v8, 4  ;;  %v6015_v59 = vld [vmem:[%s7220_s27 + $0x80] sm:$0x1] }
  0x4b   : > { %v3282_v21 = vsel %vm7342_vm7, %v3280_v5, %v3281_v62  ;;  %v660_v24 = vshrl.u32 %v566_v1, 16  ;;  %v663_v25 = vshll.u32 %v566_v1, 16  ;;  %v7463_v30 = vsel %vm7342_vm7, %v6041_v63, %v3285_v13  ;;  %v572_v1 = vld [vmem:[%s7220_s27 + $0x30] sm:$0xf] }
  0x4c   : > { %6514 = vmatmul.mubr.msk.bf16.gmra.mrb[28].mxu1 %vm314_vm1, %v7097_v45  ;;  %v648_v26 = vsel %vm7267_vm4, %v643_v11, %v647_v12  ;;  %v6057_v27 = vcombine.low %v7447_v3, %v3282_v21  ;;  %v3287_v31 = vrot.slane %v3285_v13, 4  ;;  %v658_v54 = vsel %vm7267_vm4, %v653_v20, %v657_v57  ;;  %v6012_v45 = vld [vmem:[%s7220_s27 + $0x74] sm:$0x1] }
  0x4d   : > { %6660 = vmatmul.mubr.msk.bf16.gmra.mrb[4].mxu0 %vm314_vm1, %v6054_v7  ;;  %6519 = vmatprep.mubr.msk.bf16.mxu1 %vm314_vm1, %v5759_v10  ;;  %v662_v6 = vrot.slane %v660_v24, 4  ;;  %v665_v7 = vrot.slane %v663_v25, 5  ;;  %v669_v33 = vshll.u32 %v567_v19, 16  ;;  %v5760_v36 = vcombine.low %v648_v26, %v658_v54  ;;  %v574_v25 = vld [vmem:[%s7220_s27 + $0x38] sm:$0x1] }
  0x4e   : > { %6663 = vmatprep.mubr.msk.bf16.mxu0 %vm314_vm1, %v6055_v28  ;;  %v7475_v37 = vsel %vm7342_vm7, %v3287_v31, %v3288_v17  ;;  %v673_v38 = vshrl.u32 %v567_v19, 16  ;;  %v679_v39 = vshll.u32 %v568_v22, 16  ;;  %v684_v42 = vshrl.u32 %v569_v32, 16  ;;  %v575_v26 = vld [vmem:[%s7220_s27 + $0x3c] sm:$0xf] }
  0x4f   : > { %v6058_v28 = vcombine.low %v7463_v30, %v7475_v37  ;;  %v666_v40 = vor.u32 %v665_v7, %v662_v6  ;;  %v671_v41 = vrot.slane %v669_v33, 5  ;;  %v687_v48 = vshll.u32 %v569_v32, 16 }
  0x50   : > { %v675_v46 = vrot.slane %v673_v38, 4  ;;  %v681_v47 = vrot.slane %v679_v39, 5  ;;  %v693_v49 = vshll.u32 %v570_v35, 16  ;;  %v686_v52 = vrot.slane %v684_v42, 4 }
  0x51   : > { %v667_v51 = vrot.slane %v666_v40, 4  ;;  %v697_v53 = vshrl.u32 %v570_v35, 16  ;;  %v703_v12 = vshll.u32 %v571_v9, 16  ;;  %v689_v14 = vrot.slane %v687_v48, 5 }
  0x52   : > { %v676_v56 = vor.u32 %v675_v46, %v671_v41  ;;  %v695_v57 = vrot.slane %v693_v49, 5  ;;  %v6042_v58 = vrot.slane %v6010_v23, 9  ;;  %v3292_v63 = vrot.slane %v6011_v44, 5  ;;  %v577_v23 = vld [vmem:[%s7220_s27 + $0x44] sm:$0x1] }
  0x53   : > { %v672_v60 = vsel %vm7267_vm4, %v667_v51, %v671_v41  ;;  %v699_v61 = vrot.slane %v697_v53, 4  ;;  %v705_v62 = vrot.slane %v703_v12, 5  ;;  %v690_v8 = vor.u32 %v689_v14, %v686_v52  ;;  %v6016_v41 = vld [vmem:[%s7220_s27 + $0x84] sm:$0xe] }
  0x54   : > { %6520 = vmatmul.mubr.msk.bf16.vlgmr.msra.gmra.mrb[0].mxu1 %vm314_vm1, %v5760_v36  ;;  %v677_v2 = vrot.slane %v676_v56, 4  ;;  %v3295_v3 = vrot.slane %v6012_v45, 5  ;;  %v6043_v5 = vrot.slane %v6013_v50, 9  ;;  %v3293_v10 = vsel %vm7342_vm7, %v6042_v58, %v3292_v63  ;;  %v576_v36 = vld [vmem:[%s7220_s27 + $0x40] sm:$0xf] }
  0x55   : > { %6552 = vmatpush3.bf16.msra.mxu1 %v7249_v15  ;;  %6664 = vmatmul.mubr.msk.bf16.gmra.mrb[8].mxu0 %vm314_vm1, %v6056_v34  ;;  %v700_v15 = vor.u32 %v699_v61, %v695_v57  ;;  %v3294_v11 = vrot.slane %v3292_v63, 4  ;;  %v3299_v13 = vrot.slane %v6014_v55, 5  ;;  %v691_v18 = vrot.slane %v690_v8, 4  ;;  %v573_v34 = vld [vmem:[%s7220_s27 + $0x34] sm:$0xf] }
  0x56   : > { %6667 = vmatprep.mubr.msk.bf16.mxu0 %vm314_vm1, %v6057_v27  ;;  %v682_v17 = vsel %vm7267_vm4, %v677_v2, %v681_v47  ;;  %v3302_v29 = vrot.slane %v6015_v59, 5  ;;  %v708_v19 = vshrl.u32 %v572_v1, 16  ;;  %v711_v7 = vshll.u32 %v572_v1, 16  ;;  %v6017_v47 = vld [vmem:[%s7220_s27 + $0x88] sm:$0xf] }
  0x57   : > { %v5761_v20 = vcombine.low %v672_v60, %v682_v17  ;;  %v701_v21 = vrot.slane %v700_v15, 4  ;;  %v3296_v22 = vsel %vm7342_vm7, %v3294_v11, %v3295_v3  ;;  %v7505_v24 = vsel %vm7342_vm7, %v6043_v5, %v3299_v13  ;;  %v6018_v56 = vld [vmem:[%s7220_s27 + $0x8c] sm:$0x1]  ;;  %v6021_v3 = vld [vmem:[%s7220_s27 + $0x98] sm:$0x1] }
  0x58   : > { %v696_v27 = vsel %vm7267_vm4, %v691_v18, %v695_v57  ;;  %v6059_v31 = vcombine.low %v3293_v10, %v3296_v22  ;;  %v3301_v32 = vrot.slane %v3299_v13, 4  ;;  %v710_v54 = vrot.slane %v708_v19, 4  ;;  %v6019_v57 = vld [vmem:[%s7220_s27 + $0x90] sm:$0xe]  ;;  %v578_v5 = vld [vmem:[%s7220_s27 + $0x48] sm:$0xf] }
  0x59   : > { %6523 = vmatprep.mubr.msk.bf16.mxu1 %vm314_vm1, %v5761_v20  ;;  %v706_v6 = vsel %vm7267_vm4, %v701_v21, %v705_v62  ;;  %v717_v33 = vshll.u32 %v573_v34, 16  ;;  %v721_v35 = vshrl.u32 %v573_v34, 16  ;;  %v727_v9 = vshll.u32 %v574_v25, 16  ;;  %v6020_v62 = vld [vmem:[%s7220_s27 + $0x94] sm:$0xf] }
  0x5a   : > { %v5762_v38 = vcombine.low %v696_v27, %v706_v6  ;;  %v3303_v39 = vsel %vm7342_vm7, %v3301_v32, %v3302_v29  ;;  %v732_v40 = vshrl.u32 %v575_v26, 16  ;;  %v713_v44 = vrot.slane %v711_v7, 5  ;;  %v579_v19 = vld [vmem:[%s7220_s27 + $0x4c] sm:$0xf] }
  0x5b   : > { %v6060_v42 = vcombine.low %v7505_v24, %v3303_v39  ;;  %v719_v45 = vrot.slane %v717_v33, 5  ;;  %v723_v46 = vrot.slane %v721_v35, 4  ;;  %v729_v48 = vrot.slane %v727_v9, 5  ;;  %v580_v24 = vld [vmem:[%s7220_s27 + $0x50] sm:$0x1] }
  0x5c   : > { %6524 = vmatmul.mubr.msk.bf16.gmra.mrb[4].mxu1 %vm314_vm1, %v5762_v38  ;;  %v734_v49 = vrot.slane %v732_v40, 4  ;;  %v735_v50 = vshll.u32 %v575_v26, 16  ;;  %v741_v51 = vshll.u32 %v576_v36, 16  ;;  %v714_v52 = vor.u32 %v713_v44, %v710_v54  ;;  %v581_v54 = vld [vmem:[%s7220_s27 + $0x54] sm:$0xf] }
  0x5d   : > { %6668 = vmatmul.mubr.msk.bf16.gmra.mrb[12].mxu0 %vm314_vm1, %v6058_v28  ;;  %v724_v53 = vor.u32 %v723_v46, %v719_v45  ;;  %v745_v12 = vshrl.u32 %v576_v36, 16  ;;  %v751_v55 = vshll.u32 %v577_v23, 16  ;;  %v6044_v28 = vrot.slane %v6016_v41, 9  ;;  %v582_v36 = vld [vmem:[%s7220_s27 + $0x58] sm:$0xf] }
  0x5e   : > { %6671 = vmatprep.mubr.msk.bf16.mxu0 %vm314_vm1, %v6059_v31  ;;  %v737_v30 = vrot.slane %v735_v50, 5  ;;  %v743_v37 = vrot.slane %v741_v51, 5  ;;  %v3306_v14 = vrot.slane %v6017_v47, 5  ;;  %v715_v58 = vrot.slane %v714_v52, 4  ;;  %v583_v40 = vld [vmem:[%s7220_s27 + $0x5c] sm:$0x1] }
  0x5f   : > { %v725_v59 = vrot.slane %v724_v53, 4  ;;  %v747_v60 = vrot.slane %v745_v12, 4  ;;  %v753_v61 = vrot.slane %v751_v55, 5  ;;  %v3309_v8 = vrot.slane %v6018_v56, 5  ;;  %v6022_v41 = vld [vmem:[%s7220_s27 + $0x9c] sm:$0xe] }
  0x60   : > { %v738_v63 = vor.u32 %v737_v30, %v734_v49  ;;  %v3307_v1 = vsel %vm7342_vm7, %v6044_v28, %v3306_v14  ;;  %v3308_v2 = vrot.slane %v3306_v14, 4  ;;  %v720_v15 = vsel %vm7267_vm4, %v715_v58, %v719_v45  ;;  %v6023_v47 = vld [vmem:[%s7220_s27 + $0xa0] sm:$0xf]  ;;  %v6024_v52 = vld [vmem:[%s7220_s27 + $0xa4] sm:$0x1] }
  0x61   : > { %v730_v10 = vsel %vm7267_vm4, %v725_v59, %v729_v48  ;;  %v748_v11 = vor.u32 %v747_v60, %v743_v37  ;;  %v6045_v13 = vrot.slane %v6019_v57, 9  ;;  %v3313_v34 = vrot.slane %v6020_v62, 5  ;;  %v6025_v30 = vld [vmem:[%s7220_s27 + $0xa8] sm:$0xe]  ;;  %v6026_v58 = vld [vmem:[%s7220_s27 + $0xac] sm:$0xf] }
  0x62   : > { %v5763_v17 = vcombine.low %v720_v15, %v730_v10  ;;  %v739_v18 = vrot.slane %v738_v63, 4  ;;  %v3310_v29 = vsel %vm7342_vm7, %v3308_v2, %v3309_v8  ;;  %v3316_v22 = vrot.slane %v6021_v3, 5  ;;  %v6027_v63 = vld [vmem:[%s7220_s27 + $0xb0] sm:$0x1]  ;;  %v585_v15 = vld [vmem:[%s7220_s27 + $0x64] sm:$0xf] }
  0x63   : > { %v749_v20 = vrot.slane %v748_v11, 4  ;;  %v6061_v21 = vcombine.low %v3307_v1, %v3310_v29  ;;  %v756_v25 = vshrl.u32 %v578_v5, 16  ;;  %v3314_v27 = vsel %vm7342_vm7, %v6045_v13, %v3313_v34 }
  0x64   : > { %6527 = vmatprep.mubr.msk.bf16.mxu1 %vm314_vm1, %v5763_v17  ;;  %v744_v26 = vsel %vm7267_vm4, %v739_v18, %v743_v37  ;;  %v3315_v31 = vrot.slane %v3313_v34, 4  ;;  %v759_v32 = vshll.u32 %v578_v5, 16  ;;  %v765_v33 = vshll.u32 %v579_v19, 16  ;;  %v584_v5 = vld [vmem:[%s7220_s27 + $0x60] sm:$0xf] }
  0x65   : > { %6672 = vmatmul.mubr.msk.bf16.gmra.mrb[16].mxu0 %vm314_vm1, %v6060_v42  ;;  %v754_v6 = vsel %vm7267_vm4, %v749_v20, %v753_v61  ;;  %v758_v7 = vrot.slane %v756_v25, 4  ;;  %v769_v35 = vshrl.u32 %v579_v19, 16  ;;  %v775_v23 = vshll.u32 %v580_v24, 16  ;;  %v586_v18 = vld [vmem:[%s7220_s27 + $0x68] sm:$0x1] }
  0x66   : > { %6675 = vmatprep.mubr.msk.bf16.mxu0 %vm314_vm1, %v6061_v21  ;;  %v5764_v38 = vcombine.low %v744_v26, %v754_v6  ;;  %v3317_v39 = vsel %vm7342_vm7, %v3315_v31, %v3316_v22  ;;  %v761_v9 = vrot.slane %v759_v32, 5  ;;  %v767_v44 = vrot.slane %v765_v33, 5  ;;  %v587_v21 = vld [vmem:[%s7220_s27 + $0x6c] sm:$0xf]  ;;  %v588_v6 = vld [vmem:[%s7220_s27 + $0x70] sm:$0xf] }
  0x67   : > { %v6062_v42 = vcombine.low %v3314_v27, %v3317_v39  ;;  %v771_v45 = vrot.slane %v769_v35, 4  ;;  %v780_v46 = vshrl.u32 %v581_v54, 16  ;;  %v777_v49 = vrot.slane %v775_v23, 5 }
  0x68   : > { %6528 = vmatmul.mubr.msk.bf16.gmra.mrb[8].mxu1 %vm314_vm1, %v5764_v38  ;;  %v762_v48 = vor.u32 %v761_v9, %v758_v7  ;;  %v783_v50 = vshll.u32 %v581_v54, 16  ;;  %v789_v51 = vshll.u32 %v582_v36, 16  ;;  %v793_v55 = vshrl.u32 %v582_v36, 16  ;;  %v589_v38 = vld [vmem:[%s7220_s27 + $0x74] sm:$0x1] }
  0x69   : > { %v772_v53 = vor.u32 %v771_v45, %v767_v44  ;;  %v782_v12 = vrot.slane %v780_v46, 4  ;;  %v799_v56 = vshll.u32 %v583_v40, 16  ;;  %v6046_v57 = vrot.slane %v6022_v41, 9  ;;  %v6028_v41 = vld [vmem:[%s7220_s27 + $0xb4] sm:$0xe] }
  0x6a   : > { %v763_v37 = vrot.slane %v762_v48, 4  ;;  %v785_v28 = vrot.slane %v783_v50, 5  ;;  %v791_v14 = vrot.slane %v789_v51, 5  ;;  %v795_v60 = vrot.slane %v793_v55, 4  ;;  %v6030_v48 = vld [vmem:[%s7220_s27 + $0xbc] sm:$0x1] }
  0x6b   : > { %v773_v59 = vrot.slane %v772_v53, 4  ;;  %v801_v61 = vrot.slane %v799_v56, 5  ;;  %v3320_v62 = vrot.slane %v6023_v47, 5  ;;  %v3323_v8 = vrot.slane %v6024_v52, 5 }
  0x6c   : > { %v768_v1 = vsel %vm7267_vm4, %v763_v37, %v767_v44  ;;  %v786_v2 = vor.u32 %v785_v28, %v782_v12  ;;  %v6047_v3 = vrot.slane %v6025_v30, 9  ;;  %v796_v11 = vor.u32 %v795_v60, %v791_v14  ;;  %v6032_v12 = vld [vmem:[%s7220_s27 + $0xc4] sm:$0xf]  ;;  %v6033_v28 = vld [vmem:[%s7220_s27 + $0xc8] sm:$0x1] }
  0x6d   : > { %6676 = vmatmul.mubr.msk.bf16.gmra.mrb[20].mxu0 %vm314_vm1, %v6062_v42  ;;  %v778_v10 = vsel %vm7267_vm4, %v773_v59, %v777_v49  ;;  %v3321_v13 = vsel %vm7342_vm7, %v6046_v57, %v3320_v62  ;;  %v3322_v17 = vrot.slane %v3320_v62, 4  ;;  %v3327_v19 = vrot.slane %v6026_v58, 5  ;;  %v6029_v42 = vld [vmem:[%s7220_s27 + $0xb8] sm:$0xf]  ;;  %v6031_v49 = vld [vmem:[%s7220_s27 + $0xc0] sm:$0xe] }
  0x6e   : > { %v5765_v29 = vcombine.low %v768_v1, %v778_v10  ;;  %v787_v34 = vrot.slane %v786_v2, 4  ;;  %v3330_v20 = vrot.slane %v6027_v63, 5  ;;  %v797_v22 = vrot.slane %v796_v11, 4 }
  0x6f   : > { %v3324_v24 = vsel %vm7342_vm7, %v3322_v17, %v3323_v8  ;;  %v804_v25 = vshrl.u32 %v584_v5, 16  ;;  %v807_v26 = vshll.u32 %v584_v5, 16  ;;  %v3328_v32 = vsel %vm7342_vm7, %v6047_v3, %v3327_v19  ;;  %v591_v17 = vld [vmem:[%s7220_s27 + $0x7c] sm:$0xf] }
  0x70   : > { %6531 = vmatprep.mubr.msk.bf16.mxu1 %vm314_vm1, %v5765_v29  ;;  %v792_v27 = vsel %vm7267_vm4, %v787_v34, %v791_v14  ;;  %v6063_v31 = vcombine.low %v3321_v13, %v3324_v24  ;;  %v3329_v54 = vrot.slane %v3327_v19, 4  ;;  %v802_v7 = vsel %vm7267_vm4, %v797_v22, %v801_v61  ;;  %v590_v14 = vld [vmem:[%s7220_s27 + $0x78] sm:$0xf]  ;;  %v592_v19 = vld [vmem:[%s7220_s27 + $0x80] sm:$0x1] }
  0x71   : > { %v806_v33 = vrot.slane %v804_v25, 4  ;;  %v809_v35 = vrot.slane %v807_v26, 5  ;;  %v813_v36 = vshll.u32 %v585_v15, 16  ;;  %v5766_v39 = vcombine.low %v792_v27, %v802_v7  ;;  %v593_v26 = vld [vmem:[%s7220_s27 + $0x84] sm:$0xf] }
  0x72   : > { %6679 = vmatprep.mubr.msk.bf16.mxu0 %vm314_vm1, %v6063_v31  ;;  %v3331_v9 = vsel %vm7342_vm7, %v3329_v54, %v3330_v20  ;;  %v817_v23 = vshrl.u32 %v585_v15, 16  ;;  %v823_v40 = vshll.u32 %v586_v18, 16  ;;  %v828_v47 = vshrl.u32 %v587_v21, 16  ;;  %v594_v27 = vld [vmem:[%s7220_s27 + $0x88] sm:$0xf] }
  0x73   : > { %v6064_v44 = vcombine.low %v3328_v32, %v3331_v9  ;;  %v810_v45 = vor.u32 %v809_v35, %v806_v33  ;;  %v815_v46 = vrot.slane %v813_v36, 5  ;;  %6532 = vmatmul.mubr.msk.bf16.gmra.mrb[12].mxu1 %vm314_vm1, %v5766_v39  ;;  %v831_v52 = vshll.u32 %v587_v21, 16 }
  0x74   : > { %v819_v50 = vrot.slane %v817_v23, 4  ;;  %v825_v51 = vrot.slane %v823_v40, 5  ;;  %v837_v53 = vshll.u32 %v588_v6, 16  ;;  %v830_v56 = vrot.slane %v828_v47, 4  ;;  %v595_v40 = vld [vmem:[%s7220_s27 + $0x8c] sm:$0x1] }
  0x75   : > { %6680 = vmatmul.mubr.msk.bf16.gmra.mrb[24].mxu0 %vm314_vm1, %v6064_v44  ;;  %v811_v55 = vrot.slane %v810_v45, 4  ;;  %v841_v30 = vshrl.u32 %v588_v6, 16  ;;  %v847_v37 = vshll.u32 %v589_v38, 16  ;;  %v833_v58 = vrot.slane %v831_v52, 5  ;;  %v7098_v38 = vld [vmem:[%s7220_s27 + $0x18] sm:$0xff]  }
  0x76   : > { %v820_v57 = vor.u32 %v819_v50, %v815_v46  ;;  %v839_v59 = vrot.slane %v837_v53, 5  ;;  %v6048_v60 = vrot.slane %v6028_v41, 9  ;;  %v3334_v1 = vrot.slane %v6029_v42, 5  ;;  %v596_v47 = vld [vmem:[%s7220_s27 + $0x90] sm:$0xf] }
  0x77   : > { %v816_v61 = vsel %vm7267_vm4, %v811_v55, %v815_v46  ;;  %v843_v62 = vrot.slane %v841_v30, 4  ;;  %v849_v63 = vrot.slane %v847_v37, 5  ;;  %v834_v8 = vor.u32 %v833_v58, %v830_v56  ;;  %v597_v56 = vld [vmem:[%s7220_s27 + $0x94] sm:$0xf]  ;;  %v599_v58 = vld [vmem:[%s7220_s27 + $0x9c] sm:$0xf] }
  0x78   : > { %v821_v2 = vrot.slane %v820_v57, 4  ;;  %v3337_v3 = vrot.slane %v6030_v48, 5  ;;  %v6049_v5 = vrot.slane %v6031_v49, 9  ;;  %v3335_v10 = vsel %vm7342_vm7, %v6048_v60, %v3334_v1 }
  0x79   : > { %v844_v15 = vor.u32 %v843_v62, %v839_v59  ;;  %v3336_v11 = vrot.slane %v3334_v1, 4  ;;  %v3341_v13 = vrot.slane %v6032_v12, 5  ;;  %v835_v29 = vrot.slane %v834_v8, 4 }
  0x7a   : > { %v826_v18 = vsel %vm7267_vm4, %v821_v2, %v825_v51  ;;  %v3344_v34 = vrot.slane %v6033_v28, 5  ;;  %v852_v20 = vshrl.u32 %v590_v14, 16  ;;  %v855_v33 = vshll.u32 %v590_v14, 16  ;;  %v598_v28 = vld [vmem:[%s7220_s27 + $0x98] sm:$0x1] }
  0x7b   : > { %v5767_v21 = vcombine.low %v816_v61, %v826_v18  ;;  %v845_v22 = vrot.slane %v844_v15, 4  ;;  %v3338_v24 = vsel %vm7342_vm7, %v3336_v11, %v3337_v3  ;;  %v3342_v25 = vsel %vm7342_vm7, %v6049_v5, %v3341_v13  ;;  %v7099_v11 = vld [vmem:[%s7220_s27 + $0x24] sm:$0xff]  }
  0x7c   : > { %v840_v31 = vsel %vm7267_vm4, %v835_v29, %v839_v59  ;;  %v6065_v32 = vcombine.low %v3335_v10, %v3338_v24  ;;  %v3343_v54 = vrot.slane %v3341_v13, 4  ;;  %v854_v6 = vrot.slane %v852_v20, 4  ;;  %v601_v24 = vld [vmem:[%s7220_s27 + $0xa4] sm:$0x1] }
  0x7d   : > { %6535 = vmatprep.mubr.msk.bf16.mxu1 %vm314_vm1, %v5767_v21  ;;  %v850_v7 = vsel %vm7267_vm4, %v845_v22, %v849_v63  ;;  %v861_v35 = vshll.u32 %v591_v17, 16  ;;  %v865_v36 = vshrl.u32 %v591_v17, 16  ;;  %v871_v23 = vshll.u32 %v592_v19, 16  ;;  %v600_v63 = vld [vmem:[%s7220_s27 + $0xa0] sm:$0xf]  ;;  %v7100_v19 = vld [vmem:[%s7220_s27 + $0x30] sm:$0xff]  }
  0x7e   : > { %v5768_v39 = vcombine.low %v840_v31, %v850_v7  ;;  %6683 = vmatprep.mubr.msk.bf16.mxu0 %vm314_vm1, %v6065_v32  ;;  %v3345_v9 = vsel %vm7342_vm7, %v3343_v54, %v3344_v34  ;;  %v876_v41 = vshrl.u32 %v593_v26, 16  ;;  %v857_v44 = vrot.slane %v855_v33, 5  ;;  %v602_v54 = vld [vmem:[%s7220_s27 + $0xa8] sm:$0xf] }
  0x7f   : > { %v6066_v42 = vcombine.low %v3342_v25, %v3345_v9  ;;  %v863_v45 = vrot.slane %v861_v35, 5  ;;  %v867_v46 = vrot.slane %v865_v36, 4  ;;  %v873_v48 = vrot.slane %v871_v23, 5  ;;  %v603_v36 = vld [vmem:[%s7220_s27 + $0xac] sm:$0xf] }
  0x80   : > { %6536 = vmatmul.mubr.msk.bf16.gmra.mrb[16].mxu1 %vm314_vm1, %v5768_v39  ;;  %v878_v49 = vrot.slane %v876_v41, 4  ;;  %v879_v50 = vshll.u32 %v593_v26, 16  ;;  %v885_v51 = vshll.u32 %v594_v27, 16  ;;  %v858_v52 = vor.u32 %v857_v44, %v854_v6  ;;  %v605_v41 = vld [vmem:[%s7220_s27 + $0xb4] sm:$0xf] }
  0x81   : > { %6684 = vmatmul.mubr.msk.bf16.gmra.mrb[28].mxu0 %vm314_vm1, %v6066_v42  ;;  %v868_v53 = vor.u32 %v867_v46, %v863_v45  ;;  %v889_v12 = vshrl.u32 %v594_v27, 16  ;;  %v895_v55 = vshll.u32 %v595_v40, 16  ;;  %v900_v14 = vshrl.u32 %v596_v47, 16  ;;  %v604_v40 = vld [vmem:[%s7220_s27 + $0xb0] sm:$0x1] }
  0x82   : > { %v881_v30 = vrot.slane %v879_v50, 5  ;;  %v887_v37 = vrot.slane %v885_v51, 5  ;;  %6689 = vmatprep.mubr.msk.bf16.mxu0 %vm314_vm1, %v7098_v38  ;;  %v903_v57 = vshll.u32 %v596_v47, 16  ;;  %v859_v59 = vrot.slane %v858_v52, 4  ;;  %v7653_v42 = vld [vmem:[%s8547_s1 + $0x6] sm:$0x3] }
  0x83   : > { %v869_v60 = vrot.slane %v868_v53, 4  ;;  %v891_v61 = vrot.slane %v889_v12, 4  ;;  %v897_v62 = vrot.slane %v895_v55, 5  ;;  %v902_v2 = vrot.slane %v900_v14, 4  ;;  %7050 = vmatprep.subr.msk.bf16.mxu1 %vm363_vm0, %v7653_v42  ;;  %v7101_v55 = vld [vmem:[%s7220_s27 + $0x3c] sm:$0xff]  }
  0x84   : > { %v882_v1 = vor.u32 %v881_v30, %v878_v49  ;;  %v905_v8 = vrot.slane %v903_v57, 5  ;;  %v909_v3 = vshll.u32 %v597_v56, 16  ;;  %v864_v5 = vsel %vm7267_vm4, %v859_v59, %v863_v45  ;;  %v607_v57 = vld [vmem:[%s7220_s27 + $0xbc] sm:$0x1] }
  0x85   : > { %v874_v15 = vsel %vm7267_vm4, %v869_v60, %v873_v48  ;;  %v892_v10 = vor.u32 %v891_v61, %v887_v37  ;;  %v913_v13 = vshrl.u32 %v597_v56, 16  ;;  %v919_v22 = vshll.u32 %v598_v28, 16 }
  0x86   : > { %v5769_v17 = vcombine.low %v864_v5, %v874_v15  ;;  %v883_v18 = vrot.slane %v882_v1, 4  ;;  %v906_v29 = vor.u32 %v905_v8, %v902_v2  ;;  %v911_v34 = vrot.slane %v909_v3, 5  ;;  %v1354_v5 = vld [vmem:[%s7220_s27 + $0x4] sm:$0xf]  ;;  %v1355_v15 = vld [vmem:[%s7220_s27 + $0x8] sm:$0x1] }
  0x87   : > { %v893_v20 = vrot.slane %v892_v10, 4  ;;  %v915_v21 = vrot.slane %v913_v13, 4  ;;  %v924_v25 = vshrl.u32 %v599_v58, 16  ;;  %v927_v31 = vshll.u32 %v599_v58, 16  ;;  %v7102_v58 = vld [vmem:[%s7220_s27 + $0x48] sm:$0xff]  }
  0x88   : > { %6539 = vmatprep.mubr.msk.bf16.mxu1 %vm314_vm1, %v5769_v17  ;;  %v888_v26 = vsel %vm7267_vm4, %v883_v18, %v887_v37  ;;  %v907_v27 = vrot.slane %v906_v29, 4  ;;  %v933_v32 = vshll.u32 %v600_v63, 16  ;;  %v921_v33 = vrot.slane %v919_v22, 5  ;;  %v1356_v18 = vld [vmem:[%s7220_s27 + $0xc] sm:$0xe] }
  0x89   : > { %v898_v6 = vsel %vm7267_vm4, %v893_v20, %v897_v62  ;;  %6690 = vmatmul.mubr.msk.bf16.vlgmr.msra.gmra.mrb[0].mxu0 %vm314_vm1, %v7099_v11  ;;  %v916_v7 = vor.u32 %v915_v21, %v911_v34  ;;  %v926_v35 = vrot.slane %v924_v25, 4  ;;  %v929_v9 = vrot.slane %v927_v31, 5  ;;  %v1357_v21 = vld [vmem:[%s7220_s27 + $0x10] sm:$0xf]  ;;  %v1358_v22 = vld [vmem:[%s7220_s27 + $0x14] sm:$0x1] }
  0x8a   : > { %v5770_v38 = vcombine.low %v888_v26, %v898_v6  ;;  %6722 = vmatpush3.bf16.msra.mxu0 %v7253_v16  ;;  %v912_v39 = vsel %vm7267_vm4, %v907_v27, %v911_v34  ;;  %v935_v23 = vrot.slane %v933_v32, 5  ;;  %6693 = vmatprep.mubr.msk.bf16.mxu0 %vm314_vm1, %v7100_v19  ;;  %v937_v45 = vshrl.u32 %v600_v63, 16  ;;  %v606_v16 = vld [vmem:[%s7220_s27 + $0xb8] sm:$0xf]  ;;  %v1353_v63 = vld [vmem:[%s7220_s27] sm:$0xe] }
  0x8b   : > { %v917_v44 = vrot.slane %v916_v7, 4  ;;  %v943_v46 = vshll.u32 %v601_v24, 16  ;;  %v948_v47 = vshrl.u32 %v602_v54, 16  ;;  %v930_v48 = vor.u32 %v929_v9, %v926_v35  ;;  %v1359_v31 = vld [vmem:[%s7220_s27 + $0x18] sm:$0xe] }
  0x8c   : > { %6540 = vmatmul.mubr.msk.bf16.gmra.mrb[20].mxu1 %vm314_vm1, %v5770_v38  ;;  %v951_v49 = vshll.u32 %v602_v54, 16  ;;  %v957_v50 = vshll.u32 %v603_v36, 16  ;;  %v961_v51 = vshrl.u32 %v603_v36, 16  ;;  %v939_v53 = vrot.slane %v937_v45, 4  ;;  %v1360_v32 = vld [vmem:[%s7220_s27 + $0x1c] sm:$0xf] }
  0x8d   : > { %v922_v52 = vsel %vm7267_vm4, %v917_v44, %v921_v33  ;;  %v945_v12 = vrot.slane %v943_v46, 5  ;;  %v950_v56 = vrot.slane %v948_v47, 4  ;;  %v931_v37 = vrot.slane %v930_v48, 4  ;;  %v7103_v35 = vld [vmem:[%s7220_s27 + $0x54] sm:$0xff]   ;;  %v1361_v36 = vld [vmem:[%s7220_s27 + $0x20] sm:$0x1] }
  0x8e   : > { %v5771_v30 = vcombine.low %v912_v39, %v922_v52  ;;  %v953_v28 = vrot.slane %v951_v49, 5  ;;  %v959_v14 = vrot.slane %v957_v50, 5  ;;  %v940_v59 = vor.u32 %v939_v53, %v935_v23  ;;  %v1362_v47 = vld [vmem:[%s7220_s27 + $0x24] sm:$0xe]  ;;  %v1364_v52 = vld [vmem:[%s7220_s27 + $0x2c] sm:$0x1] }
  0x8f   : > { %v963_v60 = vrot.slane %v961_v51, 4  ;;  %v967_v61 = vshll.u32 %v604_v40, 16  ;;  %v972_v62 = vshrl.u32 %v605_v41, 16  ;;  %v936_v1 = vsel %vm7267_vm4, %v931_v37, %v935_v23  ;;  %v7104_v40 = vld [vmem:[%s7220_s27 + $0x60] sm:$0xff]  }
  0x90   : > { %6543 = vmatprep.mubr.msk.bf16.mxu1 %vm314_vm1, %v5771_v30  ;;  %v954_v2 = vor.u32 %v953_v28, %v950_v56  ;;  %v975_v8 = vshll.u32 %v605_v41, 16  ;;  %v981_v3 = vshll.u32 %v606_v16, 16  ;;  %v941_v10 = vrot.slane %v940_v59, 4  ;;  %v1365_v30 = vld [vmem:[%s7220_s27 + $0x30] sm:$0xe] }
  0x91   : > { %6694 = vmatmul.mubr.msk.bf16.gmra.mrb[4].mxu0 %vm314_vm1, %v7101_v55  ;;  %v964_v11 = vor.u32 %v963_v60, %v959_v14  ;;  %v969_v13 = vrot.slane %v967_v61, 5  ;;  %v974_v17 = vrot.slane %v972_v62, 4  ;;  %v985_v20 = vshrl.u32 %v606_v16, 16  ;;  %v1363_v16 = vld [vmem:[%s7220_s27 + $0x28] sm:$0xf] }
  0x92   : > { %v955_v29 = vrot.slane %v954_v2, 4  ;;  %v977_v34 = vrot.slane %v975_v8, 5  ;;  %v983_v19 = vrot.slane %v981_v3, 5  ;;  %6697 = vmatprep.mubr.msk.bf16.mxu0 %vm314_vm1, %v7102_v58  ;;  %v946_v24 = vsel %vm7267_vm4, %v941_v10, %v945_v12  ;;  %v1366_v58 = vld [vmem:[%s7220_s27 + $0x34] sm:$0xf]  ;;  %v7105_v10 = vld [vmem:[%s7220_s27 + $0x6c] sm:$0xff]  }
  0x93   : > { %v965_v25 = vrot.slane %v964_v11, 4  ;;  %v991_v26 = vshll.u32 %v607_v57, 16  ;;  %v5791_v27 = vrot.slane %v1353_v63, 9  ;;  %v5772_v54 = vcombine.low %v936_v1, %v946_v24  ;;  %v1367_v59 = vld [vmem:[%s7220_s27 + $0x38] sm:$0x1] }
  0x94   : > { %v960_v6 = vsel %vm7267_vm4, %v955_v29, %v959_v14  ;;  %v978_v7 = vor.u32 %v977_v34, %v974_v17  ;;  %v987_v33 = vrot.slane %v985_v20, 4  ;;  %v1454_v9 = vrot.slane %v1354_v5, 5  ;;  %v1368_v60 = vld [vmem:[%s7220_s27 + $0x3c] sm:$0xe]  ;;  %v1369_v61 = vld [vmem:[%s7220_s27 + $0x40] sm:$0xf] }
  0x95   : > { %v970_v38 = vsel %vm7267_vm4, %v965_v25, %v969_v13  ;;  %v993_v39 = vrot.slane %v991_v26, 5  ;;  %v1457_v23 = vrot.slane %v1355_v15, 5  ;;  %6544 = vmatmul.mubr.msk.bf16.gmra.mrb[24].mxu1 %vm314_vm1, %v5772_v54  ;;  %v5792_v46 = vrot.slane %v1356_v18, 9  ;;  %v1370_v8 = vld [vmem:[%s7220_s27 + $0x44] sm:$0x1]  ;;  %v7106_v34 = vld [vmem:[%s7220_s27 + $0x78] sm:$0xff]  }
  0x96   : > { %v5773_v41 = vcombine.low %v960_v6, %v970_v38  ;;  %v979_v44 = vrot.slane %v978_v7, 4  ;;  %v988_v45 = vor.u32 %v987_v33, %v983_v19  ;;  %v1455_v48 = vsel %vm7342_vm7, %v5791_v27, %v1454_v9  ;;  %v1371_v3 = vld [vmem:[%s7220_s27 + $0x48] sm:$0xe]  ;;  %v1372_v20 = vld [vmem:[%s7220_s27 + $0x4c] sm:$0xf] }
  0x97   : > { %v1456_v49 = vrot.slane %v1454_v9, 4  ;;  %v1461_v50 = vrot.slane %v1357_v21, 5  ;;  %v1464_v51 = vrot.slane %v1358_v22, 5  ;;  %v5793_v55 = vrot.slane %v1359_v31, 9  ;;  %v1373_v21 = vld [vmem:[%s7220_s27 + $0x50] sm:$0x1] }
  0x98   : > { %6547 = vmatprep.mubr.msk.bf16.mxu1 %vm314_vm1, %v5773_v41  ;;  %v984_v53 = vsel %vm7267_vm4, %v979_v44, %v983_v19  ;;  %v989_v12 = vrot.slane %v988_v45, 4  ;;  %v1468_v56 = vrot.slane %v1360_v32, 5  ;;  %v1471_v57 = vrot.slane %v1361_v36, 5  ;;  %v1374_v27 = vld [vmem:[%s7220_s27 + $0x54] sm:$0xe] }
  0x99   : > { %6698 = vmatmul.mubr.msk.bf16.gmra.mrb[8].mxu0 %vm314_vm1, %v7103_v35  ;;  %v1458_v37 = vsel %vm7342_vm7, %v1456_v49, %v1457_v23  ;;  %v7701_v28 = vsel %vm7342_vm7, %v5792_v46, %v1461_v50  ;;  %v1463_v14 = vrot.slane %v1461_v50, 4  ;;  %v5794_v11 = vrot.slane %v1362_v47, 9  ;;  %v1375_v31 = vld [vmem:[%s7220_s27 + $0x58] sm:$0xf]  ;;  %v1376_v7 = vld [vmem:[%s7220_s27 + $0x5c] sm:$0x1] }
  0x9a   : > { %v994_v62 = vsel %vm7267_vm4, %v989_v12, %v993_v39  ;;  %v5808_v63 = vcombine.low %v1455_v48, %v1458_v37  ;;  %6701 = vmatprep.mubr.msk.bf16.mxu0 %vm314_vm1, %v7104_v40  ;;  %v7712_v1 = vsel %vm7342_vm7, %v5793_v55, %v1468_v56  ;;  %v1470_v2 = vrot.slane %v1468_v56, 4  ;;  %v1377_v39 = vld [vmem:[%s7220_s27 + $0x60] sm:$0xe]  ;;  %v1378_v44 = vld [vmem:[%s7220_s27 + $0x64] sm:$0xf] }
  0x9b   : > { %v5774_v5 = vcombine.low %v984_v53, %v994_v62  ;;  %v7718_v15 = vsel %vm7342_vm7, %v1463_v14, %v1464_v51  ;;  %v1475_v13 = vrot.slane %v1363_v16, 5  ;;  %v1478_v29 = vrot.slane %v1364_v52, 5  ;;  %v1379_v45 = vld [vmem:[%s7220_s27 + $0x68] sm:$0x1]  ;;  %v1380_v46 = vld [vmem:[%s7220_s27 + $0x6c] sm:$0xe] }
  0x9c   : > { %v5809_v17 = vcombine.low %v7701_v28, %v7718_v15  ;;  %v7725_v18 = vsel %vm7342_vm7, %v1470_v2, %v1471_v57  ;;  %v7730_v19 = vsel %vm363_vm0, %v7653_v42, 0  ;;  %v5795_v26 = vrot.slane %v1365_v30, 9  ;;  %v1381_v47 = vld [vmem:[%s7220_s27 + $0x70] sm:$0xf]  ;;  %v1382_v51 = vld [vmem:[%s7220_s27 + $0x74] sm:$0x1] }
  0x9d   : > { %v5810_v22 = vcombine.low %v7712_v1, %v7725_v18  ;;  %v7738_v24 = vsel %vm7342_vm7, %v5794_v11, %v1475_v13  ;;  %v1477_v25 = vrot.slane %v1475_v13, 4  ;;  %6548 = vmatmul.mubr.msk.bf16.gmra.mrb[28].mxu1 %vm314_vm1, %v5774_v5  ;;  %v1482_v32 = vrot.slane %v1366_v58, 5  ;;  %v1383_v14 = vld [vmem:[%s7220_s27 + $0x78] sm:$0xe]  ;;  %v1384_v57 = vld [vmem:[%s7220_s27 + $0x7c] sm:$0xf] }
  0x9e   : > { %v1485_v42 = vrot.slane %v1367_v59, 5  ;;  %v5796_v54 = vrot.slane %v1368_v60, 9  ;;  %v1489_v6 = vrot.slane %v1369_v61, 5  ;;  %6553 = vmatprep.mubr.msk.bf16.mxu1 %vm314_vm1, %v5808_v63  ;;  %v1492_v35 = vrot.slane %v1370_v8, 5  ;;  %v7107_v58 = vld [vmem:[%s7220_s27 + $0x84] sm:$0xff]  }
  0x9f   : > { %v7747_v33 = vsel %vm7342_vm7, %v1477_v25, %v1478_v29  ;;  %v5797_v36 = vrot.slane %v1371_v3, 9  ;;  %v1496_v38 = vrot.slane %v1372_v20, 5  ;;  %v7754_v23 = vsel %vm7342_vm7, %v5795_v26, %v1482_v32  ;;  %v1385_v63 = vld [vmem:[%s7220_s27 + $0x80] sm:$0x1]  ;;  %v1386_v1 = vld [vmem:[%s7220_s27 + $0x84] sm:$0xe] }
  0xa0   : > { %v5811_v9 = vcombine.low %v7738_v24, %v7747_v33  ;;  %v1484_v40 = vrot.slane %v1482_v32, 4  ;;  %v7758_v41 = vsel %vm7342_vm7, %v5796_v54, %v1489_v6  ;;  %v1491_v16 = vrot.slane %v1489_v6, 4  ;;  %v1387_v15 = vld [vmem:[%s7220_s27 + $0x88] sm:$0xf]  ;;  %v6148_v26 = vld [vmem:[%s7220_s27 + $0x18] sm:$0xf] }
  0xa1   : > { %6702 = vmatmul.mubr.msk.bf16.gmra.mrb[12].mxu0 %vm314_vm1, %v7105_v10  ;;  %v7767_v48 = vsel %vm7342_vm7, %v5797_v36, %v1496_v38  ;;  %v1498_v49 = vrot.slane %v1496_v38, 4  ;;  %v1499_v50 = vrot.slane %v1373_v21, 5  ;;  %v5798_v53 = vrot.slane %v1374_v27, 9  ;;  %v7108_v10 = vld [vmem:[%s7220_s27 + $0x90] sm:$0xff]   ;;  %v6149_v32 = vld [vmem:[%s7220_s27 + $0x1c] sm:$0xf] }
  0xa2   : > { %6705 = vmatprep.mubr.msk.bf16.mxu0 %vm314_vm1, %v7106_v34  ;;  %v7773_v52 = vsel %vm7342_vm7, %v1484_v40, %v1485_v42  ;;  %v1503_v12 = vrot.slane %v1375_v31, 5  ;;  %v1506_v55 = vrot.slane %v1376_v7, 5  ;;  %v7779_v30 = vsel %vm7342_vm7, %v1491_v16, %v1492_v35  ;;  %v1388_v34 = vld [vmem:[%s7220_s27 + $0x8c] sm:$0x1]  ;;  %v7130_v42 = vld [vmem:[%s8547_s1 + $0x8] sm:$0x3] }
  0xa3   : > { %v5812_v56 = vcombine.low %v7754_v23, %v7773_v52  ;;  %v7783_v37 = vsel %vm7342_vm7, %v1498_v49, %v1499_v50  ;;  %v5799_v28 = vrot.slane %v1377_v39, 9  ;;  %v5813_v59 = vcombine.low %v7758_v41, %v7779_v30  ;;  %v6293_v36 = vld [vmem:[%s8547_s1 + $0x10] sm:$0x3] }
  0xa4   : > { %v5814_v60 = vcombine.low %v7767_v48, %v7783_v37  ;;  %v7794_v61 = vsel %vm7342_vm7, %v5798_v53, %v1503_v12  ;;  %v1505_v62 = vrot.slane %v1503_v12, 4  ;;  %v1510_v2 = vrot.slane %v1378_v44, 5  ;;  %v6150_v44 = vld [vmem:[%s7220_s27 + $0x20] sm:$0x1]  ;;  %7056 = vmatprep.subr.msk.bf16.mxu0 %vm363_vm0, %v6293_v36 }
  0xa5   : > { %v1513_v8 = vrot.slane %v1379_v45, 5  ;;  %v5800_v3 = vrot.slane %v1380_v46, 9  ;;  %v1517_v5 = vrot.slane %v1381_v47, 5  ;;  %6554 = vmatmul.mubr.msk.bf16.vlgmr.msra.gmra.mrb[0].mxu1 %vm314_vm1, %v5809_v17  ;;  %v1520_v13 = vrot.slane %v1382_v51, 5  ;;  %v6151_v46 = vld [vmem:[%s7220_s27 + $0x24] sm:$0xf] }
  0xa6   : > { %v7803_v11 = vsel %vm7342_vm7, %v1505_v62, %v1506_v55  ;;  %v5801_v18 = vrot.slane %v1383_v14, 9  ;;  %v1524_v29 = vrot.slane %v1384_v57, 5  ;;  %6557 = vmatprep.mubr.msk.bf16.mxu1 %vm314_vm1, %v5810_v22  ;;  %6586 = vmatpush3.bf16.msra.mxu1 %v7730_v19  ;;  %v7812_v17 = vsel %vm7342_vm7, %v5799_v28, %v1510_v2  ;;  %v6152_v28 = vld [vmem:[%s7220_s27 + $0x28] sm:$0xf]  ;;  %v7109_v14 = vld [vmem:[%s7220_s27 + $0x9c] sm:$0xff]  }
  0xa7   : > { %v5815_v20 = vcombine.low %v7794_v61, %v7803_v11  ;;  %v1512_v21 = vrot.slane %v1510_v2, 4  ;;  %v7816_v25 = vsel %vm7342_vm7, %v5800_v3, %v1517_v5  ;;  %v1519_v27 = vrot.slane %v1517_v5, 4  ;;  %7052 = vmatprep.subr.msk.bf16.mxu1 %vm363_vm0, %v7130_v42  ;;  %v6153_v62 = vld [vmem:[%s7220_s27 + $0x2c] sm:$0x1] }
  0xa8   : > { %v7821_v31 = vsel %vm7342_vm7, %v5801_v18, %v1524_v29  ;;  %v1526_v19 = vrot.slane %v1524_v29, 4  ;;  %v1527_v22 = vrot.slane %v1385_v63, 5  ;;  %v5802_v6 = vrot.slane %v1386_v1, 9  ;;  %v7110_v2 = vld [vmem:[%s7220_s27 + $0xa8] sm:$0xff]   ;;  %v1390_v18 = vld [vmem:[%s7220_s27 + $0x94] sm:$0xf] }
  0xa9   : > { %6706 = vmatmul.mubr.msk.bf16.gmra.mrb[16].mxu0 %vm314_vm1, %v7107_v58  ;;  %v7831_v54 = vsel %vm7342_vm7, %v1512_v21, %v1513_v8  ;;  %v1531_v7 = vrot.slane %v1387_v15, 5  ;;  %v1534_v35 = vrot.slane %v1388_v34, 5  ;;  %v7841_v39 = vsel %vm7342_vm7, %v1519_v27, %v1520_v13  ;;  %v1391_v27 = vld [vmem:[%s7220_s27 + $0x98] sm:$0x1] }
  0xaa   : > { %6709 = vmatprep.mubr.msk.bf16.mxu0 %vm314_vm1, %v7108_v10  ;;  %v5816_v38 = vcombine.low %v7812_v17, %v7831_v54  ;;  %v7845_v40 = vsel %vm7342_vm7, %v1526_v19, %v1527_v22  ;;  %v4179_v45 = vshrl.u32 %v6148_v26, 16  ;;  %v5817_v47 = vcombine.low %v7816_v25, %v7841_v39  ;;  %v1389_v10 = vld [vmem:[%s7220_s27 + $0x90] sm:$0xe]  ;;  %v1392_v19 = vld [vmem:[%s7220_s27 + $0x9c] sm:$0xe] }
  0xab   : > { %v5818_v16 = vcombine.low %v7821_v31, %v7845_v40  ;;  %v7856_v49 = vsel %vm7342_vm7, %v5802_v6, %v1531_v7  ;;  %v1533_v50 = vrot.slane %v1531_v7, 4  ;;  %v4182_v53 = vshll.u32 %v6148_v26, 16  ;;  %v6161_v17 = vld [vmem:[%s7220_s27 + $0x4c] sm:$0xf]  ;;  %v6167_v39 = vld [vmem:[%s7220_s27 + $0x64] sm:$0xf] }
  0xac   : > { %v4181_v51 = vrot.slane %v4179_v45, 4  ;;  %v4188_v12 = vshll.u32 %v6149_v32, 16  ;;  %v4192_v55 = vshrl.u32 %v6149_v32, 16  ;;  %v4198_v58 = vshll.u32 %v6150_v44, 16 }
  0xad   : > { %v7862_v57 = vsel %vm7342_vm7, %v1533_v50, %v1534_v35  ;;  %v4203_v63 = vshrl.u32 %v6151_v46, 16  ;;  %v4206_v1 = vshll.u32 %v6151_v46, 16  ;;  %6558 = vmatmul.mubr.msk.bf16.gmra.mrb[4].mxu1 %vm314_vm1, %v5811_v9  ;;  %v4184_v3 = vrot.slane %v4182_v53, 5  ;;  %v1394_v50 = vld [vmem:[%s7220_s27 + $0xa4] sm:$0x1] }
  0xae   : > { %v5819_v8 = vcombine.low %v7856_v49, %v7862_v57  ;;  %v4190_v5 = vrot.slane %v4188_v12, 5  ;;  %v4194_v15 = vrot.slane %v4192_v55, 4  ;;  %6561 = vmatprep.mubr.msk.bf16.mxu1 %vm314_vm1, %v5812_v56  ;;  %v4200_v13 = vrot.slane %v4198_v58, 5  ;;  %v1393_v56 = vld [vmem:[%s7220_s27 + $0xa0] sm:$0xf]  ;;  %v7111_v58 = vld [vmem:[%s7220_s27 + $0xb4] sm:$0xff]  }
  0xaf   : > { %v4205_v24 = vrot.slane %v4203_v63, 4  ;;  %v4208_v33 = vrot.slane %v4206_v1, 5  ;;  %v4212_v9 = vshll.u32 %v6152_v28, 16  ;;  %v4185_v29 = vor.u32 %v4184_v3, %v4181_v51  ;;  %v7112_v3 = vld [vmem:[%s7220_s27 + $0xc0] sm:$0xff]  }
  0xb0   : > { %v4195_v34 = vor.u32 %v4194_v15, %v4190_v5  ;;  %v4216_v21 = vshrl.u32 %v6152_v28, 16  ;;  %v4222_v26 = vshll.u32 %v6153_v62, 16  ;;  %v7882_v23 = vsel %vm363_vm0, %v6293_v36, 0  ;;  %v6154_v28 = vld [vmem:[%s7220_s27 + $0x30] sm:$0xf] }
  0xb1   : > { %6710 = vmatmul.mubr.msk.bf16.gmra.mrb[20].mxu0 %vm314_vm1, %v7109_v14  ;;  %v4209_v22 = vor.u32 %v4208_v33, %v4205_v24  ;;  %v4214_v32 = vrot.slane %v4212_v9, 5  ;;  %v5803_v52 = vrot.slane %v1389_v10, 9  ;;  %v4186_v42 = vrot.slane %v4185_v29, 4  ;;  %v6155_v14 = vld [vmem:[%s7220_s27 + $0x34] sm:$0xf] }
  0xb2   : > { %6713 = vmatprep.mubr.msk.bf16.mxu0 %vm314_vm1, %v7110_v2  ;;  %v4196_v6 = vrot.slane %v4195_v34, 4  ;;  %v4218_v7 = vrot.slane %v4216_v21, 4  ;;  %v4224_v35 = vrot.slane %v4222_v26, 5  ;;  %v1538_v45 = vrot.slane %v1390_v18, 5  ;;  %v6156_v24 = vld [vmem:[%s7220_s27 + $0x38] sm:$0x1] }
  0xb3   : > { %v4210_v44 = vrot.slane %v4209_v22, 4  ;;  %v1541_v46 = vrot.slane %v1391_v27, 5  ;;  %v5804_v51 = vrot.slane %v1392_v19, 9  ;;  %v4191_v36 = vsel %vm7267_vm4, %v4186_v42, %v4190_v5  ;;  %v6157_v9 = vld [vmem:[%s7220_s27 + $0x3c] sm:$0xf] }
  0xb4   : > { %v4201_v53 = vsel %vm7267_vm4, %v4196_v6, %v4200_v13  ;;  %v4219_v12 = vor.u32 %v4218_v7, %v4214_v32  ;;  %v1545_v55 = vrot.slane %v1393_v56, 5  ;;  %v7900_v1 = vsel %vm7342_vm7, %v5803_v52, %v1538_v45  ;;  %v6159_v34 = vld [vmem:[%s7220_s27 + $0x44] sm:$0x1]  ;;  %v1395_v22 = vld [vmem:[%s7220_s27 + $0xa8] sm:$0xe] }
  0xb5   : > { %v7894_v62 = vcombine.low %v4191_v36, %v4201_v53  ;;  %v4215_v63 = vsel %vm7267_vm4, %v4210_v44, %v4214_v32  ;;  %v1540_v2 = vrot.slane %v1538_v45, 4  ;;  %6562 = vmatmul.mubr.msk.bf16.gmra.mrb[8].mxu1 %vm314_vm1, %v5813_v59  ;;  %v1548_v13 = vrot.slane %v1394_v50, 5  ;;  %v1396_v32 = vld [vmem:[%s7220_s27 + $0xac] sm:$0xf]  ;;  %v1397_v7 = vld [vmem:[%s7220_s27 + $0xb0] sm:$0x1] }
  0xb6   : > { %v4220_v5 = vrot.slane %v4219_v12, 4  ;;  %v7909_v15 = vsel %vm7342_vm7, %v5804_v51, %v1545_v55  ;;  %v1547_v10 = vrot.slane %v1545_v55, 4  ;;  %6565 = vmatprep.mubr.msk.bf16.mxu1 %vm314_vm1, %v5814_v60  ;;  %v4227_v30 = vshrl.u32 %v6154_v28, 16  ;;  %v6158_v60 = vld [vmem:[%s7220_s27 + $0x40] sm:$0xf]  ;;  %v7113_v51 = vld [vmem:[%s7220_s27 + $0xcc] sm:$0xff]  }
  0xb7   : > { %v7918_v41 = vsel %vm7342_vm7, %v1540_v2, %v1541_v46  ;;  %v4230_v59 = vshll.u32 %v6154_v28, 16  ;;  %v4236_v33 = vshll.u32 %v6155_v14, 16  ;;  %v4240_v37 = vshrl.u32 %v6155_v14, 16  ;;  %v1398_v50 = vld [vmem:[%s7220_s27 + $0xb4] sm:$0xe] }
  0xb8   : > { %v4225_v18 = vsel %vm7267_vm4, %v4220_v5, %v4224_v35  ;;  %v5820_v29 = vcombine.low %v7900_v1, %v7918_v41  ;;  %v7927_v48 = vsel %vm7342_vm7, %v1547_v10, %v1548_v13  ;;  %v4229_v27 = vrot.slane %v4227_v30, 4  ;;  %v1399_v28 = vld [vmem:[%s7220_s27 + $0xb8] sm:$0xf]  ;;  %v6160_v5 = vld [vmem:[%s7220_s27 + $0x48] sm:$0xf] }
  0xb9   : > { %6714 = vmatmul.mubr.msk.bf16.gmra.mrb[24].mxu0 %vm314_vm1, %v7111_v58  ;;  %v7932_v21 = vcombine.low %v4215_v63, %v4225_v18  ;;  %v5821_v26 = vcombine.low %v7909_v15, %v7927_v48  ;;  %v4232_v19 = vrot.slane %v4230_v59, 5  ;;  %v4238_v52 = vrot.slane %v4236_v33, 5 }
  0xba   : > { %6717 = vmatprep.mubr.msk.bf16.mxu0 %vm314_vm1, %v7112_v3  ;;  %v4242_v56 = vrot.slane %v4240_v37, 4  ;;  %v4246_v42 = vshll.u32 %v6156_v24, 16  ;;  %v4251_v6 = vshrl.u32 %v6157_v9, 16  ;;  %v4254_v44 = vshll.u32 %v6157_v9, 16  ;;  %v1400_v3 = vld [vmem:[%s7220_s27 + $0xbc] sm:$0x1] }
  0xbb   : > { %v4233_v35 = vor.u32 %v4232_v19, %v4229_v27  ;;  %v4260_v45 = vshll.u32 %v6158_v60, 16  ;;  %v4264_v46 = vshrl.u32 %v6158_v60, 16  ;;  %v4270_v55 = vshll.u32 %v6159_v34, 16  ;;  %v6162_v27 = vld [vmem:[%s7220_s27 + $0x50] sm:$0x1] }
  0xbc   : > { %v4243_v36 = vor.u32 %v4242_v56, %v4238_v52  ;;  %v4248_v53 = vrot.slane %v4246_v42, 5  ;;  %v4253_v12 = vrot.slane %v4251_v6, 4  ;;  %v4256_v58 = vrot.slane %v4254_v44, 5  ;;  %v6163_v56 = vld [vmem:[%s7220_s27 + $0x54] sm:$0xf] }
  0xbd   : > { %v4234_v14 = vrot.slane %v4233_v35, 4  ;;  %v4262_v63 = vrot.slane %v4260_v45, 5  ;;  %v4266_v2 = vrot.slane %v4264_v46, 4  ;;  %6566 = vmatmul.mubr.msk.bf16.gmra.mrb[12].mxu1 %vm314_vm1, %v5815_v20  ;;  %v4272_v13 = vrot.slane %v4270_v55, 5  ;;  %v6164_v35 = vld [vmem:[%s7220_s27 + $0x58] sm:$0xf] }
  0xbe   : > { %v4244_v10 = vrot.slane %v4243_v36, 4  ;;  %v5805_v24 = vrot.slane %v1395_v22, 9  ;;  %v1552_v30 = vrot.slane %v1396_v32, 5  ;;  %6569 = vmatprep.mubr.msk.bf16.mxu1 %vm314_vm1, %v5816_v38  ;;  %v4257_v33 = vor.u32 %v4256_v58, %v4253_v12  ;;  %v6166_v36 = vld [vmem:[%s7220_s27 + $0x60] sm:$0xf] }
  0xbf   : > { %v4239_v59 = vsel %vm7267_vm4, %v4234_v14, %v4238_v52  ;;  %v4267_v9 = vor.u32 %v4266_v2, %v4262_v63  ;;  %v1555_v18 = vrot.slane %v1397_v7, 5  ;;  %v5806_v37 = vrot.slane %v1398_v50, 9 }
  0xc0   : > { %v4249_v61 = vsel %vm7267_vm4, %v4244_v10, %v4248_v53  ;;  %v7959_v11 = vsel %vm7342_vm7, %v5805_v24, %v1552_v30  ;;  %v1554_v20 = vrot.slane %v1552_v30, 4  ;;  %v4258_v38 = vrot.slane %v4257_v33, 4 }
  0xc1   : > { %6718 = vmatmul.mubr.msk.bf16.gmra.mrb[28].mxu0 %vm314_vm1, %v7113_v51  ;;  %v6199_v54 = vcombine.low %v4239_v59, %v4249_v61  ;;  %v4268_v60 = vrot.slane %v4267_v9, 4  ;;  %v1559_v34 = vrot.slane %v1399_v28, 5  ;;  %v1562_v22 = vrot.slane %v1400_v3, 5  ;;  %v6165_v51 = vld [vmem:[%s7220_s27 + $0x5c] sm:$0x1] }
  0xc2   : > { %6723 = vmatprep.mubr.msk.bf16.mxu0 %vm314_vm1, %v7894_v62  ;;  %v7968_v19 = vsel %vm7342_vm7, %v1554_v20, %v1555_v18  ;;  %v4275_v32 = vshrl.u32 %v6160_v5, 16  ;;  %v4278_v52 = vshll.u32 %v6160_v5, 16  ;;  %v4263_v42 = vsel %vm7267_vm4, %v4258_v38, %v4262_v63  ;;  %v6168_v18 = vld [vmem:[%s7220_s27 + $0x68] sm:$0x1] }
  0xc3   : > { %v4273_v6 = vsel %vm7267_vm4, %v4268_v60, %v4272_v13  ;;  %v5822_v7 = vcombine.low %v7959_v11, %v7968_v19  ;;  %v7979_v62 = vsel %vm7342_vm7, %v5806_v37, %v1559_v34  ;;  %v1561_v45 = vrot.slane %v1559_v34, 4  ;;  %v6169_v37 = vld [vmem:[%s7220_s27 + $0x6c] sm:$0xf]  ;;  %v6170_v34 = vld [vmem:[%s7220_s27 + $0x70] sm:$0xf] }
  0xc4   : > { %v7982_v44 = vcombine.low %v4263_v42, %v4273_v6  ;;  %v4277_v46 = vrot.slane %v4275_v32, 4  ;;  %v4280_v50 = vrot.slane %v4278_v52, 5  ;;  %v4284_v53 = vshll.u32 %v6161_v17, 16 }
  0xc5   : > { %v4288_v12 = vshrl.u32 %v6161_v17, 16  ;;  %v4294_v55 = vshll.u32 %v6162_v27, 16  ;;  %v4299_v28 = vshrl.u32 %v6163_v56, 16  ;;  %6570 = vmatmul.mubr.msk.bf16.gmra.mrb[16].mxu1 %vm314_vm1, %v5817_v47  ;;  %v7992_v14 = vsel %vm7342_vm7, %v1561_v45, %v1562_v22 }
  0xc6   : > { %v4281_v58 = vor.u32 %v4280_v50, %v4277_v46  ;;  %v4302_v63 = vshll.u32 %v6163_v56, 16  ;;  %v4308_v2 = vshll.u32 %v6164_v35, 16  ;;  %6573 = vmatprep.mubr.msk.bf16.mxu1 %vm314_vm1, %v5818_v16  ;;  %v5823_v3 = vcombine.low %v7979_v62, %v7992_v14 }
  0xc7   : > { %v4286_v5 = vrot.slane %v4284_v53, 5  ;;  %v4290_v10 = vrot.slane %v4288_v12, 4  ;;  %v4296_v25 = vrot.slane %v4294_v55, 5  ;;  %v4301_v13 = vrot.slane %v4299_v28, 4 }
  0xc8   : > { %v4282_v47 = vrot.slane %v4281_v58, 4  ;;  %v4304_v24 = vrot.slane %v4302_v63, 5  ;;  %v4310_v30 = vrot.slane %v4308_v2, 5  ;;  %v4312_v31 = vshrl.u32 %v6164_v35, 16 }
  0xc9   : > { %6724 = vmatmul.mubr.msk.bf16.vlgmr.msra.gmra.mrb[0].mxu0 %vm314_vm1, %v7932_v21  ;;  %v4291_v59 = vor.u32 %v4290_v10, %v4286_v5  ;;  %v4318_v40 = vshll.u32 %v6165_v51, 16  ;;  %v4323_v16 = vshrl.u32 %v6166_v36, 16  ;;  %v4326_v61 = vshll.u32 %v6166_v36, 16  ;;  %v6172_v51 = vld [vmem:[%s7220_s27 + $0x78] sm:$0xf] }
  0xca   : > { %6756 = vmatpush3.bf16.msra.mxu0 %v7882_v23  ;;  %6727 = vmatprep.mubr.msk.bf16.mxu0 %vm314_vm1, %v6199_v54  ;;  %v4287_v33 = vsel %vm7267_vm4, %v4282_v47, %v4286_v5  ;;  %v4305_v9 = vor.u32 %v4304_v24, %v4301_v13  ;;  %v4332_v20 = vshll.u32 %v6167_v39, 16  ;;  %v4314_v21 = vrot.slane %v4312_v31, 4  ;;  %v6171_v54 = vld [vmem:[%s7220_s27 + $0x74] sm:$0x1]  ;;  %v6175_v47 = vld [vmem:[%s7220_s27 + $0x84] sm:$0xf] }
  0xcb   : > { %v4292_v17 = vrot.slane %v4291_v59, 4  ;;  %v4320_v38 = vrot.slane %v4318_v40, 5  ;;  %v4325_v60 = vrot.slane %v4323_v16, 4  ;;  %v4328_v22 = vrot.slane %v4326_v61, 5  ;;  %v6176_v59 = vld [vmem:[%s7220_s27 + $0x88] sm:$0xf] }
  0xcc   : > { %v4306_v27 = vrot.slane %v4305_v9, 4  ;;  %v4334_v23 = vrot.slane %v4332_v20, 5  ;;  %v4336_v32 = vshrl.u32 %v6167_v39, 16  ;;  %v4315_v56 = vor.u32 %v4314_v21, %v4310_v30  ;;  %v6174_v39 = vld [vmem:[%s7220_s27 + $0x80] sm:$0x1] }
  0xcd   : > { %v4297_v52 = vsel %vm7267_vm4, %v4292_v17, %v4296_v25  ;;  %v4342_v42 = vshll.u32 %v6168_v18, 16  ;;  %v4347_v6 = vshrl.u32 %v6169_v37, 16  ;;  %6574 = vmatmul.mubr.msk.bf16.gmra.mrb[20].mxu1 %vm314_vm1, %v5819_v8  ;;  %v4329_v46 = vor.u32 %v4328_v22, %v4325_v60 }
  0xce   : > { %v6201_v35 = vcombine.low %v4287_v33, %v4297_v52  ;;  %v4311_v45 = vsel %vm7267_vm4, %v4306_v27, %v4310_v30  ;;  %v4338_v50 = vrot.slane %v4336_v32, 4  ;;  %6577 = vmatprep.mubr.msk.bf16.mxu1 %vm314_vm1, %v5820_v29  ;;  %v4316_v36 = vrot.slane %v4315_v56, 4  ;;  %v6173_v29 = vld [vmem:[%s7220_s27 + $0x7c] sm:$0xf]  ;;  %v6179_v52 = vld [vmem:[%s7220_s27 + $0x94] sm:$0xf] }
  0xcf   : > { %v4344_v53 = vrot.slane %v4342_v42, 5  ;;  %v4349_v12 = vrot.slane %v4347_v6, 4  ;;  %v4350_v55 = vshll.u32 %v6169_v37, 16  ;;  %v4330_v49 = vrot.slane %v4329_v46, 4  ;;  %v6180_v42 = vld [vmem:[%s7220_s27 + $0x98] sm:$0x1] }
  0xd0   : > { %v4339_v57 = vor.u32 %v4338_v50, %v4334_v23  ;;  %v4356_v8 = vshll.u32 %v6170_v34, 16  ;;  %v4360_v28 = vshrl.u32 %v6170_v34, 16  ;;  %v4321_v58 = vsel %vm7267_vm4, %v4316_v36, %v4320_v38  ;;  %v6177_v38 = vld [vmem:[%s7220_s27 + $0x8c] sm:$0x1]  ;;  %v6181_v50 = vld [vmem:[%s7220_s27 + $0x9c] sm:$0xf] }
  0xd1   : > { %6728 = vmatmul.mubr.msk.bf16.gmra.mrb[4].mxu0 %vm314_vm1, %v7982_v44  ;;  %v4352_v1 = vrot.slane %v4350_v55, 5  ;;  %v4366_v41 = vshll.u32 %v6171_v54, 16  ;;  %v4371_v63 = vshrl.u32 %v6172_v51, 16  ;;  %v6202_v2 = vcombine.low %v4311_v45, %v4321_v58  ;;  %v6178_v54 = vld [vmem:[%s7220_s27 + $0x90] sm:$0xf] }
  0xd2   : > { %6731 = vmatprep.mubr.msk.bf16.mxu0 %vm314_vm1, %v6201_v35  ;;  %v4335_v5 = vsel %vm7267_vm4, %v4330_v49, %v4334_v23  ;;  %v4340_v10 = vrot.slane %v4339_v57, 4  ;;  %v4358_v25 = vrot.slane %v4356_v8, 5  ;;  %v4362_v44 = vrot.slane %v4360_v28, 4 }
  0xd3   : > { %v4353_v13 = vor.u32 %v4352_v1, %v4349_v12  ;;  %v4368_v24 = vrot.slane %v4366_v41, 5  ;;  %v4373_v30 = vrot.slane %v4371_v63, 4  ;;  %v4374_v40 = vshll.u32 %v6172_v51, 16  ;;  %v7114_v51 = vld [vmem:[%s7220_s27 + $0xc] sm:$0xff]   ;;  %v6182_v63 = vld [vmem:[%s7220_s27 + $0xa0] sm:$0xf] }
  0xd4   : > { %v4345_v31 = vsel %vm7267_vm4, %v4340_v10, %v4344_v53  ;;  %v4380_v16 = vshll.u32 %v6173_v29, 16  ;;  %v4384_v33 = vshrl.u32 %v6173_v29, 16  ;;  %v4363_v61 = vor.u32 %v4362_v44, %v4358_v25 }
  0xd5   : > { %v6203_v9 = vcombine.low %v4335_v5, %v4345_v31  ;;  %v4354_v18 = vrot.slane %v4353_v13, 4  ;;  %v4390_v20 = vshll.u32 %v6174_v39, 16  ;;  %6578 = vmatmul.mubr.msk.bf16.gmra.mrb[24].mxu1 %vm314_vm1, %v5821_v26  ;;  %v4376_v37 = vrot.slane %v4374_v40, 5  ;;  %v6183_v13 = vld [vmem:[%s7220_s27 + $0xa4] sm:$0x1]  ;;  %v7115_v31 = vld [vmem:[%s7220_s27 + $0x18] sm:$0xff]  }
  0xd6   : > { %v4382_v17 = vrot.slane %v4380_v16, 5  ;;  %v4386_v21 = vrot.slane %v4384_v33, 4  ;;  %v4395_v60 = vshrl.u32 %v6175_v47, 16  ;;  %6581 = vmatprep.mubr.msk.bf16.mxu1 %vm314_vm1, %v5822_v7  ;;  %v4364_v27 = vrot.slane %v4363_v61, 4 }
  0xd7   : > { %v4359_v34 = vsel %vm7267_vm4, %v4354_v18, %v4358_v25  ;;  %v4392_v15 = vrot.slane %v4390_v20, 5  ;;  %v4398_v48 = vshll.u32 %v6175_v47, 16  ;;  %v4377_v22 = vor.u32 %v4376_v37, %v4373_v30  ;;  %v6185_v18 = vld [vmem:[%s7220_s27 + $0xac] sm:$0xf] }
  0xd8   : > { %v4387_v26 = vor.u32 %v4386_v21, %v4382_v17  ;;  %v4397_v23 = vrot.slane %v4395_v60, 4  ;;  %v4404_v32 = vshll.u32 %v6176_v59, 16  ;;  %v4369_v11 = vsel %vm7267_vm4, %v4364_v27, %v4368_v24  ;;  %v6186_v21 = vld [vmem:[%s7220_s27 + $0xb0] sm:$0x1] }
  0xd9   : > { %6732 = vmatmul.mubr.msk.bf16.gmra.mrb[8].mxu0 %vm314_vm1, %v6202_v2  ;;  %v4400_v19 = vrot.slane %v4398_v48, 5  ;;  %v4408_v7 = vshrl.u32 %v6176_v59, 16  ;;  %v4414_v56 = vshll.u32 %v6177_v38, 16  ;;  %v6204_v6 = vcombine.low %v4359_v34, %v4369_v11  ;;  %v6184_v59 = vld [vmem:[%s7220_s27 + $0xa8] sm:$0xf] }
  0xda   : > { %6735 = vmatprep.mubr.msk.bf16.mxu0 %vm314_vm1, %v6203_v9  ;;  %v4378_v35 = vrot.slane %v4377_v22, 4  ;;  %v4388_v45 = vrot.slane %v4387_v26, 4  ;;  %v4406_v46 = vrot.slane %v4404_v32, 5  ;;  %v4419_v55 = vshrl.u32 %v6178_v54, 16  ;;  %v7116_v38 = vld [vmem:[%s7220_s27 + $0x24] sm:$0xff]  }
  0xdb   : > { %v4401_v36 = vor.u32 %v4400_v19, %v4397_v23  ;;  %v4410_v53 = vrot.slane %v4408_v7, 4  ;;  %v4416_v12 = vrot.slane %v4414_v56, 5  ;;  %v4422_v8 = vshll.u32 %v6178_v54, 16  ;;  %v6187_v48 = vld [vmem:[%s7220_s27 + $0xb4] sm:$0xf] }
  0xdc   : > { %v4383_v49 = vsel %vm7267_vm4, %v4378_v35, %v4382_v17  ;;  %v4393_v57 = vsel %vm7267_vm4, %v4388_v45, %v4392_v15  ;;  %v4428_v28 = vshll.u32 %v6179_v52, 16  ;;  %v4421_v29 = vrot.slane %v4419_v55, 4  ;;  %v6188_v35 = vld [vmem:[%s7220_s27 + $0xb8] sm:$0xf]  ;;  %v6189_v55 = vld [vmem:[%s7220_s27 + $0xbc] sm:$0x1] }
  0xdd   : > { %v6205_v58 = vcombine.low %v4383_v49, %v4393_v57  ;;  %v4402_v1 = vrot.slane %v4401_v36, 4  ;;  %v4411_v41 = vor.u32 %v4410_v53, %v4406_v46  ;;  %6582 = vmatmul.mubr.msk.bf16.gmra.mrb[28].mxu1 %vm314_vm1, %v5823_v3  ;;  %v4424_v2 = vrot.slane %v4422_v8, 5  ;;  %v7117_v36 = vld [vmem:[%s7220_s27 + $0x30] sm:$0xff]   ;;  %v7118_v8 = vld [vmem:[%s7220_s27 + $0x3c] sm:$0xff]  }
  0xde   : > { %v4430_v5 = vrot.slane %v4428_v28, 5  ;;  %v4432_v10 = vshrl.u32 %v6179_v52, 16  ;;  %v4438_v25 = vshll.u32 %v6180_v42, 16  ;;  %6587 = vmatprep.mubr.msk.bf16.mxu1 %vm314_vm1, %v7114_v51  ;;  %v4443_v44 = vshrl.u32 %v6181_v50, 16 }
  0xdf   : > { %v4407_v39 = vsel %vm7267_vm4, %v4402_v1, %v4406_v46  ;;  %v4412_v47 = vrot.slane %v4411_v41, 4  ;;  %v4446_v24 = vshll.u32 %v6181_v50, 16  ;;  %v4425_v30 = vor.u32 %v4424_v2, %v4421_v29  ;;  %v6190_v41 = vld [vmem:[%s7220_s27 + $0xc0] sm:$0xf] }
  0xe0   : > { %v4434_v62 = vrot.slane %v4432_v10, 4  ;;  %v4440_v14 = vrot.slane %v4438_v25, 5  ;;  %v4452_v3 = vshll.u32 %v6182_v63, 16  ;;  %v4445_v16 = vrot.slane %v4443_v44, 4  ;;  %v6191_v10 = vld [vmem:[%s7220_s27 + $0xc4] sm:$0xf] }
  0xe1   : > { %6736 = vmatmul.mubr.msk.bf16.gmra.mrb[12].mxu0 %vm314_vm1, %v6204_v6  ;;  %v4417_v40 = vsel %vm7267_vm4, %v4412_v47, %v4416_v12  ;;  %v4448_v33 = vrot.slane %v4446_v24, 5  ;;  %v4456_v9 = vshrl.u32 %v6182_v63, 16  ;;  %v4426_v20 = vrot.slane %v4425_v30, 4  ;;  %v6192_v44 = vld [vmem:[%s7220_s27 + $0xc8] sm:$0x1] }
  0xe2   : > { %6739 = vmatprep.mubr.msk.bf16.mxu0 %vm314_vm1, %v6205_v58  ;;  %v6206_v61 = vcombine.low %v4407_v39, %v4417_v40  ;;  %v4435_v37 = vor.u32 %v4434_v62, %v4430_v5  ;;  %v4454_v17 = vrot.slane %v4452_v3, 5  ;;  %v4462_v27 = vshll.u32 %v6183_v13, 16 }
  0xe3   : > { %v4449_v60 = vor.u32 %v4448_v33, %v4445_v16  ;;  %v4458_v34 = vrot.slane %v4456_v9, 4  ;;  %v4467_v15 = vshrl.u32 %v6184_v59, 16  ;;  %v4431_v22 = vsel %vm7267_vm4, %v4426_v20, %v4430_v5  ;;  %v6193_v16 = vld [vmem:[%s7220_s27 + $0xcc] sm:$0xf]  ;;  %v6194_v20 = vld [vmem:[%s7220_s27 + $0xd0] sm:$0xf] }
  0xe4   : > { %v4436_v26 = vrot.slane %v4435_v37, 4  ;;  %v4470_v23 = vshll.u32 %v6184_v59, 16  ;;  %v4476_v32 = vshll.u32 %v6185_v18, 16  ;;  %v4464_v11 = vrot.slane %v4462_v27, 5 }
  0xe5   : > { %v4450_v54 = vrot.slane %v4449_v60, 4  ;;  %v4459_v52 = vor.u32 %v4458_v34, %v4454_v17  ;;  %v4469_v19 = vrot.slane %v4467_v15, 4  ;;  %6588 = vmatmul.mubr.msk.bf16.vlgmr.msra.gmra.mrb[0].mxu1 %vm314_vm1, %v7115_v31  ;;  %v4480_v6 = vshrl.u32 %v6185_v18, 16  ;;  %v6195_v60 = vld [vmem:[%s7220_s27 + $0xd4] sm:$0x1]  ;;  %v7119_v34 = vld [vmem:[%s7220_s27 + $0x48] sm:$0xff]  }
  0xe6   : > { %v4441_v7 = vsel %vm7267_vm4, %v4436_v26, %v4440_v14  ;;  %v4472_v56 = vrot.slane %v4470_v23, 5  ;;  %v4478_v42 = vrot.slane %v4476_v32, 5  ;;  %6591 = vmatprep.mubr.msk.bf16.mxu1 %vm314_vm1, %v7116_v38  ;;  %6790 = vmatpush3.bf16.msra.mxu1 %v7208_v4  ;;  %v4486_v51 = vshll.u32 %v6186_v21, 16  ;;  %v6229_v26 = vld [vmem:[%s7220_s27 + $0x18] sm:$0xe] }
  0xe7   : > { %v6207_v45 = vcombine.low %v4431_v22, %v4441_v7  ;;  %v4455_v46 = vsel %vm7267_vm4, %v4450_v54, %v4454_v17  ;;  %v4460_v50 = vrot.slane %v4459_v52, 4  ;;  %v4482_v12 = vrot.slane %v4480_v6, 4  ;;  %v6230_v23 = vld [vmem:[%s7220_s27 + $0x1c] sm:$0xf]  ;;  %v7120_v32 = vld [vmem:[%s7220_s27 + $0x54] sm:$0xff]  }
  0xe8   : > { %v4473_v53 = vor.u32 %v4472_v56, %v4469_v19  ;;  %v4491_v49 = vshrl.u32 %v6187_v48, 16  ;;  %v4494_v57 = vshll.u32 %v6187_v48, 16  ;;  %v4488_v28 = vrot.slane %v4486_v51, 5  ;;  %v6231_v7 = vld [vmem:[%s7220_s27 + $0x20] sm:$0x1] }
  0xe9   : > { %6740 = vmatmul.mubr.msk.bf16.gmra.mrb[16].mxu0 %vm314_vm1, %v6206_v61  ;;  %v4465_v4 = vsel %vm7267_vm4, %v4460_v50, %v4464_v11  ;;  %v4500_v58 = vshll.u32 %v6188_v35, 16  ;;  %v4504_v1 = vshrl.u32 %v6188_v35, 16  ;;  %v4483_v2 = vor.u32 %v4482_v12, %v4478_v42  ;;  %v6233_v56 = vld [vmem:[%s7220_s27 + $0x28] sm:$0xf] }
  0xea   : > { %6743 = vmatprep.mubr.msk.bf16.mxu0 %vm314_vm1, %v6207_v45  ;;  %v6208_v29 = vcombine.low %v4455_v46, %v4465_v4  ;;  %v4474_v63 = vrot.slane %v4473_v53, 4  ;;  %v4493_v5 = vrot.slane %v4491_v49, 4  ;;  %v4496_v25 = vrot.slane %v4494_v57, 5  ;;  %v6232_v45 = vld [vmem:[%s7220_s27 + $0x24] sm:$0xe] }
  0xeb   : > { %v4502_v39 = vrot.slane %v4500_v58, 5  ;;  %v4506_v47 = vrot.slane %v4504_v1, 4  ;;  %v4510_v13 = vshll.u32 %v6189_v55, 16  ;;  %v4484_v30 = vrot.slane %v4483_v2, 4  ;;  %v6234_v57 = vld [vmem:[%s7220_s27 + $0x2c] sm:$0x1] }
  0xec   : > { %v4479_v24 = vsel %vm7267_vm4, %v4474_v63, %v4478_v42  ;;  %v4515_v62 = vshrl.u32 %v6190_v41, 16  ;;  %v4518_v14 = vshll.u32 %v6190_v41, 16  ;;  %v4497_v3 = vor.u32 %v4496_v25, %v4493_v5  ;;  %v6235_v1 = vld [vmem:[%s7220_s27 + $0x30] sm:$0xe]  ;;  %v6236_v5 = vld [vmem:[%s7220_s27 + $0x34] sm:$0xf] }
  0xed   : > { %v4507_v59 = vor.u32 %v4506_v47, %v4502_v39  ;;  %v4512_v31 = vrot.slane %v4510_v13, 5  ;;  %v4524_v40 = vshll.u32 %v6191_v10, 16  ;;  %6592 = vmatmul.mubr.msk.bf16.gmra.mrb[4].mxu1 %vm314_vm1, %v7117_v36  ;;  %v4489_v33 = vsel %vm7267_vm4, %v4484_v30, %v4488_v28  ;;  %v6237_v13 = vld [vmem:[%s7220_s27 + $0x38] sm:$0x1] }
  0xee   : > { %v4517_v9 = vrot.slane %v4515_v62, 4  ;;  %v4520_v18 = vrot.slane %v4518_v14, 5  ;;  %v4528_v61 = vshrl.u32 %v6191_v10, 16  ;;  %6595 = vmatprep.mubr.msk.bf16.mxu1 %vm314_vm1, %v7118_v8  ;;  %v6209_v37 = vcombine.low %v4479_v24, %v4489_v33  ;;  %v6238_v62 = vld [vmem:[%s7220_s27 + $0x3c] sm:$0xe]  ;;  %v7121_v14 = vld [vmem:[%s7220_s27 + $0x60] sm:$0xff]  }
  0xef   : > { %v4498_v17 = vrot.slane %v4497_v3, 4  ;;  %v4508_v21 = vrot.slane %v4507_v59, 4  ;;  %v4526_v38 = vrot.slane %v4524_v40, 5  ;;  %v4534_v48 = vshll.u32 %v6192_v44, 16  ;;  %v7122_v33 = vld [vmem:[%s7220_s27 + $0x6c] sm:$0xff]  }
  0xf0   : > { %v4521_v27 = vor.u32 %v4520_v18, %v4517_v9  ;;  %v4530_v15 = vrot.slane %v4528_v61, 4  ;;  %v4539_v22 = vshrl.u32 %v6193_v16, 16  ;;  %v4542_v11 = vshll.u32 %v6193_v16, 16  ;;  %v6239_v16 = vld [vmem:[%s7220_s27 + $0x40] sm:$0xf] }
  0xf1   : > { %6744 = vmatmul.mubr.msk.bf16.gmra.mrb[20].mxu0 %vm314_vm1, %v6208_v29  ;;  %v4503_v54 = vsel %vm7267_vm4, %v4498_v17, %v4502_v39  ;;  %v4513_v52 = vsel %vm7267_vm4, %v4508_v21, %v4512_v31  ;;  %v4548_v19 = vshll.u32 %v6194_v20, 16  ;;  %v4536_v35 = vrot.slane %v4534_v48, 5 }
  0xf2   : > { %6747 = vmatprep.mubr.msk.bf16.mxu0 %vm314_vm1, %v6209_v37  ;;  %v4522_v42 = vrot.slane %v4521_v27, 4  ;;  %v4531_v6 = vor.u32 %v4530_v15, %v4526_v38  ;;  %v4541_v46 = vrot.slane %v4539_v22, 4  ;;  %v4544_v50 = vrot.slane %v4542_v11, 5  ;;  %v6242_v37 = vld [vmem:[%s7220_s27 + $0x4c] sm:$0xf] }
  0xf3   : > { %v4550_v51 = vrot.slane %v4548_v19, 5  ;;  %v4552_v36 = vshrl.u32 %v6194_v20, 16  ;;  %v6210_v53 = vcombine.low %v4503_v54, %v4513_v52  ;;  %v4558_v49 = vshll.u32 %v6195_v60, 16  ;;  %v6241_v20 = vld [vmem:[%s7220_s27 + $0x48] sm:$0xe] }
  0xf4   : > { %v4527_v12 = vsel %vm7267_vm4, %v4522_v42, %v4526_v38  ;;  %v4532_v55 = vrot.slane %v4531_v6, 4  ;;  %v4545_v8 = vor.u32 %v4544_v50, %v4541_v46  ;;  %v6277_v28 = vrot.slane %v6229_v26, 9  ;;  %v6240_v60 = vld [vmem:[%s7220_s27 + $0x44] sm:$0x1]  ;;  %v6244_v27 = vld [vmem:[%s7220_s27 + $0x54] sm:$0xe] }
  0xf5   : > { %v4554_v4 = vrot.slane %v4552_v36, 4  ;;  %v5018_v58 = vrot.slane %v6230_v23, 5  ;;  %6596 = vmatmul.mubr.msk.bf16.gmra.mrb[8].mxu1 %vm314_vm1, %v7119_v34  ;;  %v4560_v29 = vrot.slane %v4558_v49, 5  ;;  %v5021_v63 = vrot.slane %v6231_v7, 5  ;;  %v6243_v34 = vld [vmem:[%s7220_s27 + $0x50] sm:$0x1] }
  0xf6   : > { %v4537_v41 = vsel %vm7267_vm4, %v4532_v55, %v4536_v35  ;;  %v5025_v2 = vrot.slane %v6233_v56, 5  ;;  %6599 = vmatprep.mubr.msk.bf16.mxu1 %vm314_vm1, %v7120_v32  ;;  %v4546_v25 = vrot.slane %v4545_v8, 4  ;;  %v6278_v47 = vrot.slane %v6232_v45, 9  ;;  %v6245_v23 = vld [vmem:[%s7220_s27 + $0x58] sm:$0xf] }
  0xf7   : > { %v6211_v10 = vcombine.low %v4527_v12, %v4537_v41  ;;  %v4555_v39 = vor.u32 %v4554_v4, %v4550_v51  ;;  %v5020_v44 = vrot.slane %v5018_v58, 4  ;;  %v5028_v30 = vrot.slane %v6234_v57, 5  ;;  %v6246_v19 = vld [vmem:[%s7220_s27 + $0x5c] sm:$0x1]  ;;  %v5929_v7 = vld [vmem:[%s7220_s27 + $0x6c] sm:$0xf] }
  0xf8   : > { %v5027_v24 = vrot.slane %v5025_v2, 4  ;;  %v5019_v59 = vsel %vm7342_vm7, %v6277_v28, %v5018_v58  ;;  %v6279_v31 = vrot.slane %v6235_v1, 9  ;;  %v5032_v40 = vrot.slane %v6236_v5, 5  ;;  %v5930_v45 = vld [vmem:[%s7220_s27 + $0x70] sm:$0xf]  ;;  %v7123_v41 = vld [vmem:[%s7220_s27 + $0x78] sm:$0xff]  }
  0xf9   : > { %6748 = vmatmul.mubr.msk.bf16.gmra.mrb[24].mxu0 %vm314_vm1, %v6210_v53  ;;  %v4556_v3 = vrot.slane %v4555_v39, 4  ;;  %v4551_v9 = vsel %vm7267_vm4, %v4546_v25, %v4550_v51  ;;  %v5022_v18 = vsel %vm7342_vm7, %v5020_v44, %v5021_v63  ;;  %v5035_v61 = vrot.slane %v6237_v13, 5  ;;  %v5931_v55 = vld [vmem:[%s7220_s27 + $0x74] sm:$0x1]  ;;  %v5932_v57 = vld [vmem:[%s7220_s27 + $0x78] sm:$0xf] }
  0xfa   : > { %6751 = vmatprep.mubr.msk.bf16.mxu0 %vm314_vm1, %v6211_v10  ;;  %v8150_v21 = vsel %vm7342_vm7, %v6278_v47, %v5025_v2  ;;  %v8154_v38 = vsel %vm7342_vm7, %v5027_v24, %v5028_v30  ;;  %v6294_v15 = vcombine.low %v5019_v59, %v5022_v18  ;;  %v5034_v48 = vrot.slane %v5032_v40, 4  ;;  %v5933_v1 = vld [vmem:[%s7220_s27 + $0x7c] sm:$0xf]  ;;  %v7124_v10 = vld [vmem:[%s7220_s27 + $0x84] sm:$0xff]   ;;  %v5934_v24 = vld [vmem:[%s7220_s27 + $0x80] sm:$0x1] }
  0xfb   : > { %v4561_v17 = vsel %vm7267_vm4, %v4556_v3, %v4560_v29  ;;  %v6280_v22 = vrot.slane %v6238_v62, 9  ;;  %v5039_v26 = vrot.slane %v6239_v16, 5  ;;  %v8162_v54 = vsel %vm7342_vm7, %v6279_v31, %v5032_v40  ;;  %v6247_v16 = vld [vmem:[%s7220_s27 + $0x60] sm:$0xe] }
  0xfc   : > { %v6212_v32 = vcombine.low %v4551_v9, %v4561_v17  ;;  %v6281_v52 = vrot.slane %v6241_v20, 9  ;;  %v5046_v11 = vrot.slane %v6242_v37, 5  ;;  %v8169_v56 = vsel %vm7342_vm7, %v5034_v48, %v5035_v61  ;;  %v6251_v37 = vld [vmem:[%s7220_s27 + $0x70] sm:$0xf]  ;;  %v6249_v48 = vld [vmem:[%s7220_s27 + $0x68] sm:$0x1] }
  0xfd   : > { %6600 = vmatmul.mubr.msk.bf16.gmra.mrb[12].mxu1 %vm314_vm1, %v7121_v14  ;;  %v5041_v42 = vrot.slane %v5039_v26, 4  ;;  %v5042_v6 = vrot.slane %v6240_v60, 5  ;;  %v6282_v35 = vrot.slane %v6244_v27, 9  ;;  %v6295_v46 = vcombine.low %v8150_v21, %v8154_v38 }
  0xfe   : > { %6603 = vmatprep.mubr.msk.bf16.mxu1 %vm314_vm1, %v7122_v33  ;;  %v5049_v50 = vrot.slane %v6243_v34, 5  ;;  %v5053_v51 = vrot.slane %v6245_v23, 5  ;;  %v6296_v36 = vcombine.low %v8162_v54, %v8169_v56  ;;  %v8179_v53 = vsel %vm7342_vm7, %v6280_v22, %v5039_v26  ;;  %v6248_v33 = vld [vmem:[%s7220_s27 + $0x64] sm:$0xf]  ;;  %v6250_v34 = vld [vmem:[%s7220_s27 + $0x6c] sm:$0xe] }
  0xff   : > { %v8183_v12 = vsel %vm7342_vm7, %v6281_v52, %v5046_v11  ;;  %v2589_v49 = vshrl.u32 %v5929_v7, 16  ;;  %v5048_v8 = vrot.slane %v5046_v11, 4  ;;  %v5056_v4 = vrot.slane %v6246_v19, 5  ;;  %v7125_v23 = vld [vmem:[%s7220_s27 + $0x90] sm:$0xff]   ;;  %v5935_v19 = vld [vmem:[%s7220_s27 + $0x84] sm:$0xf] }
 0x100   : > { %v2592_v28 = vshll.u32 %v5929_v7, 16  ;;  %v2598_v58 = vshll.u32 %v5930_v45, 16  ;;  %v8193_v29 = vsel %vm7342_vm7, %v5041_v42, %v5042_v6  ;;  %v8197_v63 = vsel %vm7342_vm7, %v6282_v35, %v5053_v51  ;;  %v6252_v6 = vld [vmem:[%s7220_s27 + $0x74] sm:$0x1] }
 0x101   : > { %6752 = vmatmul.mubr.msk.bf16.gmra.mrb[28].mxu0 %vm314_vm1, %v6212_v32  ;;  %v2591_v2 = vrot.slane %v2589_v49, 4  ;;  %v2602_v5 = vshrl.u32 %v5930_v45, 16  ;;  %v5055_v25 = vrot.slane %v5053_v51, 4  ;;  %v2608_v13 = vshll.u32 %v5931_v55, 16  ;;  %v5936_v45 = vld [vmem:[%s7220_s27 + $0x88] sm:$0xf] }
 0x102   : > { %6757 = vmatprep.mubr.msk.bf16.mxu0 %vm314_vm1, %v6294_v15  ;;  %v2594_v39 = vrot.slane %v2592_v28, 5  ;;  %v2600_v47 = vrot.slane %v2598_v58, 5  ;;  %v2613_v30 = vshrl.u32 %v5932_v57, 16  ;;  %v2616_v62 = vshll.u32 %v5932_v57, 16  ;;  %v5937_v57 = vld [vmem:[%s7220_s27 + $0x8c] sm:$0x1] }
 0x103   : > { %v2604_v44 = vrot.slane %v2602_v5, 4  ;;  %v2622_v14 = vshll.u32 %v5933_v1, 16  ;;  %v8203_v3 = vsel %vm7342_vm7, %v5048_v8, %v5049_v50  ;;  %v2610_v31 = vrot.slane %v2608_v13, 5 }
 0x104   : > { %v2595_v59 = vor.u32 %v2594_v39, %v2591_v2  ;;  %v2626_v40 = vshrl.u32 %v5933_v1, 16  ;;  %v2615_v18 = vrot.slane %v2613_v30, 4  ;;  %v2618_v61 = vrot.slane %v2616_v62, 5  ;;  %v5940_v39 = vld [vmem:[%s7220_s27 + $0x98] sm:$0x1] }
 0x105   : > { %6604 = vmatmul.mubr.msk.bf16.gmra.mrb[16].mxu1 %vm314_vm1, %v7123_v41  ;;  %v2605_v9 = vor.u32 %v2604_v44, %v2600_v47  ;;  %v8208_v20 = vrot.slane %v2622_v14, 5  ;;  %v8214_v17 = vsel %vm7342_vm7, %v5055_v25, %v5056_v4  ;;  %v2632_v60 = vshll.u32 %v5934_v24, 16  ;;  %v5938_v4 = vld [vmem:[%s7220_s27 + $0x90] sm:$0xf]  ;;  %v6253_v30 = vld [vmem:[%s7220_s27 + $0x78] sm:$0xe] }
 0x106   : > { %6607 = vmatprep.mubr.msk.bf16.mxu1 %vm314_vm1, %v7124_v10  ;;  %v2596_v21 = vrot.slane %v2595_v59, 4  ;;  %v2628_v38 = vrot.slane %v2626_v40, 4  ;;  %v2619_v15 = vor.u32 %v2618_v61, %v2615_v18  ;;  %v6283_v22 = vrot.slane %v6247_v16, 9  ;;  %v6255_v18 = vld [vmem:[%s7220_s27 + $0x80] sm:$0x1] }
 0x107   : > { %v2606_v27 = vrot.slane %v2605_v9, 4  ;;  %v5060_v26 = vrot.slane %v6248_v33, 5  ;;  %v6297_v32 = vcombine.low %v8179_v53, %v8193_v29  ;;  %v5067_v11 = vrot.slane %v6251_v37, 5  ;;  %v5939_v29 = vld [vmem:[%s7220_s27 + $0x94] sm:$0xf]  ;;  %v7127_v37 = vld [vmem:[%s7220_s27 + $0xa8] sm:$0xff]  }
 0x108   : > { %v2601_v54 = vsel %vm7267_vm4, %v2596_v21, %v2600_v47  ;;  %v2629_v52 = vor.u32 %v2628_v38, %v8208_v20  ;;  %v6298_v7 = vcombine.low %v8183_v12, %v8203_v3  ;;  %v8231_v42 = vrot.slane %v2619_v15, 4  ;;  %v6256_v61 = vld [vmem:[%s7220_s27 + $0x84] sm:$0xe]  ;;  %v7128_v15 = vld [vmem:[%s7220_s27 + $0xb4] sm:$0xff]  }
 0x109   : > { %6758 = vmatmul.mubr.msk.bf16.vlgmr.msra.gmra.mrb[0].mxu0 %vm314_vm1, %v6295_v46  ;;  %v2611_v56 = vsel %vm7267_vm4, %v2606_v27, %v2610_v31  ;;  %v6284_v35 = vrot.slane %v6250_v34, 9  ;;  %v7126_v46 = vld [vmem:[%s7220_s27 + $0x9c] sm:$0xff]   ;;  %v6299_v50 = vcombine.low %v8197_v63, %v8214_v17  ;;  %v8238_v51 = vrot.slane %v2632_v60, 5  ;;  %v6257_v27 = vld [vmem:[%s7220_s27 + $0x88] sm:$0xf] }
 0x10a   : > { %6761 = vmatprep.mubr.msk.bf16.mxu0 %vm314_vm1, %v6296_v36  ;;  %v5062_v36 = vrot.slane %v5060_v26, 4  ;;  %v5063_v53 = vrot.slane %v6249_v48, 5  ;;  %v8240_v55 = vcombine.low %v2601_v54, %v2611_v56  ;;  %v8242_v12 = vrot.slane %v2629_v52, 4  ;;  %v6254_v31 = vld [vmem:[%s7220_s27 + $0x7c] sm:$0xf] }
 0x10b   : > { %v8246_v49 = vsel %vm7342_vm7, %v6283_v22, %v5060_v26  ;;  %v2637_v8 = vshrl.u32 %v5935_v19, 16  ;;  %v5069_v28 = vrot.slane %v5067_v11, 4  ;;  %v5070_v58 = vrot.slane %v6252_v6, 5  ;;  %v6258_v56 = vld [vmem:[%s7220_s27 + $0x8c] sm:$0x1] }
 0x10c   : > { %v2640_v1 = vshll.u32 %v5935_v19, 16  ;;  %v2646_v41 = vshll.u32 %v5936_v45, 16  ;;  %v2625_v2 = vsel %vm7267_vm4, %v8231_v42, %v8208_v20  ;;  %v8258_v5 = vsel %vm7342_vm7, %v6284_v35, %v5067_v11 }
 0x10d   : > { %6608 = vmatmul.mubr.msk.bf16.gmra.mrb[20].mxu1 %vm314_vm1, %v7125_v23  ;;  %v2639_v10 = vrot.slane %v2637_v8, 4  ;;  %v2650_v25 = vshrl.u32 %v5936_v45, 16  ;;  %v8264_v47 = vsel %vm7342_vm7, %v5062_v36, %v5063_v53  ;;  %v2656_v24 = vshll.u32 %v5937_v57, 16  ;;  %v5941_v45 = vld [vmem:[%s7220_s27 + $0x9c] sm:$0xf] }
 0x10e   : > { %6611 = vmatprep.mubr.msk.bf16.mxu1 %vm314_vm1, %v7126_v46  ;;  %v2642_v13 = vrot.slane %v2640_v1, 5  ;;  %v8266_v44 = vrot.slane %v2646_v41, 5  ;;  %v2661_v14 = vshrl.u32 %v5938_v4, 16  ;;  %v2664_v3 = vshll.u32 %v5938_v4, 16  ;;  %v5942_v8 = vld [vmem:[%s7220_s27 + $0xa0] sm:$0xf] }
 0x10f   : > { %v2652_v62 = vrot.slane %v2650_v25, 4  ;;  %v2670_v59 = vshll.u32 %v5939_v29, 16  ;;  %v8273_v40 = vsel %vm7342_vm7, %v5069_v28, %v5070_v58  ;;  %v2674_v33 = vshrl.u32 %v5939_v29, 16  ;;  %v5944_v25 = vld [vmem:[%s7220_s27 + $0xa8] sm:$0xf] }
 0x110   : > { %v2643_v16 = vor.u32 %v2642_v13, %v2639_v10  ;;  %v2680_v9 = vshll.u32 %v5940_v39, 16  ;;  %v2663_v38 = vrot.slane %v2661_v14, 4  ;;  %v2666_v60 = vrot.slane %v2664_v3, 5 }
 0x111   : > { %6762 = vmatmul.mubr.msk.bf16.gmra.mrb[4].mxu0 %vm314_vm1, %v6297_v32  ;;  %v2653_v21 = vor.u32 %v2652_v62, %v8266_v44  ;;  %v8280_v34 = vrot.slane %v2670_v59, 5  ;;  %v8286_v22 = vrot.slane %v2656_v24, 5  ;;  %v2676_v26 = vrot.slane %v2674_v33, 4  ;;  %v5945_v24 = vld [vmem:[%s7220_s27 + $0xac] sm:$0xf] }
 0x112   : > { %6765 = vmatprep.mubr.msk.bf16.mxu0 %vm314_vm1, %v6298_v7  ;;  %v8284_v48 = vrot.slane %v2643_v16, 4  ;;  %v6285_v23 = vrot.slane %v6253_v30, 9  ;;  %v2667_v54 = vor.u32 %v2666_v60, %v2663_v38  ;;  %v5074_v52 = vrot.slane %v6254_v31, 5  ;;  %v7129_v30 = vld [vmem:[%s7220_s27 + $0xc0] sm:$0xff]  }
 0x113   : > { %v8288_v32 = vrot.slane %v2653_v21, 4  ;;  %v5077_v11 = vrot.slane %v6255_v18, 5  ;;  %v2635_v19 = vsel %vm7267_vm4, %v8242_v12, %v8238_v51  ;;  %v2677_v7 = vor.u32 %v2676_v26, %v8280_v34  ;;  %v5948_v12 = vld [vmem:[%s7220_s27 + $0xb8] sm:$0xf] }
 0x114   : > { %v6286_v6 = vrot.slane %v6256_v61, 9  ;;  %v5081_v35 = vrot.slane %v6257_v27, 5  ;;  %v6300_v46 = vcombine.low %v8246_v49, %v8264_v47  ;;  %v8300_v36 = vrot.slane %v2667_v54, 4  ;;  %v6259_v61 = vld [vmem:[%s7220_s27 + $0x90] sm:$0xe] }
 0x115   : > { %6612 = vmatmul.mubr.msk.bf16.gmra.mrb[24].mxu1 %vm314_vm1, %v7127_v37  ;;  %v8302_v53 = vrot.slane %v2680_v9, 5  ;;  %v5076_v57 = vrot.slane %v5074_v52, 4  ;;  %v6301_v4 = vcombine.low %v8258_v5, %v8273_v40  ;;  %v2649_v28 = vsel %vm7267_vm4, %v8284_v48, %v8266_v44  ;;  %v5943_v5 = vld [vmem:[%s7220_s27 + $0xa4] sm:$0x1]  ;;  %v5946_v40 = vld [vmem:[%s7220_s27 + $0xb0] sm:$0x1] }
 0x116   : > { %6615 = vmatprep.mubr.msk.bf16.mxu1 %vm314_vm1, %v7128_v15  ;;  %v2659_v49 = vsel %vm7267_vm4, %v8288_v32, %v8286_v22  ;;  %v2678_v58 = vrot.slane %v2677_v7, 4  ;;  %v5075_v1 = vsel %vm7342_vm7, %v6285_v23, %v5074_v52  ;;  %v8322_v29 = vsel %vm7342_vm7, %v6286_v6, %v5081_v35  ;;  %v6261_v27 = vld [vmem:[%s7220_s27 + $0x98] sm:$0x1]  ;;  %v6263_v23 = vld [vmem:[%s7220_s27 + $0xa0] sm:$0xf] }
 0x117   : > { %v5078_v41 = vsel %vm7342_vm7, %v5076_v57, %v5077_v11  ;;  %v2685_v10 = vshrl.u32 %v5941_v45, 16  ;;  %v5083_v39 = vrot.slane %v5081_v35, 4  ;;  %v5084_v47 = vrot.slane %v6258_v56, 5  ;;  %v5947_v57 = vld [vmem:[%s7220_s27 + $0xb4] sm:$0xf] }
 0x118   : > { %v2688_v13 = vshll.u32 %v5941_v45, 16  ;;  %v2694_v44 = vshll.u32 %v5942_v8, 16  ;;  %v2673_v62 = vsel %vm7267_vm4, %v8300_v36, %v8280_v34  ;;  %v2683_v63 = vsel %vm7267_vm4, %v2678_v58, %v8302_v53  ;;  %v6260_v34 = vld [vmem:[%s7220_s27 + $0x94] sm:$0xf]  ;;  %v6262_v45 = vld [vmem:[%s7220_s27 + $0x9c] sm:$0xe] }
 0x119   : > { %6766 = vmatmul.mubr.msk.bf16.gmra.mrb[8].mxu0 %vm314_vm1, %v6299_v50  ;;  %v2687_v17 = vrot.slane %v2685_v10, 4  ;;  %v2698_v50 = vshrl.u32 %v5942_v8, 16  ;;  %v6302_v14 = vcombine.low %v5075_v1, %v5078_v41  ;;  %v2704_v31 = vshll.u32 %v5943_v5, 16  ;;  %v5949_v5 = vld [vmem:[%s7220_s27 + $0xbc] sm:$0x1] }
 0x11a   : > { %6769 = vmatprep.mubr.msk.bf16.mxu0 %vm314_vm1, %v6300_v46  ;;  %v2690_v3 = vrot.slane %v2688_v13, 5  ;;  %v2696_v59 = vrot.slane %v2694_v44, 5  ;;  %v2709_v33 = vshrl.u32 %v5944_v25, 16  ;;  %v2712_v9 = vshll.u32 %v5944_v25, 16  ;;  %v5950_v25 = vld [vmem:[%s7220_s27 + $0xc0] sm:$0xf] }
 0x11b   : > { %v2700_v16 = vrot.slane %v2698_v50, 4  ;;  %v2718_v18 = vshll.u32 %v5945_v24, 16  ;;  %v8344_v37 = vsel %vm7342_vm7, %v5083_v39, %v5084_v47  ;;  %v2706_v38 = vrot.slane %v2704_v31, 5 }
 0x11c   : > { %v2691_v21 = vor.u32 %v2690_v3, %v2687_v17  ;;  %v2722_v60 = vshrl.u32 %v5945_v24, 16  ;;  %v2711_v48 = vrot.slane %v2709_v33, 4  ;;  %v2714_v22 = vrot.slane %v2712_v9, 5  ;;  %v6265_v33 = vld [vmem:[%s7220_s27 + $0xa8] sm:$0xe] }
 0x11d   : > { %6616 = vmatmul.mubr.msk.bf16.gmra.mrb[28].mxu1 %vm314_vm1, %v7129_v30  ;;  %v2701_v15 = vor.u32 %v2700_v16, %v2696_v59  ;;  %v8349_v26 = vrot.slane %v2718_v18, 5  ;;  %v2728_v52 = vshll.u32 %v5946_v40, 16  ;;  %v6287_v11 = vrot.slane %v6259_v61, 9 }
 0x11e   : > { %6637 = vmatprep.mubr.msk.bf16.mxu1 %vm314_vm1, %v8240_v55  ;;  %v2692_v32 = vrot.slane %v2691_v21, 4  ;;  %v2724_v54 = vrot.slane %v2722_v60, 4  ;;  %v2715_v56 = vor.u32 %v2714_v22, %v2711_v48  ;;  %v5088_v6 = vrot.slane %v6260_v34, 5  ;;  %v6266_v21 = vld [vmem:[%s7220_s27 + $0xac] sm:$0xf] }
 0x11f   : > { %v2702_v7 = vrot.slane %v2701_v15, 4  ;;  %v5091_v35 = vrot.slane %v6261_v27, 5  ;;  %v5963_v55 = vcombine.low %v2625_v2, %v2635_v19  ;;  %v5095_v53 = vrot.slane %v6263_v23, 5  ;;  %v5952_v27 = vld [vmem:[%s7220_s27 + $0xc8] sm:$0x1] }
 0x120   : > { %v2697_v46 = vsel %vm7267_vm4, %v2692_v32, %v2696_v59  ;;  %v2725_v36 = vor.u32 %v2724_v54, %v8349_v26  ;;  %v5964_v8 = vcombine.low %v2649_v28, %v2659_v49  ;;  %v8370_v51 = vcombine.low %v2673_v62, %v2683_v63  ;;  %v6264_v28 = vld [vmem:[%s7220_s27 + $0xa4] sm:$0x1]  ;;  %v6269_v22 = vld [vmem:[%s7220_s27 + $0xb8] sm:$0xf] }
 0x121   : > { %6770 = vmatmul.mubr.msk.bf16.gmra.mrb[12].mxu0 %vm314_vm1, %v6301_v4  ;;  %v2707_v20 = vsel %vm7267_vm4, %v2702_v7, %v2706_v38  ;;  %v5090_v42 = vrot.slane %v5088_v6, 4  ;;  %v6303_v2 = vcombine.low %v8322_v29, %v8344_v37  ;;  %v8378_v19 = vrot.slane %v2728_v52, 5  ;;  %v5951_v29 = vld [vmem:[%s7220_s27 + $0xc4] sm:$0xf]  ;;  %v6267_v38 = vld [vmem:[%s7220_s27 + $0xb0] sm:$0x1] }
 0x122   : > { %6773 = vmatprep.mubr.msk.bf16.mxu0 %vm314_vm1, %v6302_v14  ;;  %v5089_v4 = vsel %vm7342_vm7, %v6287_v11, %v5088_v6  ;;  %v6288_v49 = vrot.slane %v6262_v45, 9  ;;  %v5966_v58 = vcombine.low %v2697_v46, %v2707_v20  ;;  %v2716_v1 = vrot.slane %v2715_v56, 4  ;;  %v6268_v52 = vld [vmem:[%s7220_s27 + $0xb4] sm:$0xe] }
 0x123   : > { %v5092_v41 = vsel %vm7342_vm7, %v5090_v42, %v5091_v35  ;;  %v2733_v10 = vshrl.u32 %v5947_v57, 16  ;;  %v2726_v39 = vrot.slane %v2725_v36, 4  ;;  %v5097_v47 = vrot.slane %v5095_v53, 4  ;;  %v6271_v36 = vld [vmem:[%s7220_s27 + $0xc0] sm:$0xe] }
 0x124   : > { %v2736_v13 = vshll.u32 %v5947_v57, 16  ;;  %v2742_v44 = vshll.u32 %v5948_v12, 16  ;;  %v6304_v24 = vcombine.low %v5089_v4, %v5092_v41  ;;  %v5098_v30 = vrot.slane %v6264_v28, 5  ;;  %v6272_v42 = vld [vmem:[%s7220_s27 + $0xc4] sm:$0xf] }
 0x125   : > { %6638 = vmatmul.mubr.msk.bf16.vlgmr.msra.gmra.mrb[16].mxu1 %vm314_vm1, %v5963_v55  ;;  %v2735_v62 = vrot.slane %v2733_v10, 4  ;;  %v2746_v63 = vshrl.u32 %v5948_v12, 16  ;;  %v5096_v17 = vsel %vm7342_vm7, %v6288_v49, %v5095_v53  ;;  %v2752_v3 = vshll.u32 %v5949_v5, 16  ;;  %v6270_v55 = vld [vmem:[%s7220_s27 + $0xbc] sm:$0x1] }
 0x126   : > { %6641 = vmatprep.mubr.msk.bf16.mxu1 %vm314_vm1, %v5964_v8  ;;  %v2738_v50 = vrot.slane %v2736_v13, 5  ;;  %v2744_v14 = vrot.slane %v2742_v44, 5  ;;  %v2757_v31 = vshrl.u32 %v5950_v25, 16  ;;  %v2760_v40 = vshll.u32 %v5950_v25, 16  ;;  %v6273_v12 = vld [vmem:[%s7220_s27 + $0xc8] sm:$0x1] }
 0x127   : > { %v2748_v59 = vrot.slane %v2746_v63, 4  ;;  %v2766_v16 = vshll.u32 %v5951_v29, 16  ;;  %v2721_v9 = vsel %vm7267_vm4, %v2716_v1, %v8349_v26  ;;  %v2731_v18 = vsel %vm7267_vm4, %v2726_v39, %v8378_v19  ;;  %v6275_v49 = vld [vmem:[%s7220_s27 + $0xd0] sm:$0xf] }
 0x128   : > { %v2739_v61 = vor.u32 %v2738_v50, %v2735_v62  ;;  %v2770_v37 = vshrl.u32 %v5951_v29, 16  ;;  %v5099_v60 = vsel %vm7342_vm7, %v5097_v47, %v5098_v30  ;;  %v2759_v15 = vrot.slane %v2757_v31, 4  ;;  %v6276_v50 = vld [vmem:[%s7220_s27 + $0xd4] sm:$0x1] }
 0x129   : > { %6774 = vmatmul.mubr.msk.bf16.gmra.mrb[16].mxu0 %vm314_vm1, %v6303_v2  ;;  %v2749_v34 = vor.u32 %v2748_v59, %v2744_v14  ;;  %v2762_v48 = vrot.slane %v2760_v40, 5  ;;  %v2768_v23 = vrot.slane %v2766_v16, 5  ;;  %v6289_v54 = vrot.slane %v6265_v33, 9 }
 0x12a   : > { %6777 = vmatprep.mubr.msk.bf16.mxu0 %vm314_vm1, %v6304_v24  ;;  %v2740_v26 = vrot.slane %v2739_v61, 4  ;;  %v2772_v32 = vrot.slane %v2770_v37, 4  ;;  %v2754_v7 = vrot.slane %v2752_v3, 5  ;;  %v5102_v56 = vrot.slane %v6266_v21, 5 }
 0x12b   : > { %v2750_v11 = vrot.slane %v2749_v34, 4  ;;  %v5105_v6 = vrot.slane %v6267_v38, 5  ;;  %v6305_v35 = vcombine.low %v5096_v17, %v5099_v60  ;;  %v2776_v45 = vshll.u32 %v5952_v27, 16  ;;  %v6274_v17 = vld [vmem:[%s7220_s27 + $0xcc] sm:$0xe] }
 0x12c   : > { %v5109_v46 = vrot.slane %v6269_v22, 5  ;;  %v2763_v53 = vor.u32 %v2762_v48, %v2759_v15  ;;  %v5103_v57 = vsel %vm7342_vm7, %v6289_v54, %v5102_v56  ;;  %v5104_v8 = vrot.slane %v5102_v56, 4 }
 0x12d   : > { %6642 = vmatmul.mubr.msk.bf16.gmra.mrb[20].mxu1 %vm314_vm1, %v8370_v51  ;;  %v6290_v20 = vrot.slane %v6268_v52, 9  ;;  %v5967_v2 = vcombine.low %v2721_v9, %v2731_v18  ;;  %v2745_v19 = vsel %vm7267_vm4, %v2740_v26, %v2744_v14  ;;  %v2773_v4 = vor.u32 %v2772_v32, %v2768_v23 }
 0x12e   : > { %6645 = vmatprep.mubr.msk.bf16.mxu1 %vm314_vm1, %v5966_v58  ;;  %v5111_v28 = vrot.slane %v5109_v46, 4  ;;  %v2755_v51 = vsel %vm7267_vm4, %v2750_v11, %v2754_v7  ;;  %v5106_v1 = vsel %vm7342_vm7, %v5104_v8, %v5105_v6  ;;  %v5112_v41 = vrot.slane %v6270_v55, 5  ;;  %v8461_v6 = vld [vmem:[%s8548_s2] ss:$0 sm:$0xff] }
 0x12f   : > { %v6291_v5 = vrot.slane %v6271_v36, 9  ;;  %v2778_v58 = vrot.slane %v2776_v45, 5  ;;  %v6306_v10 = vcombine.low %v5103_v57, %v5106_v1  ;;  %v5116_v25 = vrot.slane %v6272_v42, 5 }
 0x130   : > { %v5119_v39 = vrot.slane %v6273_v12, 5  ;;  %v2764_v47 = vrot.slane %v2763_v53, 4  ;;  %v5110_v13 = vsel %vm7342_vm7, %v6290_v20, %v5109_v46  ;;  %v5113_v44 = vsel %vm7342_vm7, %v5111_v28, %v5112_v41 }
 0x131   : > { %6778 = vmatmul.mubr.msk.bf16.gmra.mrb[20].mxu0 %vm314_vm1, %v6305_v35  ;;  %v5123_v29 = vrot.slane %v6275_v49, 5  ;;  %v5968_v24 = vcombine.low %v2745_v19, %v2755_v51  ;;  %v2774_v30 = vrot.slane %v2773_v4, 4  ;;  %v5117_v62 = vsel %vm7342_vm7, %v6291_v5, %v5116_v25 }
 0x132   : > { %6781 = vmatprep.mubr.msk.bf16.mxu0 %vm314_vm1, %v6306_v10  ;;  %v5118_v63 = vrot.slane %v5116_v25, 4  ;;  %v6307_v14 = vcombine.low %v5110_v13, %v5113_v44  ;;  %v6292_v31 = vrot.slane %v6274_v17, 9  ;;  %v5126_v16 = vrot.slane %v6276_v50, 5 }
 0x133   : > { %v5125_v40 = vrot.slane %v5123_v29, 4  ;;  %v2769_v33 = vsel %vm7267_vm4, %v2764_v47, %v2768_v23  ;;  %v2779_v9 = vsel %vm7267_vm4, %v2774_v30, %v2778_v58 }
 0x134   : > { %v5120_v3 = vsel %vm7342_vm7, %v5118_v63, %v5119_v39  ;;  %v5969_v18 = vcombine.low %v2769_v33, %v2779_v9  ;;  %v5124_v61 = vsel %vm7342_vm7, %v6292_v31, %v5123_v29 }
 0x135   : > { %6646 = vmatmul.mubr.msk.bf16.gmra.mrb[24].mxu1 %vm314_vm1, %v5967_v2  ;;  %v6308_v59 = vcombine.low %v5117_v62, %v5120_v3  ;;  %v5127_v37 = vsel %vm7342_vm7, %v5125_v40, %v5126_v16 }
 0x136   : > { %6649 = vmatprep.mubr.msk.bf16.mxu1 %vm314_vm1, %v5968_v24  ;;  %v6309_v21 = vcombine.low %v5124_v61, %v5127_v37 }
 0x139   : > { %6782 = vmatmul.mubr.msk.bf16.gmra.mrb[24].mxu0 %vm314_vm1, %v6307_v14 }
 0x13a   : > { %6785 = vmatprep.mubr.msk.bf16.mxu0 %vm314_vm1, %v6308_v59 }
 0x13d   : > { %6650 = vmatmul.mubr.msk.bf16.gmra.mrb[28].mxu1 %vm314_vm1, %v5969_v18 }
 0x141   : > { %6786 = vmatmul.mubr.msk.bf16.gmra.mrb[28].mxu0 %vm314_vm1, %v6309_v21 }
 0x1b8   : > { %v6589_v38 = vpop.f32.mrb[0].mxu1 }
 0x1b9   : > { %v2125_v60 = vpop.f32.mrb[1].mxu1 }
 0x1ba   : > { %v6590_v43 = vpop.f32.mrb[2].mxu1 }
 0x1bb   : > { %v2128_v34 = vpop.f32.mrb[3].mxu1 }
 0x1c0   : > { %v6593_v27 = vpop.f32.mrb[4].mxu1 }
 0x1c1   : > { %v2141_v15 = vpop.f32.mrb[5].mxu1 }
 0x1c2   : > { %v6594_v48 = vpop.f32.mrb[6].mxu1 }
 0x1c3   : > { %v2144_v22 = vpop.f32.mrb[7].mxu1 }
 0x1c8   : > { %v6597_v26 = vpop.f32.mrb[8].mxu1 }
 0x1c9   : > { %v2157_v23 = vpop.f32.mrb[9].mxu1 }
 0x1ca   : > { %v6598_v32 = vpop.f32.mrb[10].mxu1 }
 0x1cb   : > { %v2160_v54 = vpop.f32.mrb[11].mxu1 }
 0x1d0   : > { %v8450_v0 = vpop.f32.mrb[12].mxu1 }
 0x1d1   : > { %v8452_v52 = vpop.f32.mrb[13].mxu1 }
 0x1d2   : > { %v8454_v11 = vpop.f32.mrb[14].mxu1 }
 0x1d3   : > { %v8456_v7 = vpop.f32.mrb[15].mxu1 }
 0x1dc   : > { %v6759_v56 = vpop.f32.mrb[0].mxu0 }
 0x1dd   : > { %v6791_v35 = vadd.f32 %v6759_v56, %v6589_v38  ;;  %v5263_v45 = vpop.f32.mrb[1].mxu0 }
 0x1de   : > { %v6792_v55 = vadd.f32 %v5263_v45, %v2125_v60  ;;  %v6760_v46 = vpop.f32.mrb[2].mxu0 }
 0x1df   : > { %v5527_v36 = vadd.f32 %v6791_v35, %v8461_v6  ;;  %v6793_v53 = vadd.f32 %v6760_v46, %v6590_v43  ;;  %v5266_v57 = vpop.f32.mrb[3].mxu0 }
 0x1e0   : > { %v5525_v8 = vadd.f32 %v6792_v55, %v8461_v6  ;;  %v6794_v20 = vadd.f32 %v5266_v57, %v2128_v34 }
 0x1e1   : > { %v5559_v42 = vmax.f32 %v5527_v36, 0.0  ;;  %v5528_v12 = vadd.f32 %v6793_v53, %v8461_v6 }
 0x1e2   : > { %v5557_v2 = vmax.f32 %v5525_v8, 0.0  ;;  %v5526_v19 = vadd.f32 %v6794_v20, %v8461_v6 }
 0x1e3   : > { %5591 = vst [vmem:[%s8468_s22 + $0x10] sm:$0xff] %v5559_v42  ;;  %v5560_v4 = vmax.f32 %v5528_v12, 0.0 }
 0x1e4   : > { %5589 = vst [vmem:[%s8468_s22] sm:$0xff] %v5557_v2  ;;  %v5558_v28 = vmax.f32 %v5526_v19, 0.0  ;;  %v6763_v49 = vpop.f32.mrb[4].mxu0 }
 0x1e5   : > { %5592 = vst [vmem:[%s8468_s22 + $0x18] sm:$0xff] %v5560_v4  ;;  %v6795_v51 = vadd.f32 %v6763_v49, %v6593_v27  ;;  %v5279_v1 = vpop.f32.mrb[5].mxu0 }
 0x1e6   : > { %5590 = vst [vmem:[%s8468_s22 + $0x8] sm:$0xff] %v5558_v28  ;;  %v6796_v41 = vadd.f32 %v5279_v1, %v2141_v15  ;;  %v6764_v5 = vpop.f32.mrb[6].mxu0 }
 0x1e7   : > { %v5531_v58 = vadd.f32 %v6795_v51, %v8461_v6  ;;  %v6797_v10 = vadd.f32 %v6764_v5, %v6594_v48  ;;  %v5282_v25 = vpop.f32.mrb[7].mxu0 }
 0x1e8   : > { %v5529_v39 = vadd.f32 %v6796_v41, %v8461_v6  ;;  %v6798_v47 = vadd.f32 %v5282_v25, %v2144_v22 }
 0x1e9   : > { %v5563_v13 = vmax.f32 %v5531_v58, 0.0  ;;  %v5532_v44 = vadd.f32 %v6797_v10, %v8461_v6 }
 0x1ea   : > { %v5561_v29 = vmax.f32 %v5529_v39, 0.0  ;;  %v5530_v24 = vadd.f32 %v6798_v47, %v8461_v6 }
 0x1eb   : > { %5595 = vst [vmem:[%s8468_s22 + $0x30] sm:$0xff] %v5563_v13  ;;  %v5564_v30 = vmax.f32 %v5532_v44, 0.0 }
 0x1ec   : > { %5593 = vst [vmem:[%s8468_s22 + $0x20] sm:$0xff] %v5561_v29  ;;  %v5562_v62 = vmax.f32 %v5530_v24, 0.0  ;;  %v6767_v63 = vpop.f32.mrb[8].mxu0 }
 0x1ed   : > { %5596 = vst [vmem:[%s8468_s22 + $0x38] sm:$0xff] %v5564_v30  ;;  %v6799_v17 = vadd.f32 %v6767_v63, %v6597_v26  ;;  %v5295_v50 = vpop.f32.mrb[9].mxu0 }
 0x1ee   : > { %5594 = vst [vmem:[%s8468_s22 + $0x28] sm:$0xff] %v5562_v62  ;;  %v6800_v14 = vadd.f32 %v5295_v50, %v2157_v23  ;;  %v6768_v3 = vpop.f32.mrb[10].mxu0 }
 0x1ef   : > { %v5535_v59 = vadd.f32 %v6799_v17, %v8461_v6  ;;  %v6801_v31 = vadd.f32 %v6768_v3, %v6598_v32  ;;  %v5298_v40 = vpop.f32.mrb[11].mxu0 }
 0x1f0   : > { %v5533_v16 = vadd.f32 %v6800_v14, %v8461_v6  ;;  %v6802_v33 = vadd.f32 %v5298_v40, %v2160_v54 }
 0x1f1   : > { %v5567_v9 = vmax.f32 %v5535_v59, 0.0  ;;  %v5536_v18 = vadd.f32 %v6801_v31, %v8461_v6 }
 0x1f2   : > { %v5565_v61 = vmax.f32 %v5533_v16, 0.0  ;;  %v5534_v37 = vadd.f32 %v6802_v33, %v8461_v6 }
 0x1f3   : > { %5599 = vst [vmem:[%s8468_s22 + $0x50] sm:$0xff] %v5567_v9  ;;  %v5568_v21 = vmax.f32 %v5536_v18, 0.0 }
 0x1f4   : > { %5597 = vst [vmem:[%s8468_s22 + $0x40] sm:$0xff] %v5565_v61  ;;  %v5566_v38 = vmax.f32 %v5534_v37, 0.0  ;;  %v6771_v60 = vpop.f32.mrb[12].mxu0 }
 0x1f5   : > { %5600 = vst [vmem:[%s8468_s22 + $0x58] sm:$0xff] %v5568_v21  ;;  %v6803_v43 = vadd.f32 %v6771_v60, %v8450_v0  ;;  %v5311_v34 = vpop.f32.mrb[13].mxu0 }
 0x1f6   : > { %5598 = vst [vmem:[%s8468_s22 + $0x48] sm:$0xff] %v5566_v38  ;;  %v6804_v27 = vadd.f32 %v5311_v34, %v8452_v52  ;;  %v6772_v15 = vpop.f32.mrb[14].mxu0 }
 0x1f7   : > { %v5539_v48 = vadd.f32 %v6803_v43, %v8461_v6  ;;  %v6805_v22 = vadd.f32 %v6772_v15, %v8454_v11  ;;  %v5314_v26 = vpop.f32.mrb[15].mxu0 }
 0x1f8   : > { %v5537_v23 = vadd.f32 %v6804_v27, %v8461_v6  ;;  %v6806_v32 = vadd.f32 %v5314_v26, %v8456_v7  ;;  %v6639_v54 = vpop.f32.mrb[16].mxu1 }
 0x1f9   : > { %v5571_v0 = vmax.f32 %v5539_v48, 0.0  ;;  %v5540_v56 = vadd.f32 %v6805_v22, %v8461_v6  ;;  %v2979_v35 = vpop.f32.mrb[17].mxu1 }
 0x1fa   : > { %v5569_v45 = vmax.f32 %v5537_v23, 0.0  ;;  %v5538_v52 = vadd.f32 %v6806_v32, %v8461_v6  ;;  %v6640_v55 = vpop.f32.mrb[18].mxu1 }
 0x1fb   : > { %5603 = vst [vmem:[%s8468_s22 + $0x70] sm:$0xff] %v5571_v0  ;;  %v5572_v46 = vmax.f32 %v5540_v56, 0.0  ;;  %v2982_v11 = vpop.f32.mrb[19].mxu1 }
 0x1fc   : > { %5601 = vst [vmem:[%s8468_s22 + $0x60] sm:$0xff] %v5569_v45  ;;  %v5570_v36 = vmax.f32 %v5538_v52, 0.0  ;;  %v6775_v53 = vpop.f32.mrb[16].mxu0 }
 0x1fd   : > { %5604 = vst [vmem:[%s8468_s22 + $0x78] sm:$0xff] %v5572_v46  ;;  %v6807_v57 = vadd.f32 %v6775_v53, %v6639_v54  ;;  %v5327_v7 = vpop.f32.mrb[17].mxu0 }
 0x1fe   : > { %5602 = vst [vmem:[%s8468_s22 + $0x68] sm:$0xff] %v5570_v36  ;;  %v6808_v8 = vadd.f32 %v5327_v7, %v2979_v35  ;;  %v6776_v20 = vpop.f32.mrb[18].mxu0 }
 0x1ff   : > { %v5543_v42 = vadd.f32 %v6807_v57, %v8461_v6  ;;  %v6809_v12 = vadd.f32 %v6776_v20, %v6640_v55  ;;  %v5330_v2 = vpop.f32.mrb[19].mxu0 }
 0x200   : > { %v5541_v19 = vadd.f32 %v6808_v8, %v8461_v6  ;;  %v6810_v4 = vadd.f32 %v5330_v2, %v2982_v11  ;;  %v6643_v28 = vpop.f32.mrb[20].mxu1 }
 0x201   : > { %v5575_v49 = vmax.f32 %v5543_v42, 0.0  ;;  %v5544_v51 = vadd.f32 %v6809_v12, %v8461_v6  ;;  %v2995_v1 = vpop.f32.mrb[21].mxu1 }
 0x202   : > { %v5573_v41 = vmax.f32 %v5541_v19, 0.0  ;;  %v5542_v5 = vadd.f32 %v6810_v4, %v8461_v6  ;;  %v6644_v58 = vpop.f32.mrb[22].mxu1 }
 0x203   : > { %5607 = vst [vmem:[%s8468_s22 + $0x90] sm:$0xff] %v5575_v49  ;;  %v5576_v10 = vmax.f32 %v5544_v51, 0.0  ;;  %v2998_v25 = vpop.f32.mrb[23].mxu1 }
 0x204   : > { %5605 = vst [vmem:[%s8468_s22 + $0x80] sm:$0xff] %v5573_v41  ;;  %v5574_v39 = vmax.f32 %v5542_v5, 0.0  ;;  %v6779_v47 = vpop.f32.mrb[20].mxu0 }
 0x205   : > { %5608 = vst [vmem:[%s8468_s22 + $0x98] sm:$0xff] %v5576_v10  ;;  %v6811_v13 = vadd.f32 %v6779_v47, %v6643_v28  ;;  %v5343_v44 = vpop.f32.mrb[21].mxu0 }
 0x206   : > { %5606 = vst [vmem:[%s8468_s22 + $0x88] sm:$0xff] %v5574_v39  ;;  %v6812_v29 = vadd.f32 %v5343_v44, %v2995_v1  ;;  %v6780_v24 = vpop.f32.mrb[22].mxu0 }
 0x207   : > { %v5547_v30 = vadd.f32 %v6811_v13, %v8461_v6  ;;  %v6813_v62 = vadd.f32 %v6780_v24, %v6644_v58  ;;  %v5346_v63 = vpop.f32.mrb[23].mxu0 }
 0x208   : > { %v5545_v17 = vadd.f32 %v6812_v29, %v8461_v6  ;;  %v6814_v50 = vadd.f32 %v5346_v63, %v2998_v25  ;;  %v6647_v14 = vpop.f32.mrb[24].mxu1 }
 0x209   : > { %v5579_v3 = vmax.f32 %v5547_v30, 0.0  ;;  %v5548_v59 = vadd.f32 %v6813_v62, %v8461_v6  ;;  %v3011_v31 = vpop.f32.mrb[25].mxu1 }
 0x20a   : > { %v5577_v40 = vmax.f32 %v5545_v17, 0.0  ;;  %v5546_v16 = vadd.f32 %v6814_v50, %v8461_v6  ;;  %v6648_v33 = vpop.f32.mrb[26].mxu1 }
 0x20b   : > { %5611 = vst [vmem:[%s8468_s22 + $0xb0] sm:$0xff] %v5579_v3  ;;  %v5580_v9 = vmax.f32 %v5548_v59, 0.0  ;;  %v3014_v18 = vpop.f32.mrb[27].mxu1 }
 0x20c   : > { %5609 = vst [vmem:[%s8468_s22 + $0xa0] sm:$0xff] %v5577_v40  ;;  %v5578_v61 = vmax.f32 %v5546_v16, 0.0  ;;  %v6783_v37 = vpop.f32.mrb[24].mxu0 }
 0x20d   : > { %5612 = vst [vmem:[%s8468_s22 + $0xb8] sm:$0xff] %v5580_v9  ;;  %v6815_v21 = vadd.f32 %v6783_v37, %v6647_v14  ;;  %v5359_v38 = vpop.f32.mrb[25].mxu0 }
 0x20e   : > { %5610 = vst [vmem:[%s8468_s22 + $0xa8] sm:$0xff] %v5578_v61  ;;  %v6816_v60 = vadd.f32 %v5359_v38, %v3011_v31  ;;  %v6784_v43 = vpop.f32.mrb[26].mxu0 }
 0x20f   : > { %v5551_v34 = vadd.f32 %v6815_v21, %v8461_v6  ;;  %v6817_v27 = vadd.f32 %v6784_v43, %v6648_v33  ;;  %v5362_v15 = vpop.f32.mrb[27].mxu0 }
 0x210   : > { %v5549_v48 = vadd.f32 %v6816_v60, %v8461_v6  ;;  %v6818_v22 = vadd.f32 %v5362_v15, %v3014_v18  ;;  %v6651_v26 = vpop.f32.mrb[28].mxu1 }
 0x211   : > { %v5583_v23 = vmax.f32 %v5551_v34, 0.0  ;;  %v5552_v32 = vadd.f32 %v6817_v27, %v8461_v6  ;;  %v3027_v54 = vpop.f32.mrb[29].mxu1 }
 0x212   : > { %v5581_v0 = vmax.f32 %v5549_v48, 0.0  ;;  %v5550_v56 = vadd.f32 %v6818_v22, %v8461_v6  ;;  %v6652_v35 = vpop.f32.mrb[30].mxu1 }
 0x213   : > { %5615 = vst [vmem:[%s8468_s22 + $0xd0] sm:$0xff] %v5583_v23  ;;  %v5584_v45 = vmax.f32 %v5552_v32, 0.0  ;;  %v3030_v52 = vpop.f32.mrb[31].mxu1 }
 0x214   : > { %5613 = vst [vmem:[%s8468_s22 + $0xc0] sm:$0xff] %v5581_v0  ;;  %v5582_v55 = vmax.f32 %v5550_v56, 0.0  ;;  %v6787_v46 = vpop.f32.mrb[28].mxu0 }
 0x215   : > { %5616 = vst [vmem:[%s8468_s22 + $0xd8] sm:$0xff] %v5584_v45  ;;  %v6819_v11 = vadd.f32 %v6787_v46, %v6651_v26  ;;  %v5375_v36 = vpop.f32.mrb[29].mxu0 }
 0x216   : > { %5614 = vst [vmem:[%s8468_s22 + $0xc8] sm:$0xff] %v5582_v55  ;;  %v6820_v53 = vadd.f32 %v5375_v36, %v3027_v54  ;;  %v6788_v57 = vpop.f32.mrb[30].mxu0 }
 0x217   : > { %v5555_v7 = vadd.f32 %v6819_v11, %v8461_v6  ;;  %v6821_v8 = vadd.f32 %v6788_v57, %v6652_v35  ;;  %v5378_v20 = vpop.f32.mrb[31].mxu0 }
 0x218   : > { %v5553_v42 = vadd.f32 %v6820_v53, %v8461_v6  ;;  %v6822_v12 = vadd.f32 %v5378_v20, %v3030_v52 }
 0x219   : > { %v5587_v2 = vmax.f32 %v5555_v7, 0.0  ;;  %v5556_v19 = vadd.f32 %v6821_v8, %v8461_v6 }
 0x21a   : > { %v5585_v4 = vmax.f32 %v5553_v42, 0.0  ;;  %v5554_v28 = vadd.f32 %v6822_v12, %v8461_v6 }
 0x21b   : > { %5619 = vst [vmem:[%s8468_s22 + $0xf0] sm:$0xff] %v5587_v2  ;;  %v5588_v49 = vmax.f32 %v5556_v19, 0.0 }
 0x21c   : > { %5617 = vst [vmem:[%s8468_s22 + $0xe0] sm:$0xff] %v5585_v4  ;;  %v5586_v51 = vmax.f32 %v5554_v28, 0.0 }
 0x21d   : > { %5620 = vst [vmem:[%s8468_s22 + $0xf8] sm:$0xff] %v5588_v49 }
 0x21e   : > { %5618 = vst [vmem:[%s8468_s22 + $0xe8] sm:$0xff] %v5586_v51 }
 0x21f PF: > { %s13_s14 = sadd.s32 1, %s7153_s14   ;;  %s8554_s12 = smov %s7149_s13 }
 0x220   : > { %p10_p5 = scmp.ge.s32.totalorder %s13_s14, 4   ;;  %s8555_s13 = smov %s8557_s15 }
 0x222   :  { %12 = sbr.rel (!%p10_p5) target bundleno = 2 (0x2), region = 73 }

</bundles_post_ra>
